<compile_context>
chip_gen: v7x
topology: tpu7x:2x2x1
jax: 0.10.0
libtpu: 0.0.40
codegen_flags: <defaults>
</compile_context>

<pallas_src>
import functools

import jax
import jax.numpy as jnp
from jax import lax
from jax.experimental import pallas as pl
from jax.experimental.pallas import tpu as pltpu


# ------------------------------- Pallas kernel -------------------------------

def _bottleneck_kernel(x_ref, w1_ref, b1_ref, w2_ref, b2_ref, w3_ref, wd_ref,
                       b3d_ref, o_ref, pad_ref, *, stride):
    """Fully fused bottleneck block for one image (one grid step = one batch item).

    x_ref  : (1, H, W, Cin)   bf16  input image
    w1_ref : (Cin, C1)        bf16  conv1 weight, BN1 scale folded in
    b1_ref : (1, C1)          f32   BN1 bias
    w2_ref : (9*C1, C2)       bf16  conv2 weight, rows ordered (dy, dx, cin), BN2 folded
    b2_ref : (1, C2)          f32   BN2 bias
    w3_ref : (C2, C3)         bf16  conv3 weight, BN3 scale folded in
    wd_ref : (Cin, C3)        bf16  downsample weight, BNd scale folded in
    b3d_ref: (1, C3)          f32   BN3 bias + BNd bias (pre-summed)
    o_ref  : (1, Ho, Wo, C3)  f32   output
    pad_ref: (H+2, W+2, C1)   bf16  VMEM scratch holding zero-padded o1
    """
    _, H, W, Cin = x_ref.shape
    C1 = w1_ref.shape[1]
    C2 = w2_ref.shape[1]
    C3 = w3_ref.shape[1]
    Ho = (H - 1) // stride + 1
    Wo = (W - 1) // stride + 1

    x = x_ref[0]                                  # (H, W, Cin) bf16
    xf = x.reshape(H * W, Cin)

    # ---- conv1 (1x1) + bn1 + relu  ->  zero-padded VMEM scratch -------------
    o1 = jnp.dot(xf, w1_ref[...], preferred_element_type=jnp.float32)
    o1 = jnp.maximum(o1 + b1_ref[...], 0.0)
    # Zero the scratch (cheap VMEM memset), then overwrite the centre.  Zeroing
    # every step keeps the halo correct regardless of how grid steps are sharded
    # across TensorCores.
    pad_ref[...] = jnp.zeros_like(pad_ref)
    pad_ref[1:H + 1, 1:W + 1, :] = o1.reshape(H, W, C1).astype(pad_ref.dtype)

    # ---- conv2 (3x3, stride, pad=1) + bn2 + relu: 9 shifted MXU matmuls -----
    acc = jnp.zeros((Ho * Wo, C2), jnp.float32)
    for t in range(9):
        dy, dx = t // 3, t % 3
        if stride == 1:
            patch = pad_ref[dy:dy + Ho, dx:dx + Wo, :]
        else:
            # TODO(synk): stride>1 path (strided VMEM reads) is implemented but only
            # stride==1 is exercised by the test below.
            patch = pad_ref[pl.ds(dy, Ho, stride=stride),
                            pl.ds(dx, Wo, stride=stride), :]
        acc += jnp.dot(patch.reshape(Ho * Wo, C1),
                       w2_ref[t * C1:(t + 1) * C1, :],
                       preferred_element_type=jnp.float32)
    o2 = jnp.maximum(acc + b2_ref[...], 0.0).astype(x.dtype)   # back to bf16

    # ---- conv3 (1x1)+bn3 + downsample(1x1,stride)+bnd + add + relu, fused ---
    if stride == 1:
        xr = xf
    else:
        xr = x_ref[0, pl.ds(0, Ho, stride=stride),
                   pl.ds(0, Wo, stride=stride), :].reshape(Ho * Wo, Cin)
    y = jnp.dot(o2, w3_ref[...], preferred_element_type=jnp.float32)
    y += jnp.dot(xr, wd_ref[...], preferred_element_type=jnp.float32)
    y = jnp.maximum(y + b3d_ref[...], 0.0)
    o_ref[0] = y.reshape(Ho, Wo, C3).astype(o_ref.dtype)


# --------------------------------- wrapper -----------------------------------

def bottleneck_forward(x_nchw, params, *, stride=1, compute_dtype=jnp.bfloat16):
    """Pallas forward pass of Bottleneck (isDownsample=True), NCHW in / NCHW out."""
    # TODO(synk): isDownsample=False (identity residual) variant not implemented.
    x = jnp.transpose(x_nchw, (0, 2, 3, 1)).astype(compute_dtype)   # NHWC, bf16
    N, H, W, Cin = x.shape
    Ho = (H - 1) // stride + 1
    Wo = (W - 1) // stride + 1
    C1 = params["w1"].shape[1]
    C2 = params["w2"].shape[1]
    C3 = params["w3"].shape[1]

    w1 = params["w1"].astype(compute_dtype)
    w2 = params["w2"].astype(compute_dtype)
    w3 = params["w3"].astype(compute_dtype)
    wd = params["wd"].astype(compute_dtype)
    b1 = params["b1"].reshape(1, C1).astype(jnp.float32)
    b2 = params["b2"].reshape(1, C2).astype(jnp.float32)
    b3d = params["b3d"].reshape(1, C3).astype(jnp.float32)

    itemsize = jnp.dtype(compute_dtype).itemsize
    flops = 2 * N * (H * W * Cin * C1
                     + Ho * Wo * (9 * C1 * C2 + C2 * C3 + Cin * C3))
    bytes_accessed = (N * H * W * Cin * itemsize                       # x read once
                      + N * Ho * Wo * C3 * 4                           # out written once
                      + (Cin * C1 + 9 * C1 * C2 + C2 * C3 + Cin * C3) * itemsize
                      + (C1 + C2 + C3) * 4)

    const = lambda n: (0, 0)   # weights/biases: fetched once, stay VMEM-resident
    out = pl.pallas_call(
        functools.partial(_bottleneck_kernel, stride=stride),
        out_shape=jax.ShapeDtypeStruct((N, Ho, Wo, C3), jnp.float32),
        grid=(N,),
        in_specs=[
            pl.BlockSpec((1, H, W, Cin), lambda n: (n, 0, 0, 0)),
            pl.BlockSpec((Cin, C1), const),
            pl.BlockSpec((1, C1), const),
            pl.BlockSpec((9 * C1, C2), const),
            pl.BlockSpec((1, C2), const),
            pl.BlockSpec((C2, C3), const),
            pl.BlockSpec((Cin, C3), const),
            pl.BlockSpec((1, C3), const),
        ],
        out_specs=pl.BlockSpec((1, Ho, Wo, C3), lambda n: (n, 0, 0, 0)),
        scratch_shapes=[pltpu.VMEM((H + 2, W + 2, C1), compute_dtype)],
        compiler_params=pltpu.CompilerParams(
            dimension_semantics=("parallel",),          # batch steps shard over TCs
            vmem_limit_bytes=32 * 1024 * 1024,          # safe on v5e/v6e/v7x
        ),
        cost_estimate=pl.CostEstimate(flops=flops, transcendentals=0,
                                      bytes_accessed=bytes_accessed),
    )(x, w1, b1, w2, b2, w3, wd, b3d)

    return jnp.transpose(out, (0, 3, 1, 2))             # back to NCHW, f32


# --------------------------- parameter building ------------------------------

def make_raw_params(key, cin, out_channels):
    o1, o2, o3 = out_channels
    ks = jax.random.split(key, 8)

    def bn_params(k, c):
        k1, k2, k3, k4 = jax.random.split(k, 4)
        gamma = 1.0 + 0.1 * jax.random.normal(k1, (c,), jnp.float32)
        beta = 0.05 * jax.random.normal(k2, (c,), jnp.float32)
        mean = 0.1 * jax.random.normal(k3, (c,), jnp.float32)
        var = 1.0 + 0.1 * jnp.abs(jax.random.normal(k4, (c,), jnp.float32))
        return gamma, beta, mean, var

    return dict(
        w1=0.2 * jax.random.normal(ks[0], (cin, o1), jnp.float32),            # 1x1
        w2_hwio=0.2 * jax.random.normal(ks[1], (3, 3, o1, o2), jnp.float32),  # 3x3
        w3=0.2 * jax.random.normal(ks[2], (o2, o3), jnp.float32),             # 1x1
        wd=0.2 * jax.random.normal(ks[3], (cin, o3), jnp.float32),            # 1x1 downsample
        bn1=bn_params(ks[4], o1), bn2=bn_params(ks[5], o2),
        bn3=bn_params(ks[6], o3), bnd=bn_params(ks[7], o3),
    )


def fold_bn(gamma, beta, mean, var, eps=1e-5):
    scale = gamma / jnp.sqrt(var + eps)
    return scale, beta - mean * scale


def fold_params(raw):
    """Inference-fold BN into the conv weights: one weight + one bias per conv."""
    s1, b1 = fold_bn(*raw["bn1"])
    s2, b2 = fold_bn(*raw["bn2"])
    s3, b3 = fold_bn(*raw["bn3"])
    sd, bd = fold_bn(*raw["bnd"])
    c2 = raw["w2_hwio"].shape[-1]
    return dict(
        w1=raw["w1"] * s1[None, :], b1=b1,
        w2=(raw["w2_hwio"] * s2).reshape(-1, c2), b2=b2,   # rows ordered (dy, dx, cin)
        w3=raw["w3"] * s3[None, :],
        wd=raw["wd"] * sd[None, :],
        b3d=b3 + bd,                                       # conv3 + downsample biases
    )


# -------------------------------- reference ----------------------------------

def reference_forward(x_nchw, raw, stride=1):
    """Pure-JAX float32 reference matching the PyTorch module (inference-mode BN)."""
    dn = ("NHWC", "HWIO", "NHWC")
    eps = 1e-5

    def conv(v, w, s):
        pad = ((w.shape[0] // 2,) * 2, (w.shape[1] // 2,) * 2)
        return lax.conv_general_dilated(v, w, (s, s), pad, dimension_numbers=dn)

    def bn(v, p):
        gamma, beta, mean, var = p
        return (v - mean) / jnp.sqrt(var + eps) * gamma + beta

    x = jnp.transpose(x_nchw, (0, 2, 3, 1)).astype(jnp.float32)
    o = jnp.maximum(bn(conv(x, raw["w1"][None, None], 1), raw["bn1"]), 0.0)
    o = jnp.maximum(bn(conv(o, raw["w2_hwio"], stride), raw["bn2"]), 0.0)
    o = bn(conv(o, raw["w3"][None, None], 1), raw["bn3"])
    r = bn(conv(x, raw["wd"][None, None], stride), raw["bnd"])
    return jnp.transpose(jnp.maximum(o + r, 0.0), (0, 3, 1, 2))


# ---------------------------------- main --------------------------------------

if __name__ == "__main__":
    key = jax.random.PRNGKey(0)
    kx, kp = jax.random.split(key)

    N, Cin, H, W = 2, 4, 16, 16
    out_channels = (8, 8, 16)
    stride = 1

    x = jax.random.normal(kx, (N, Cin, H, W), jnp.float32)   # NCHW (PyTorch convention)
    raw = make_raw_params(kp, Cin, out_channels)
    params = fold_params(raw)

    fwd = jax.jit(functools.partial(bottleneck_forward, stride=stride))
    out = jax.block_until_ready(fwd(x, params))

    ref = jax.block_until_ready(reference_forward(x, raw, stride=stride))
    assert out.shape == (N, out_channels[2], H // stride, W // stride), out.shape
    assert out.dtype == jnp.float32
    # bf16 activations/weights with f32 accumulation => loosened tolerance.
    assert jnp.allclose(out, ref, atol=5e-2, rtol=5e-2), \
        float(jnp.max(jnp.abs(out - ref)))

    print("KERNEL_OK")
</pallas_src>

<mosaic_0001>
module attributes {stable_mosaic.version = 11 : i64} {
  func.func @_bottleneck_kernel(%arg0: i32, %arg1: memref<1x16x16x4xbf16, #tpu.memory_space<vmem>>, %arg2: memref<4x8xbf16, #tpu.memory_space<vmem>>, %arg3: memref<1x8xf32, #tpu.memory_space<vmem>>, %arg4: memref<72x8xbf16, #tpu.memory_space<vmem>>, %arg5: memref<1x8xf32, #tpu.memory_space<vmem>>, %arg6: memref<8x16xbf16, #tpu.memory_space<vmem>>, %arg7: memref<4x16xbf16, #tpu.memory_space<vmem>>, %arg8: memref<1x16xf32, #tpu.memory_space<vmem>>, %arg9: memref<1x16x16x16xf32, #tpu.memory_space<vmem>>, %arg10: memref<18x18x8xbf16, #tpu.memory_space<vmem>>) attributes {dimension_semantics = [#tpu.dimension_semantics<parallel>], iteration_bounds = array<i64: 2>, scalar_prefetch = 0 : i64, scratch_operands = 1 : i64, tpu.core_type = #tpu.core_type<tc>, window_params = [{transform_indices = @transform_0, window_bounds = array<i64: 1, 16, 16, 4>}, {pipeline_mode = #tpu.pipeline_mode<synchronous>, transform_indices = @transform_1, window_bounds = array<i64: 4, 8>}, {pipeline_mode = #tpu.pipeline_mode<synchronous>, transform_indices = @transform_2, window_bounds = array<i64: 1, 8>}, {pipeline_mode = #tpu.pipeline_mode<synchronous>, transform_indices = @transform_3, window_bounds = array<i64: 72, 8>}, {pipeline_mode = #tpu.pipeline_mode<synchronous>, transform_indices = @transform_4, window_bounds = array<i64: 1, 8>}, {pipeline_mode = #tpu.pipeline_mode<synchronous>, transform_indices = @transform_5, window_bounds = array<i64: 8, 16>}, {pipeline_mode = #tpu.pipeline_mode<synchronous>, transform_indices = @transform_6, window_bounds = array<i64: 4, 16>}, {pipeline_mode = #tpu.pipeline_mode<synchronous>, transform_indices = @transform_7, window_bounds = array<i64: 1, 16>}, {transform_indices = @transform_8, window_bounds = array<i64: 1, 16, 16, 16>}]} {
    %c0 = arith.constant 0 : index
    %c0_0 = arith.constant 0 : index
    %c0_1 = arith.constant 0 : index
    %c0_2 = arith.constant 0 : index
    %0 = vector.load %arg1[%c0, %c0_0, %c0_1, %c0_2] : memref<1x16x16x4xbf16, #tpu.memory_space<vmem>>, vector<1x16x16x4xbf16>
    %1 = vector.shape_cast %0 : vector<1x16x16x4xbf16> to vector<16x16x4xbf16>
    %2 = vector.shape_cast %1 : vector<16x16x4xbf16> to vector<256x4xbf16>
    %c0_3 = arith.constant 0 : index
    %c0_4 = arith.constant 0 : index
    %3 = vector.load %arg2[%c0_3, %c0_4] : memref<4x8xbf16, #tpu.memory_space<vmem>>, vector<4x8xbf16>
    %cst = arith.constant dense<0.000000e+00> : vector<256x8xf32>
    %4 = tpu.matmul %2, %3, %cst {dimension_numbers = #tpu.dot_dimension_numbers<[1], [0], [0], [1], [0, 0, 1, 1], [], []>} : vector<256x4xbf16>, vector<4x8xbf16>, vector<256x8xf32> -> vector<256x8xf32>
    %c0_5 = arith.constant 0 : index
    %c0_6 = arith.constant 0 : index
    %5 = vector.load %arg3[%c0_5, %c0_6] : memref<1x8xf32, #tpu.memory_space<vmem>>, vector<1x8xf32>
    %6 = vector.broadcast %5 : vector<1x8xf32> to vector<256x8xf32>
    %7 = arith.addf %4, %6 : vector<256x8xf32>
    %cst_7 = arith.constant 0.000000e+00 : f32
    %8 = vector.broadcast %cst_7 : f32 to vector<256x8xf32>
    %9 = arith.maximumf %7, %8 : vector<256x8xf32>
    %cst_8 = arith.constant 0.000000e+00 : bf16
    %10 = vector.broadcast %cst_8 : bf16 to vector<18x18x8xbf16>
    %c0_9 = arith.constant 0 : index
    %c0_10 = arith.constant 0 : index
    %c0_11 = arith.constant 0 : index
    %11 = vector.load %arg10[%c0_9, %c0_10, %c0_11] : memref<18x18x8xbf16, #tpu.memory_space<vmem>>, vector<18x18x8xbf16>
    tpu.vector_store %arg10[%c0_9, %c0_10, %c0_11], %10 {strides = array<i32>} : memref<18x18x8xbf16, #tpu.memory_space<vmem>>, vector<18x18x8xbf16>,
    %12 = vector.shape_cast %9 : vector<256x8xf32> to vector<16x16x8xf32>
    %13 = arith.truncf %12 : vector<16x16x8xf32> to vector<16x16x8xbf16>
    %c1 = arith.constant 1 : index
    %c1_12 = arith.constant 1 : index
    %c0_13 = arith.constant 0 : index
    %14 = vector.load %arg10[%c1, %c1_12, %c0_13] : memref<18x18x8xbf16, #tpu.memory_space<vmem>>, vector<16x16x8xbf16>
    tpu.vector_store %arg10[%c1, %c1_12, %c0_13], %13 {strides = array<i32>} : memref<18x18x8xbf16, #tpu.memory_space<vmem>>, vector<16x16x8xbf16>,
    %cst_14 = arith.constant 0.000000e+00 : f32
    %15 = vector.broadcast %cst_14 : f32 to vector<256x8xf32>
    %c0_15 = arith.constant 0 : index
    %c0_16 = arith.constant 0 : index
    %c0_17 = arith.constant 0 : index
    %16 = vector.load %arg10[%c0_15, %c0_16, %c0_17] : memref<18x18x8xbf16, #tpu.memory_space<vmem>>, vector<16x16x8xbf16>
    %17 = vector.shape_cast %16 : vector<16x16x8xbf16> to vector<256x8xbf16>
    %c0_18 = arith.constant 0 : index
    %c0_19 = arith.constant 0 : index
    %18 = vector.load %arg4[%c0_18, %c0_19] : memref<72x8xbf16, #tpu.memory_space<vmem>>, vector<8x8xbf16>
    %cst_20 = arith.constant dense<0.000000e+00> : vector<256x8xf32>
    %19 = tpu.matmul %17, %18, %cst_20 {dimension_numbers = #tpu.dot_dimension_numbers<[1], [0], [0], [1], [0, 0, 1, 1], [], []>} : vector<256x8xbf16>, vector<8x8xbf16>, vector<256x8xf32> -> vector<256x8xf32>
    %20 = arith.addf %15, %19 : vector<256x8xf32>
    %c0_21 = arith.constant 0 : index
    %c1_22 = arith.constant 1 : index
    %c0_23 = arith.constant 0 : index
    %21 = vector.load %arg10[%c0_21, %c1_22, %c0_23] : memref<18x18x8xbf16, #tpu.memory_space<vmem>>, vector<16x16x8xbf16>
    %22 = vector.shape_cast %21 : vector<16x16x8xbf16> to vector<256x8xbf16>
    %c8 = arith.constant 8 : index
    %c0_24 = arith.constant 0 : index
    %23 = vector.load %arg4[%c8, %c0_24] : memref<72x8xbf16, #tpu.memory_space<vmem>>, vector<8x8xbf16>
    %cst_25 = arith.constant dense<0.000000e+00> : vector<256x8xf32>
    %24 = tpu.matmul %22, %23, %cst_25 {dimension_numbers = #tpu.dot_dimension_numbers<[1], [0], [0], [1], [0, 0, 1, 1], [], []>} : vector<256x8xbf16>, vector<8x8xbf16>, vector<256x8xf32> -> vector<256x8xf32>
    %25 = arith.addf %20, %24 : vector<256x8xf32>
    %c0_26 = arith.constant 0 : index
    %c2 = arith.constant 2 : index
    %c0_27 = arith.constant 0 : index
    %26 = vector.load %arg10[%c0_26, %c2, %c0_27] : memref<18x18x8xbf16, #tpu.memory_space<vmem>>, vector<16x16x8xbf16>
    %27 = vector.shape_cast %26 : vector<16x16x8xbf16> to vector<256x8xbf16>
    %c16 = arith.constant 16 : index
    %c0_28 = arith.constant 0 : index
    %28 = vector.load %arg4[%c16, %c0_28] : memref<72x8xbf16, #tpu.memory_space<vmem>>, vector<8x8xbf16>
    %cst_29 = arith.constant dense<0.000000e+00> : vector<256x8xf32>
    %29 = tpu.matmul %27, %28, %cst_29 {dimension_numbers = #tpu.dot_dimension_numbers<[1], [0], [0], [1], [0, 0, 1, 1], [], []>} : vector<256x8xbf16>, vector<8x8xbf16>, vector<256x8xf32> -> vector<256x8xf32>
    %30 = arith.addf %25, %29 : vector<256x8xf32>
    %c1_30 = arith.constant 1 : index
    %c0_31 = arith.constant 0 : index
    %c0_32 = arith.constant 0 : index
    %31 = vector.load %arg10[%c1_30, %c0_31, %c0_32] : memref<18x18x8xbf16, #tpu.memory_space<vmem>>, vector<16x16x8xbf16>
    %32 = vector.shape_cast %31 : vector<16x16x8xbf16> to vector<256x8xbf16>
    %c24 = arith.constant 24 : index
    %c0_33 = arith.constant 0 : index
    %33 = vector.load %arg4[%c24, %c0_33] : memref<72x8xbf16, #tpu.memory_space<vmem>>, vector<8x8xbf16>
    %cst_34 = arith.constant dense<0.000000e+00> : vector<256x8xf32>
    %34 = tpu.matmul %32, %33, %cst_34 {dimension_numbers = #tpu.dot_dimension_numbers<[1], [0], [0], [1], [0, 0, 1, 1], [], []>} : vector<256x8xbf16>, vector<8x8xbf16>, vector<256x8xf32> -> vector<256x8xf32>
    %35 = arith.addf %30, %34 : vector<256x8xf32>
    %c1_35 = arith.constant 1 : index
    %c1_36 = arith.constant 1 : index
    %c0_37 = arith.constant 0 : index
    %36 = vector.load %arg10[%c1_35, %c1_36, %c0_37] : memref<18x18x8xbf16, #tpu.memory_space<vmem>>, vector<16x16x8xbf16>
    %37 = vector.shape_cast %36 : vector<16x16x8xbf16> to vector<256x8xbf16>
    %c32 = arith.constant 32 : index
    %c0_38 = arith.constant 0 : index
    %38 = vector.load %arg4[%c32, %c0_38] : memref<72x8xbf16, #tpu.memory_space<vmem>>, vector<8x8xbf16>
    %cst_39 = arith.constant dense<0.000000e+00> : vector<256x8xf32>
    %39 = tpu.matmul %37, %38, %cst_39 {dimension_numbers = #tpu.dot_dimension_numbers<[1], [0], [0], [1], [0, 0, 1, 1], [], []>} : vector<256x8xbf16>, vector<8x8xbf16>, vector<256x8xf32> -> vector<256x8xf32>
    %40 = arith.addf %35, %39 : vector<256x8xf32>
    %c1_40 = arith.constant 1 : index
    %c2_41 = arith.constant 2 : index
    %c0_42 = arith.constant 0 : index
    %41 = vector.load %arg10[%c1_40, %c2_41, %c0_42] : memref<18x18x8xbf16, #tpu.memory_space<vmem>>, vector<16x16x8xbf16>
    %42 = vector.shape_cast %41 : vector<16x16x8xbf16> to vector<256x8xbf16>
    %c40 = arith.constant 40 : index
    %c0_43 = arith.constant 0 : index
    %43 = vector.load %arg4[%c40, %c0_43] : memref<72x8xbf16, #tpu.memory_space<vmem>>, vector<8x8xbf16>
    %cst_44 = arith.constant dense<0.000000e+00> : vector<256x8xf32>
    %44 = tpu.matmul %42, %43, %cst_44 {dimension_numbers = #tpu.dot_dimension_numbers<[1], [0], [0], [1], [0, 0, 1, 1], [], []>} : vector<256x8xbf16>, vector<8x8xbf16>, vector<256x8xf32> -> vector<256x8xf32>
    %45 = arith.addf %40, %44 : vector<256x8xf32>
    %c2_45 = arith.constant 2 : index
    %c0_46 = arith.constant 0 : index
    %c0_47 = arith.constant 0 : index
    %46 = vector.load %arg10[%c2_45, %c0_46, %c0_47] : memref<18x18x8xbf16, #tpu.memory_space<vmem>>, vector<16x16x8xbf16>
    %47 = vector.shape_cast %46 : vector<16x16x8xbf16> to vector<256x8xbf16>
    %c48 = arith.constant 48 : index
    %c0_48 = arith.constant 0 : index
    %48 = vector.load %arg4[%c48, %c0_48] : memref<72x8xbf16, #tpu.memory_space<vmem>>, vector<8x8xbf16>
    %cst_49 = arith.constant dense<0.000000e+00> : vector<256x8xf32>
    %49 = tpu.matmul %47, %48, %cst_49 {dimension_numbers = #tpu.dot_dimension_numbers<[1], [0], [0], [1], [0, 0, 1, 1], [], []>} : vector<256x8xbf16>, vector<8x8xbf16>, vector<256x8xf32> -> vector<256x8xf32>
    %50 = arith.addf %45, %49 : vector<256x8xf32>
    %c2_50 = arith.constant 2 : index
    %c1_51 = arith.constant 1 : index
    %c0_52 = arith.constant 0 : index
    %51 = vector.load %arg10[%c2_50, %c1_51, %c0_52] : memref<18x18x8xbf16, #tpu.memory_space<vmem>>, vector<16x16x8xbf16>
    %52 = vector.shape_cast %51 : vector<16x16x8xbf16> to vector<256x8xbf16>
    %c56 = arith.constant 56 : index
    %c0_53 = arith.constant 0 : index
    %53 = vector.load %arg4[%c56, %c0_53] : memref<72x8xbf16, #tpu.memory_space<vmem>>, vector<8x8xbf16>
    %cst_54 = arith.constant dense<0.000000e+00> : vector<256x8xf32>
    %54 = tpu.matmul %52, %53, %cst_54 {dimension_numbers = #tpu.dot_dimension_numbers<[1], [0], [0], [1], [0, 0, 1, 1], [], []>} : vector<256x8xbf16>, vector<8x8xbf16>, vector<256x8xf32> -> vector<256x8xf32>
    %55 = arith.addf %50, %54 : vector<256x8xf32>
    %c2_55 = arith.constant 2 : index
    %c2_56 = arith.constant 2 : index
    %c0_57 = arith.constant 0 : index
    %56 = vector.load %arg10[%c2_55, %c2_56, %c0_57] : memref<18x18x8xbf16, #tpu.memory_space<vmem>>, vector<16x16x8xbf16>
    %57 = vector.shape_cast %56 : vector<16x16x8xbf16> to vector<256x8xbf16>
    %c64 = arith.constant 64 : index
    %c0_58 = arith.constant 0 : index
    %58 = vector.load %arg4[%c64, %c0_58] : memref<72x8xbf16, #tpu.memory_space<vmem>>, vector<8x8xbf16>
    %cst_59 = arith.constant dense<0.000000e+00> : vector<256x8xf32>
    %59 = tpu.matmul %57, %58, %cst_59 {dimension_numbers = #tpu.dot_dimension_numbers<[1], [0], [0], [1], [0, 0, 1, 1], [], []>} : vector<256x8xbf16>, vector<8x8xbf16>, vector<256x8xf32> -> vector<256x8xf32>
    %60 = arith.addf %55, %59 : vector<256x8xf32>
    %c0_60 = arith.constant 0 : index
    %c0_61 = arith.constant 0 : index
    %61 = vector.load %arg5[%c0_60, %c0_61] : memref<1x8xf32, #tpu.memory_space<vmem>>, vector<1x8xf32>
    %62 = vector.broadcast %61 : vector<1x8xf32> to vector<256x8xf32>
    %63 = arith.addf %60, %62 : vector<256x8xf32>
    %cst_62 = arith.constant 0.000000e+00 : f32
    %64 = vector.broadcast %cst_62 : f32 to vector<256x8xf32>
    %65 = arith.maximumf %63, %64 : vector<256x8xf32>
    %66 = arith.truncf %65 : vector<256x8xf32> to vector<256x8xbf16>
    %c0_63 = arith.constant 0 : index
    %c0_64 = arith.constant 0 : index
    %67 = vector.load %arg6[%c0_63, %c0_64] : memref<8x16xbf16, #tpu.memory_space<vmem>>, vector<8x16xbf16>
    %cst_65 = arith.constant dense<0.000000e+00> : vector<256x16xf32>
    %68 = tpu.matmul %66, %67, %cst_65 {dimension_numbers = #tpu.dot_dimension_numbers<[1], [0], [0], [1], [0, 0, 1, 1], [], []>} : vector<256x8xbf16>, vector<8x16xbf16>, vector<256x16xf32> -> vector<256x16xf32>
    %c0_66 = arith.constant 0 : index
    %c0_67 = arith.constant 0 : index
    %69 = vector.load %arg7[%c0_66, %c0_67] : memref<4x16xbf16, #tpu.memory_space<vmem>>, vector<4x16xbf16>
    %cst_68 = arith.constant dense<0.000000e+00> : vector<256x16xf32>
    %70 = tpu.matmul %2, %69, %cst_68 {dimension_numbers = #tpu.dot_dimension_numbers<[1], [0], [0], [1], [0, 0, 1, 1], [], []>} : vector<256x4xbf16>, vector<4x16xbf16>, vector<256x16xf32> -> vector<256x16xf32>
    %71 = arith.addf %68, %70 : vector<256x16xf32>
    %c0_69 = arith.constant 0 : index
    %c0_70 = arith.constant 0 : index
    %72 = vector.load %arg8[%c0_69, %c0_70] : memref<1x16xf32, #tpu.memory_space<vmem>>, vector<1x16xf32>
    %73 = vector.broadcast %72 : vector<1x16xf32> to vector<256x16xf32>
    %74 = arith.addf %71, %73 : vector<256x16xf32>
    %cst_71 = arith.constant 0.000000e+00 : f32
    %75 = vector.broadcast %cst_71 : f32 to vector<256x16xf32>
    %76 = arith.maximumf %74, %75 : vector<256x16xf32>
    %77 = vector.shape_cast %76 : vector<256x16xf32> to vector<16x16x16xf32>
    %c0_72 = arith.constant 0 : index
    %c0_73 = arith.constant 0 : index
    %c0_74 = arith.constant 0 : index
    %c0_75 = arith.constant 0 : index
    %78 = vector.load %arg9[%c0_72, %c0_73, %c0_74, %c0_75] : memref<1x16x16x16xf32, #tpu.memory_space<vmem>>, vector<1x16x16x16xf32>
    %79 = vector.shape_cast %78 : vector<1x16x16x16xf32> to vector<16x16x16xf32>
    %80 = vector.shape_cast %77 : vector<16x16x16xf32> to vector<1x16x16x16xf32>
    tpu.vector_store %arg9[%c0_72, %c0_73, %c0_74, %c0_75], %80 {strides = array<i32>} : memref<1x16x16x16xf32, #tpu.memory_space<vmem>>, vector<1x16x16x16xf32>,
    return
  }
  func.func @transform_0(%arg0: i32) -> (i32, i32, i32, i32) {
    %c0_i32 = arith.constant 0 : i32
    %c0_i32_0 = arith.constant 0 : i32
    %c0_i32_1 = arith.constant 0 : i32
    %c0_i32_2 = arith.constant 0 : i32
    return %arg0, %c0_i32, %c0_i32_0, %c0_i32_1 : i32, i32, i32, i32
  }
  func.func @transform_1(%arg0: i32) -> (i32, i32) {
    %c0_i32 = arith.constant 0 : i32
    %c0_i32_0 = arith.constant 0 : i32
    %c0_i32_1 = arith.constant 0 : i32
    return %c0_i32, %c0_i32_0 : i32, i32
  }
  func.func @transform_2(%arg0: i32) -> (i32, i32) {
    %c0_i32 = arith.constant 0 : i32
    %c0_i32_0 = arith.constant 0 : i32
    %c0_i32_1 = arith.constant 0 : i32
    return %c0_i32, %c0_i32_0 : i32, i32
  }
  func.func @transform_3(%arg0: i32) -> (i32, i32) {
    %c0_i32 = arith.constant 0 : i32
    %c0_i32_0 = arith.constant 0 : i32
    %c0_i32_1 = arith.constant 0 : i32
    return %c0_i32, %c0_i32_0 : i32, i32
  }
  func.func @transform_4(%arg0: i32) -> (i32, i32) {
    %c0_i32 = arith.constant 0 : i32
    %c0_i32_0 = arith.constant 0 : i32
    %c0_i32_1 = arith.constant 0 : i32
    return %c0_i32, %c0_i32_0 : i32, i32
  }
  func.func @transform_5(%arg0: i32) -> (i32, i32) {
    %c0_i32 = arith.constant 0 : i32
    %c0_i32_0 = arith.constant 0 : i32
    %c0_i32_1 = arith.constant 0 : i32
    return %c0_i32, %c0_i32_0 : i32, i32
  }
  func.func @transform_6(%arg0: i32) -> (i32, i32) {
    %c0_i32 = arith.constant 0 : i32
    %c0_i32_0 = arith.constant 0 : i32
    %c0_i32_1 = arith.constant 0 : i32
    return %c0_i32, %c0_i32_0 : i32, i32
  }
  func.func @transform_7(%arg0: i32) -> (i32, i32) {
    %c0_i32 = arith.constant 0 : i32
    %c0_i32_0 = arith.constant 0 : i32
    %c0_i32_1 = arith.constant 0 : i32
    return %c0_i32, %c0_i32_0 : i32, i32
  }
  func.func @transform_8(%arg0: i32) -> (i32, i32, i32, i32) {
    %c0_i32 = arith.constant 0 : i32
    %c0_i32_0 = arith.constant 0 : i32
    %c0_i32_1 = arith.constant 0 : i32
    %c0_i32_2 = arith.constant 0 : i32
    return %arg0, %c0_i32, %c0_i32_0, %c0_i32_1 : i32, i32, i32, i32
  }
}

</mosaic_0001>

<bundles_post_ra>
// kernel: bottleneck_forward.1
= control target key start
LH: loop header
LB: loop body
LE: loop exit
PB: predicated region body
PF: predicated region fallthrough
CT: control target
= control target key end

     0   :  { %s8009_s27 = smov 0   ;;  %s9906_s0 = inlined_call_operand.vmem [shape: bf16[2,16,16,4], index: 0, kind: input, shape index: {}]   ;;  %s9907_s1 = inlined_call_operand.vmem [shape: bf16[4,8], index: 1, kind: input, shape index: {}]   ;;  %s9908_s2 = inlined_call_operand.vmem [shape: f32[1,8], index: 2, kind: input, shape index: {}]   ;;  %s9909_s3 = inlined_call_operand.vmem [shape: bf16[72,8], index: 3, kind: input, shape index: {}]   ;;  %s9910_s4 = inlined_call_operand.vmem [shape: f32[1,8], index: 4, kind: input, shape index: {}]   ;;  %s9911_s5 = inlined_call_operand.vmem [shape: bf16[8,16], index: 5, kind: input, shape index: {}]   ;;  %s9912_s6 = inlined_call_operand.vmem [shape: bf16[4,16], index: 6, kind: input, shape index: {}]   ;;  %s9913_s7 = inlined_call_operand.vmem [shape: f32[1,16], index: 7, kind: input, shape index: {}]   ;;  %s9914_s8 = inlined_call_operand.vmem [shape: f32[2,16,16,16], index: 8, kind: output, shape index: {}]  }
   0x1 LB: > { %s6440_s28 = sadd.s32 4294967295, %s7961_s27   ;;  %p6444_p0 = scmp.ge.s32.totalorder %s7961_s27, 1  ;;  %s7961_s27 = sphi %s8009_s27, %s18_s27  }
   0x2   : > { %p262_p1 = scmp.lt.s32.totalorder %s7961_s27, 3 }
   0x4   : > { %p263_p2 = pnand %p6444_p0, %p262_p1 }
   0x6   : > { %266 = sbr.rel (%p263_p2) target bundleno = 1155 (0x483), region = 52 }
   0xd   : > { %v339_v0 = vld [vmem:[%s9907_s1] sm:$0x3]  ;;  %vm476_vm0 = vcmask 1041408   ;;  %p296_p3 = scmp.lt.s32.totalorder %s6440_s28, 1  ;;  %vm427_vm1 = vcmask 31744   ;;  %vm673_vm2 = vcmask 60416  }
   0xe   : > { %7820 = vmatprep.subr.msk.bf16.mxu0 %vm476_vm0, %v339_v0  ;;  %v478_v1 = vsel %vm476_vm0, %v339_v0, 0  ;;  %v7963_v18 = vmov 0   ;;  %vm676_vm3 = vcmask 57344   ;;  %vm1800_vm4 = vcmask 1043456   ;;  %v2745_v19 = vld [vmem:[%s9909_s3 + $0xc] sm:$0xf] }
   0xf   : > { %7125 = vmatpush3.bf16.msra.mxu0 %v478_v1  ;;  %s10005_s28 = smov (!%p296_p3, %s6440_s28), 1  ;;  %681 = vst.msk [vmem:[#allocation2 + $0x18] sm:$0xf] %vm673_vm2, %v7963_v18  ;;  %674 = vst.msk [vmem:[#allocation2] sm:$0xf] %vm673_vm2, %v7963_v18  ;;  %7824 = vmatprep.subr.msk.bf16.mxu1 %vm1800_vm4, %v2745_v19  ;;  %v2875_v20 = vsel %vm1800_vm4, %v2745_v19, 0 }
  0x10   : > { %s6886_s9 = sshll.u32 %s10005_s28, 7  ;;  %675 = vst.msk [vmem:[#allocation2 + $0x4] sm:$0xf] %vm673_vm2, %v7963_v18  ;;  %678 = vst.msk [vmem:[#allocation2 + $0xc] sm:$0xf] %vm673_vm2, %v7963_v18  ;;  %7261 = vmatpush3.bf16.msra.mxu1 %v2875_v20  ;;  %vm1751_vm8 = vcmask 64512  }
  0x11   : > { %s8028_s12 = scalar_lea.vmem %s9906_s0, %s6886_s9  ;;  %679 = vst.msk [vmem:[#allocation2 + $0x10] sm:$0xf] %vm673_vm2, %v7963_v18  ;;  %682 = vst.msk [vmem:[#allocation2 + $0x1c] sm:$0xf] %vm673_vm2, %v7963_v18  ;;  %v1702_v31 = vld [vmem:[%s9909_s3 + $0x4] sm:$0xf] }
  0x12   : > { %v7841_v2 = vld [vmem:[%s8028_s12] sm:$0xff]   ;;  %v7842_v3 = vld [vmem:[%s8028_s12 + $0x8] sm:$0xff]   ;;  %v7843_v4 = vld [vmem:[%s8028_s12 + $0x10] sm:$0xff]   ;;  %684 = vst.msk [vmem:[#allocation2 + $0x24] sm:$0xf] %vm673_vm2, %v7963_v18  ;;  %7821 = vmatprep.subr.msk.bf16.mxu0 %vm1800_vm4, %v1702_v31  ;;  %v1802_v33 = vsel %vm1800_vm4, %v1702_v31, 0 }
  0x13   : > { %7126 = vmatprep.mubr.msk.bf16.mxu0 %vm427_vm1, %v7841_v2  ;;  %v7844_v5 = vld [vmem:[%s8028_s12 + $0x18] sm:$0xff]   ;;  %v7845_v6 = vld [vmem:[%s8028_s12 + $0x20] sm:$0xff]   ;;  %v7846_v7 = vld [vmem:[%s8028_s12 + $0x28] sm:$0xff]   ;;  %685 = vst.msk [vmem:[#allocation2 + $0x28] sm:$0xf] %vm673_vm2, %v7963_v18  ;;  %vm2305_vm15 = vcmask 1042432  }
  0x14   : > { %7127 = vmatmul.mubr.msk.bf16.vlgmr.msra.gmra.mrb[0].mxu0 %vm427_vm1, %v7842_v3  ;;  %v7847_v8 = vld [vmem:[%s8028_s12 + $0x30] sm:$0xff]   ;;  %v7848_v9 = vld [vmem:[%s8028_s12 + $0x38] sm:$0xff]   ;;  %v7849_v10 = vld [vmem:[%s8028_s12 + $0x40] sm:$0xff]   ;;  %687 = vst.msk [vmem:[#allocation2 + $0x30] sm:$0xf] %vm673_vm2, %v7963_v18  ;;  %s6887_s29 = sshll.u32 %s10005_s28, 8 }
  0x15   : > { %7130 = vmatprep.mubr.msk.bf16.mxu0 %vm427_vm1, %v7843_v4  ;;  %v7850_v11 = vld [vmem:[%s8028_s12 + $0x48] sm:$0xff]   ;;  %v7851_v12 = vld [vmem:[%s8028_s12 + $0x50] sm:$0xff]   ;;  %v7852_v13 = vld [vmem:[%s8028_s12 + $0x58] sm:$0xff]   ;;  %688 = vst.msk [vmem:[#allocation2 + $0x34] sm:$0xf] %vm673_vm2, %v7963_v18  ;;  %7159 = vmatpush3.bf16.msra.mxu0 %v1802_v33  ;;  %s9806_s10 = scalar_lea.vmem %s9914_s8, %s6887_s29 }
  0x16   : > { %v7853_v14 = vld [vmem:[%s8028_s12 + $0x60] sm:$0xff]   ;;  %v7854_v15 = vld [vmem:[%s8028_s12 + $0x68] sm:$0xff]   ;;  %v7855_v16 = vld [vmem:[%s8028_s12 + $0x70] sm:$0xff]   ;;  %690 = vst.msk [vmem:[#allocation2 + $0x3c] sm:$0xf] %vm673_vm2, %v7963_v18 }
  0x17   : > { %v7856_v17 = vld [vmem:[%s8028_s12 + $0x78] sm:$0xff]   ;;  %691 = vst.msk [vmem:[#allocation2 + $0x40] sm:$0xf] %vm673_vm2, %v7963_v18  ;;  %693 = vst.msk [vmem:[#allocation2 + $0x48] sm:$0xf] %vm673_vm2, %v7963_v18 }
  0x18   : > { %694 = vst.msk [vmem:[#allocation2 + $0x4c] sm:$0xf] %vm673_vm2, %v7963_v18  ;;  %696 = vst.msk [vmem:[#allocation2 + $0x54] sm:$0xf] %vm673_vm2, %v7963_v18  ;;  %v1266_v21 = vld [vmem:[#allocation2] sm:$0xf] }
  0x19   : > { %697 = vst.msk [vmem:[#allocation2 + $0x58] sm:$0xf] %vm673_vm2, %v7963_v18  ;;  %699 = vst.msk [vmem:[#allocation2 + $0x60] sm:$0xf] %vm673_vm2, %v7963_v18  ;;  %v1267_v22 = vld [vmem:[#allocation2 + $0x4] sm:$0xf] }
  0x1a   : > { %700 = vst.msk [vmem:[#allocation2 + $0x64] sm:$0xf] %vm673_vm2, %v7963_v18  ;;  %702 = vst.msk [vmem:[#allocation2 + $0x6c] sm:$0xf] %vm673_vm2, %v7963_v18  ;;  %v1319_v23 = vshrl.u32 %v1266_v21, 16  ;;  %v1322_v24 = vshll.u32 %v1266_v21, 16 }
  0x1b   : > { %703 = vst.msk [vmem:[#allocation2 + $0x70] sm:$0xf] %vm673_vm2, %v7963_v18  ;;  %705 = vst.msk [vmem:[#allocation2 + $0x78] sm:$0xf] %vm673_vm2, %v7963_v18  ;;  %v1328_v25 = vshll.u32 %v1267_v22, 16  ;;  %v1332_v26 = vshrl.u32 %v1267_v22, 16 }
  0x1c   : > { %7131 = vmatmul.mubr.msk.bf16.gmra.mrb[4].mxu0 %vm427_vm1, %v7844_v5  ;;  %706 = vst.msk [vmem:[#allocation2 + $0x7c] sm:$0xf] %vm673_vm2, %v7963_v18  ;;  %708 = vst.msk [vmem:[#allocation2 + $0x84] sm:$0xf] %vm673_vm2, %v7963_v18  ;;  %v1321_v27 = vrot.slane %v1319_v23, 4  ;;  %v1324_v28 = vrot.slane %v1322_v24, 5 }
  0x1d   : > { %7134 = vmatprep.mubr.msk.bf16.mxu0 %vm427_vm1, %v7845_v6  ;;  %709 = vst.msk [vmem:[#allocation2 + $0x88] sm:$0xf] %vm673_vm2, %v7963_v18  ;;  %711 = vst.msk [vmem:[#allocation2 + $0x90] sm:$0xf] %vm673_vm2, %v7963_v18  ;;  %v1330_v29 = vrot.slane %v1328_v25, 5  ;;  %v1334_v30 = vrot.slane %v1332_v26, 4 }
  0x1e   : > { %712 = vst.msk [vmem:[#allocation2 + $0x94] sm:$0xf] %vm673_vm2, %v7963_v18  ;;  %714 = vst.msk [vmem:[#allocation2 + $0x9c] sm:$0xf] %vm673_vm2, %v7963_v18  ;;  %vm1315_vm5 = vsmask.f32 3328  ;;  %v1325_v34 = vor.u32 %v1324_v28, %v1321_v27 }
  0x1f   : > { %715 = vst.msk [vmem:[#allocation2 + $0xa0] sm:$0xf] %vm673_vm2, %v7963_v18  ;;  %717 = vst.msk [vmem:[#allocation2 + $0xa8] sm:$0xf] %vm673_vm2, %v7963_v18  ;;  %v1335_v35 = vor.u32 %v1334_v30, %v1330_v29  ;;  %vm1316_vm6 = vsmask.f32 7440 }
  0x20   : > { %718 = vst.msk [vmem:[#allocation2 + $0xac] sm:$0xf] %vm673_vm2, %v7963_v18  ;;  %720 = vst.msk [vmem:[#allocation2 + $0xb4] sm:$0xf] %vm673_vm2, %v7963_v18  ;;  %v1326_v37 = vrot.slane %v1325_v34, 4 }
  0x21   : > { %721 = vst.msk [vmem:[#allocation2 + $0xb8] sm:$0xf] %vm673_vm2, %v7963_v18  ;;  %723 = vst.msk [vmem:[#allocation2 + $0xc0] sm:$0xf] %vm673_vm2, %v7963_v18  ;;  %v1336_v38 = vrot.slane %v1335_v35, 4 }
  0x22   : > { %724 = vst.msk [vmem:[#allocation2 + $0xc4] sm:$0xf] %vm673_vm2, %v7963_v18  ;;  %726 = vst.msk [vmem:[#allocation2 + $0xcc] sm:$0xf] %vm673_vm2, %v7963_v18  ;;  %v8137_v44 = vld [vmem:[%s9909_s3 + $0x10] sm:$0xf] }
  0x23   : > { %727 = vst.msk [vmem:[#allocation2 + $0xd0] sm:$0xf] %vm673_vm2, %v7963_v18  ;;  %vm8126_vm7 = vmor %vm1315_vm5, %vm1316_vm6  ;;  %7825 = vmatprep.subr.msk.bf16.mxu1 %vm1800_vm4, %v8137_v44  ;;  %v8145_v45 = vld [vmem:[%s9908_s2] ss:$0 sm:$0xff]  ;;  %vm1150_vm9 = vsmask.f32 7938 }
  0x24   : > { %7135 = vmatmul.mubr.msk.bf16.gmra.mrb[8].mxu0 %vm427_vm1, %v7846_v7  ;;  %683 = vst.msk [vmem:[#allocation2 + $0x20] sm:$0x1] %vm676_vm3, %v7963_v18  ;;  %677 = vst.msk [vmem:[#allocation2 + $0x8] sm:$0x1] %vm676_vm3, %v7963_v18  ;;  %v1331_v41 = vsel %vm8126_vm7, %v1326_v37, %v1330_v29  ;;  %vm825_vm10 = vsmask.f32 256 }
  0x25   : > { %7138 = vmatprep.mubr.msk.bf16.mxu0 %vm427_vm1, %v7847_v8  ;;  %680 = vst.msk [vmem:[#allocation2 + $0x14] sm:$0x1] %vm676_vm3, %v7963_v18  ;;  %686 = vst.msk [vmem:[#allocation2 + $0x2c] sm:$0x1] %vm676_vm3, %v7963_v18  ;;  %vm826_vm11 = vsmask.f32 4368 }
  0x26   : > { %689 = vst.msk [vmem:[#allocation2 + $0x38] sm:$0x1] %vm676_vm3, %v7963_v18  ;;  %692 = vst.msk [vmem:[#allocation2 + $0x44] sm:$0x1] %vm676_vm3, %v7963_v18 }
  0x27   : > { %695 = vst.msk [vmem:[#allocation2 + $0x50] sm:$0x1] %vm676_vm3, %v7963_v18  ;;  %698 = vst.msk [vmem:[#allocation2 + $0x5c] sm:$0x1] %vm676_vm3, %v7963_v18 }
  0x28   : > { %701 = vst.msk [vmem:[#allocation2 + $0x68] sm:$0x1] %vm676_vm3, %v7963_v18  ;;  %704 = vst.msk [vmem:[#allocation2 + $0x74] sm:$0x1] %vm676_vm3, %v7963_v18 }
  0x29   : > { %707 = vst.msk [vmem:[#allocation2 + $0x80] sm:$0x1] %vm676_vm3, %v7963_v18  ;;  %710 = vst.msk [vmem:[#allocation2 + $0x8c] sm:$0x1] %vm676_vm3, %v7963_v18 }
  0x2a   : > { %713 = vst.msk [vmem:[#allocation2 + $0x98] sm:$0x1] %vm676_vm3, %v7963_v18  ;;  %716 = vst.msk [vmem:[#allocation2 + $0xa4] sm:$0x1] %vm676_vm3, %v7963_v18 }
  0x2b   : > { %719 = vst.msk [vmem:[#allocation2 + $0xb0] sm:$0x1] %vm676_vm3, %v7963_v18  ;;  %722 = vst.msk [vmem:[#allocation2 + $0xbc] sm:$0x1] %vm676_vm3, %v7963_v18  ;;  %v1299_v32 = vld [vmem:[#allocation2 + $0x8] sm:$0x1] }
  0x2c   : > { %7139 = vmatmul.mubr.msk.bf16.gmra.mrb[12].mxu0 %vm427_vm1, %v7848_v9  ;;  %725 = vst.msk [vmem:[#allocation2 + $0xc8] sm:$0x1] %vm676_vm3, %v7963_v18  ;;  %728 = vst.msk [vmem:[#allocation2 + $0xd4] sm:$0x1] %vm676_vm3, %v7963_v18  ;;  %v1338_v36 = vshll.u32 %v1299_v32, 16 }
  0x2d   : > { %7142 = vmatprep.mubr.msk.bf16.mxu0 %vm427_vm1, %v7849_v10  ;;  %vm8154_vm12 = vmand %vm673_vm2, %vm1150_vm9  ;;  %v1161_v9 = vld [vmem:[#allocation2 + $0x18] sm:$0xf]  ;;  %v1165_v25 = vld [vmem:[#allocation2 + $0x20] sm:$0x1] }
  0x2e   : > { %v1340_v40 = vrot.slane %v1338_v36, 5  ;;  %vm8161_vm13 = vmor %vm825_vm10, %vm826_vm11  ;;  %v1158_v31 = vld [vmem:[#allocation2 + $0x14] sm:$0x1] }
  0x2f   : > { %vm8167_vm14 = vmand %vm676_vm3, %vm825_vm10 }
  0x30   : > { %v1341_v42 = vsel %vm8126_vm7, %v1336_v38, %v1340_v40 }
  0x31   : > { %v6514_v43 = vcombine.low %v1331_v41, %v1341_v42 }
  0x34   : > { %7143 = vmatmul.mubr.msk.bf16.gmra.mrb[16].mxu0 %vm427_vm1, %v7850_v11 }
  0x35   : > { %7146 = vmatprep.mubr.msk.bf16.mxu0 %vm427_vm1, %v7851_v12 }
  0x3c   : > { %7147 = vmatmul.mubr.msk.bf16.gmra.mrb[20].mxu0 %vm427_vm1, %v7852_v13 }
  0x3d   : > { %7150 = vmatprep.mubr.msk.bf16.mxu0 %vm427_vm1, %v7853_v14 }
  0x44   : > { %7151 = vmatmul.mubr.msk.bf16.gmra.mrb[24].mxu0 %vm427_vm1, %v7854_v15 }
  0x45   : > { %7154 = vmatprep.mubr.msk.bf16.mxu0 %vm427_vm1, %v7855_v16 }
  0x4c   : > { %7155 = vmatmul.mubr.msk.bf16.gmra.mrb[28].mxu0 %vm427_vm1, %v7856_v17  ;;  %v1152_v17 = vld [vmem:[#allocation2 + $0xc] sm:$0xf] }
  0x4d   : > { %7160 = vmatprep.mubr.msk.bf16.mxu0 %vm1751_vm8, %v6514_v43 }
  0xe7   : > { %v7128_v46 = vpop.f32.mrb[0].mxu0 }
  0xe8   : > { %v523_v47 = vadd.f32 %v7128_v46, %v8145_v45  ;;  %v514_v48 = vpop.f32.mrb[1].mxu0 }
  0xe9   : > { %v515_v49 = vadd.f32 %v8145_v45, %v514_v48  ;;  %v7129_v50 = vpop.f32.mrb[2].mxu0 }
  0xea   : > { %v643_v51 = vmax.f32 %v523_v47, 0.0  ;;  %v526_v52 = vadd.f32 %v7129_v50, %v8145_v45  ;;  %v517_v53 = vpop.f32.mrb[3].mxu0 }
  0xeb   : > { %v641_v54 = vmax.f32 %v515_v49, 0.0  ;;  %v518_v55 = vadd.f32 %v8145_v45, %v517_v53  ;;  %v1175_v53 = vld [vmem:[#allocation2 + $0x30] sm:$0xf] }
  0xec   : > { %v6890_v56 = vpack.c.bf16 %v643_v51, %v643_v51  ;;  %v644_v57 = vmax.f32 %v526_v52, 0.0 }
  0xed   : > { %v6888_v58 = vpack.c.bf16 %v641_v54, %v641_v54  ;;  %v642_v59 = vmax.f32 %v518_v55, 0.0 }
  0xee   : > { %v846_v60 = vshrl.u32 %v6890_v56, 16  ;;  %v6891_v61 = vpack.c.bf16 %v644_v57, %v644_v57  ;;  %v849_v62 = vshll.u32 %v6890_v56, 16 }
  0xef   : > { %v829_v63 = vshrl.u32 %v6888_v58, 16  ;;  %v832_v0 = vshll.u32 %v6888_v58, 16  ;;  %v6889_v1 = vpack.c.bf16 %v642_v59, %v642_v59  ;;  %v7132_v2 = vpop.f32.mrb[4].mxu0  ;;  %v3600_v58 = vsel %vm1800_vm4, %v8137_v44, 0 }
  0xf0   : > { %v848_v3 = vrot.slane %v846_v60, 7  ;;  %v854_v4 = vshrl.u32 %v6891_v61, 16  ;;  %v857_v5 = vshll.u32 %v6891_v61, 16  ;;  %v539_v6 = vadd.f32 %v7132_v2, %v8145_v45  ;;  %v530_v7 = vpop.f32.mrb[5].mxu0  ;;  %v1168_v61 = vld [vmem:[#allocation2 + $0x24] sm:$0xf] }
  0xf1   : > { %v831_v10 = vrot.slane %v829_v63, 7  ;;  %v837_v11 = vshrl.u32 %v6889_v1, 16  ;;  %v840_v12 = vshll.u32 %v6889_v1, 16  ;;  %v531_v13 = vadd.f32 %v8145_v45, %v530_v7  ;;  %v7133_v14 = vpop.f32.mrb[6].mxu0 }
  0xf2   : > { %v851_v15 = vor.u32 %v849_v62, %v848_v3  ;;  %v852_v16 = vrot.slane %v848_v3, 4  ;;  %v856_v19 = vrot.slane %v854_v4, 7  ;;  %v647_v20 = vmax.f32 %v539_v6, 0.0  ;;  %v533_v21 = vpop.f32.mrb[7].mxu0 }
  0xf3   : > { %v834_v22 = vor.u32 %v832_v0, %v831_v10  ;;  %v835_v23 = vrot.slane %v831_v10, 4  ;;  %v839_v26 = vrot.slane %v837_v11, 7  ;;  %v645_v27 = vmax.f32 %v531_v13, 0.0 }
  0xf4   : > { %v1162_v28 = vsel %vm8154_vm12, %v851_v15, %v1161_v9  ;;  %v859_v29 = vor.u32 %v857_v5, %v856_v19  ;;  %v861_v30 = vrot.slane %v856_v19, 4  ;;  %v6894_v32 = vpack.c.bf16 %v647_v20, %v647_v20  ;;  %v1172_v19 = vld [vmem:[#allocation2 + $0x2c] sm:$0x1] }
  0xf5   : > { %1163 = vst [vmem:[#allocation2 + $0x18] sm:$0xf] %v1162_v28  ;;  %v1153_v33 = vsel %vm8154_vm12, %v834_v22, %v1152_v17  ;;  %v842_v34 = vor.u32 %v840_v12, %v839_v26  ;;  %v844_v35 = vrot.slane %v839_v26, 4  ;;  %v6892_v36 = vpack.c.bf16 %v645_v27, %v645_v27  ;;  %v1179_v17 = vld [vmem:[#allocation2 + $0x38] sm:$0x1] }
  0xf6   : > { %1154 = vst [vmem:[#allocation2 + $0xc] sm:$0xf] %v1153_v33  ;;  %v860_v37 = vsel %vm8161_vm13, %v852_v16, %v859_v29  ;;  %v1166_v38 = vsel %vm8167_vm14, %v861_v30, %v1165_v25  ;;  %v880_v40 = vshrl.u32 %v6894_v32, 16  ;;  %v883_v43 = vshll.u32 %v6894_v32, 16  ;;  %v1189_v29 = vld [vmem:[#allocation2 + $0x48] sm:$0xf] }
  0xf7   : > { %1164 = vst.msk [vmem:[#allocation2 + $0x1c] sm:$0xf] %vm673_vm2, %v860_v37  ;;  %1167 = vst [vmem:[#allocation2 + $0x20] sm:$0x1] %v1166_v38  ;;  %v843_v41 = vsel %vm8161_vm13, %v835_v23, %v842_v34  ;;  %v1159_v42 = vsel %vm8167_vm14, %v844_v35, %v1158_v31  ;;  %v863_v46 = vshrl.u32 %v6892_v36, 16  ;;  %v7136_v47 = vpop.f32.mrb[8].mxu0  ;;  %v542_v49 = vadd.f32 %v7133_v14, %v8145_v45 }
  0xf8   : > { %1155 = vst.msk [vmem:[#allocation2 + $0x10] sm:$0xf] %vm673_vm2, %v843_v41  ;;  %1160 = vst [vmem:[#allocation2 + $0x14] sm:$0x1] %v1159_v42  ;;  %v8185_v48 = vrot.slane %v880_v40, 7  ;;  %v534_v50 = vadd.f32 %v8145_v45, %v533_v21  ;;  %v555_v51 = vadd.f32 %v7136_v47, %v8145_v45  ;;  %v546_v52 = vpop.f32.mrb[9].mxu0 }
  0xf9   : > { %v8190_v54 = vrot.slane %v863_v46, 7  ;;  %v866_v55 = vshll.u32 %v6892_v36, 16  ;;  %v547_v56 = vadd.f32 %v8145_v45, %v546_v52  ;;  %v7137_v57 = vpop.f32.mrb[10].mxu0  ;;  %v648_v62 = vmax.f32 %v542_v49, 0.0  ;;  %v1182_v46 = vld [vmem:[#allocation2 + $0x3c] sm:$0xf] }
  0xfa   : > { %v885_v59 = vor.u32 %v883_v43, %v8185_v48  ;;  %v886_v60 = vrot.slane %v8185_v48, 4  ;;  %v646_v63 = vmax.f32 %v534_v50, 0.0  ;;  %v549_v0 = vpop.f32.mrb[11].mxu0  ;;  %v651_v3 = vmax.f32 %v555_v51, 0.0 }
  0xfb   : > { %v868_v1 = vor.u32 %v866_v55, %v8190_v54  ;;  %v869_v2 = vrot.slane %v8190_v54, 4  ;;  %v649_v4 = vmax.f32 %v547_v56, 0.0  ;;  %v6895_v6 = vpack.c.bf16 %v648_v62, %v648_v62 }
  0xfc   : > { %v1176_v5 = vsel %vm8154_vm12, %v885_v59, %v1175_v53  ;;  %v6893_v7 = vpack.c.bf16 %v646_v63, %v646_v63  ;;  %v558_v44 = vadd.f32 %v7137_v57, %v8145_v45  ;;  %v6898_v10 = vpack.c.bf16 %v651_v3, %v651_v3 }
  0xfd   : > { %1177 = vst [vmem:[#allocation2 + $0x30] sm:$0xf] %v1176_v5  ;;  %v1169_v9 = vsel %vm8154_vm12, %v868_v1, %v1168_v61  ;;  %v6896_v11 = vpack.c.bf16 %v649_v4, %v649_v4  ;;  %v550_v12 = vadd.f32 %v8145_v45, %v549_v0  ;;  %v888_v13 = vshrl.u32 %v6895_v6, 16  ;;  %v3971_v0 = vld [vmem:[%s9909_s3 + $0x14] sm:$0xf] }
  0xfe   : > { %1170 = vst [vmem:[#allocation2 + $0x24] sm:$0xf] %v1169_v9  ;;  %v891_v14 = vshll.u32 %v6895_v6, 16  ;;  %v871_v15 = vshrl.u32 %v6893_v7, 16  ;;  %v874_v16 = vshll.u32 %v6893_v7, 16  ;;  %v914_v20 = vshrl.u32 %v6898_v10, 16 }
  0xff   : > { %v917_v21 = vshll.u32 %v6898_v10, 16  ;;  %v897_v22 = vshrl.u32 %v6896_v11, 16  ;;  %v900_v23 = vshll.u32 %v6896_v11, 16  ;;  %v7140_v25 = vpop.f32.mrb[12].mxu0  ;;  %v7857_v26 = vld [vmem:[#allocation2 + $0xc] sm:$0xff]   ;;  %v890_v27 = vrot.slane %v888_v13, 7 }
 0x100   : > { %v873_v28 = vrot.slane %v871_v15, 7  ;;  %v652_v30 = vmax.f32 %v558_v44, 0.0  ;;  %v650_v31 = vmax.f32 %v550_v12, 0.0  ;;  %v562_v32 = vpop.f32.mrb[13].mxu0  ;;  %v7858_v33 = vld [vmem:[#allocation2 + $0x18] sm:$0xff]   ;;  %v8205_v34 = vrot.slane %v914_v20, 7  ;;  %7262 = vmatprep.mubr.msk.bf16.mxu1 %vm1751_vm8, %v7857_v26 }
 0x101   : > { %v8207_v35 = vrot.slane %v897_v22, 7  ;;  %v571_v36 = vadd.f32 %v7140_v25, %v8145_v45  ;;  %v563_v37 = vadd.f32 %v8145_v45, %v562_v32  ;;  %v7141_v38 = vpop.f32.mrb[14].mxu0  ;;  %v893_v40 = vor.u32 %v891_v14, %v890_v27  ;;  %7263 = vmatmul.mubr.msk.bf16.vlgmr.msra.gmra.mrb[0].mxu1 %vm1751_vm8, %v7858_v33  ;;  %v1193_v6 = vld [vmem:[#allocation2 + $0x50] sm:$0x1]  ;;  %v1186_v14 = vld [vmem:[#allocation2 + $0x44] sm:$0x1] }
 0x102   : > { %v895_v41 = vrot.slane %v890_v27, 4  ;;  %v876_v42 = vor.u32 %v874_v16, %v873_v28  ;;  %v878_v43 = vrot.slane %v873_v28, 4  ;;  %v565_v47 = vpop.f32.mrb[15].mxu0  ;;  %v919_v48 = vor.u32 %v917_v21, %v8205_v34  ;;  %7295 = vmatpush3.bf16.msra.mxu1 %v3600_v58 }
 0x103   : > { %v920_v49 = vrot.slane %v8205_v34, 4  ;;  %v902_v50 = vor.u32 %v900_v23, %v8207_v35  ;;  %v903_v51 = vrot.slane %v8207_v35, 4  ;;  %v894_v52 = vsel %vm8161_vm13, %v886_v60, %v893_v40  ;;  %7826 = vmatprep.subr.msk.bf16.mxu1 %vm1800_vm4, %v3971_v0 }
 0x104   : > { %v1180_v53 = vsel %vm8167_vm14, %v895_v41, %v1179_v17  ;;  %v877_v54 = vsel %vm8161_vm13, %v869_v2, %v876_v42  ;;  %v1173_v55 = vsel %vm8167_vm14, %v878_v43, %v1172_v19  ;;  %1178 = vst.msk [vmem:[#allocation2 + $0x34] sm:$0xf] %vm673_vm2, %v894_v52  ;;  %v1190_v56 = vsel %vm8154_vm12, %v919_v48, %v1189_v29  ;;  %v1203_v29 = vld [vmem:[#allocation2 + $0x60] sm:$0xf] }
 0x105   : > { %1181 = vst [vmem:[#allocation2 + $0x38] sm:$0x1] %v1180_v53  ;;  %1171 = vst.msk [vmem:[#allocation2 + $0x28] sm:$0xf] %vm673_vm2, %v877_v54  ;;  %v1183_v57 = vsel %vm8154_vm12, %v902_v50, %v1182_v46  ;;  %v6899_v58 = vpack.c.bf16 %v652_v30, %v652_v30  ;;  %v6897_v59 = vpack.c.bf16 %v650_v31, %v650_v31  ;;  %v655_v60 = vmax.f32 %v571_v36, 0.0 }
 0x106   : > { %1174 = vst [vmem:[#allocation2 + $0x2c] sm:$0x1] %v1173_v55  ;;  %1191 = vst [vmem:[#allocation2 + $0x48] sm:$0xf] %v1190_v56  ;;  %v653_v61 = vmax.f32 %v563_v37, 0.0  ;;  %v574_v62 = vadd.f32 %v7141_v38, %v8145_v45  ;;  %v566_v63 = vadd.f32 %v8145_v45, %v565_v47 }
 0x107   : > { %1184 = vst [vmem:[#allocation2 + $0x3c] sm:$0xf] %v1183_v57  ;;  %v922_v1 = vshrl.u32 %v6899_v58, 16  ;;  %v925_v2 = vshll.u32 %v6899_v58, 16  ;;  %v905_v3 = vshrl.u32 %v6897_v59, 16  ;;  %v908_v4 = vshll.u32 %v6897_v59, 16 }
 0x108   : > { %v7144_v5 = vpop.f32.mrb[16].mxu0  ;;  %v6902_v7 = vpack.c.bf16 %v655_v60, %v655_v60  ;;  %v6900_v44 = vpack.c.bf16 %v653_v61, %v653_v61  ;;  %v656_v9 = vmax.f32 %v574_v62, 0.0  ;;  %v654_v10 = vmax.f32 %v566_v63, 0.0  ;;  %v1196_v30 = vld [vmem:[#allocation2 + $0x54] sm:$0xf] }
 0x109   : > { %v578_v11 = vpop.f32.mrb[17].mxu0  ;;  %v924_v12 = vrot.slane %v922_v1, 7  ;;  %v907_v13 = vrot.slane %v905_v3, 7  ;;  %v587_v15 = vadd.f32 %v7144_v5, %v8145_v45  ;;  %v1298_v31 = vld [vmem:[%s9909_s3] sm:$0xf] }
 0x10a   : > { %v579_v16 = vadd.f32 %v8145_v45, %v578_v11  ;;  %v7145_v17 = vpop.f32.mrb[18].mxu0  ;;  %v948_v19 = vshrl.u32 %v6902_v7, 16  ;;  %v951_v20 = vshll.u32 %v6902_v7, 16  ;;  %v931_v21 = vshrl.u32 %v6900_v44, 16  ;;  %7822 = vmatprep.subr.msk.bf16.mxu0 %vm1800_vm4, %v1298_v31  ;;  %v1207_v61 = vld [vmem:[#allocation2 + $0x68] sm:$0x1] }
 0x10b   : > { %v934_v22 = vshll.u32 %v6900_v44, 16  ;;  %v581_v23 = vpop.f32.mrb[19].mxu0  ;;  %v927_v25 = vor.u32 %v925_v2, %v924_v12  ;;  %v929_v26 = vrot.slane %v924_v12, 4  ;;  %v910_v27 = vor.u32 %v908_v4, %v907_v13  ;;  %v7860_v42 = vld [vmem:[#allocation2 + $0x30] sm:$0xff]   ;;  %v1200_v2 = vld [vmem:[#allocation2 + $0x5c] sm:$0x1] }
 0x10c   : > { %v912_v28 = vrot.slane %v907_v13, 4  ;;  %v950_v32 = vrot.slane %v948_v19, 7  ;;  %v933_v33 = vrot.slane %v931_v21, 7  ;;  %v6903_v34 = vpack.c.bf16 %v656_v9, %v656_v9  ;;  %v7859_v36 = vld [vmem:[#allocation2 + $0x24] sm:$0xff]  }
 0x10d   : > { %v6901_v35 = vpack.c.bf16 %v654_v10, %v654_v10  ;;  %v928_v37 = vsel %vm8161_vm13, %v920_v49, %v927_v25  ;;  %v1194_v38 = vsel %vm8167_vm14, %v929_v26, %v1193_v6  ;;  %v911_v40 = vsel %vm8161_vm13, %v903_v51, %v910_v27  ;;  %7266 = vmatprep.mubr.msk.bf16.mxu1 %vm1751_vm8, %v7859_v36  ;;  %v1268_v49 = vld [vmem:[#allocation2 + $0xc] sm:$0xf]  ;;  %v1300_v25 = vld [vmem:[#allocation2 + $0x14] sm:$0x1] }
 0x10e   : > { %v1187_v41 = vsel %vm8167_vm14, %v912_v28, %v1186_v14  ;;  %1192 = vst.msk [vmem:[#allocation2 + $0x4c] sm:$0xf] %vm673_vm2, %v928_v37  ;;  %1195 = vst [vmem:[#allocation2 + $0x50] sm:$0x1] %v1194_v38  ;;  %v953_v43 = vor.u32 %v951_v20, %v950_v32  ;;  %v954_v46 = vrot.slane %v950_v32, 4  ;;  %v936_v47 = vor.u32 %v934_v22, %v933_v33 }
 0x10f   : > { %1185 = vst.msk [vmem:[#allocation2 + $0x40] sm:$0xf] %vm673_vm2, %v911_v40  ;;  %1188 = vst [vmem:[#allocation2 + $0x44] sm:$0x1] %v1187_v41  ;;  %v937_v48 = vrot.slane %v933_v33, 4  ;;  %v956_v50 = vshrl.u32 %v6903_v34, 16  ;;  %7267 = vmatmul.mubr.msk.bf16.gmra.mrb[4].mxu1 %vm1751_vm8, %v7860_v42  ;;  %v590_v63 = vadd.f32 %v7145_v17, %v8145_v45  ;;  %v582_v0 = vadd.f32 %v8145_v45, %v581_v23 }
 0x110   : > { %v959_v52 = vshll.u32 %v6903_v34, 16  ;;  %v939_v51 = vshrl.u32 %v6901_v35, 16  ;;  %v942_v53 = vshll.u32 %v6901_v35, 16  ;;  %v8255_v54 = vpop.f32.mrb[20].mxu0  ;;  %v1204_v55 = vsel %vm8154_vm12, %v953_v43, %v1203_v29  ;;  %v1217_v22 = vld [vmem:[#allocation2 + $0x78] sm:$0xf] }
 0x111   : > { %v1197_v56 = vsel %vm8154_vm12, %v936_v47, %v1196_v30  ;;  %v659_v57 = vmax.f32 %v587_v15, 0.0  ;;  %v657_v58 = vmax.f32 %v579_v16, 0.0  ;;  %v8261_v59 = vpop.f32.mrb[21].mxu0  ;;  %1205 = vst [vmem:[#allocation2 + $0x60] sm:$0xf] %v1204_v55  ;;  %v958_v60 = vrot.slane %v956_v50, 7 }
 0x112   : > { %1198 = vst [vmem:[#allocation2 + $0x54] sm:$0xf] %v1197_v56  ;;  %v941_v62 = vrot.slane %v939_v51, 7  ;;  %v8265_v1 = vpop.f32.mrb[22].mxu0  ;;  %v1343_v5 = vshrl.u32 %v1268_v49, 16  ;;  %v1346_v6 = vshll.u32 %v1268_v49, 16 }
 0x113   : > { %v6906_v3 = vpack.c.bf16 %v659_v57, %v659_v57  ;;  %v6904_v4 = vpack.c.bf16 %v657_v58, %v657_v58  ;;  %v8267_v7 = vpop.f32.mrb[23].mxu0  ;;  %v961_v44 = vor.u32 %v959_v52, %v958_v60  ;;  %v963_v9 = vrot.slane %v958_v60, 4  ;;  %v1269_v16 = vld [vmem:[#allocation2 + $0x10] sm:$0xf]  ;;  %v1210_v23 = vld [vmem:[#allocation2 + $0x6c] sm:$0xf] }
 0x114   : > { %v944_v10 = vor.u32 %v942_v53, %v941_v62  ;;  %v946_v11 = vrot.slane %v941_v62, 4  ;;  %v660_v29 = vmax.f32 %v590_v63, 0.0  ;;  %v658_v30 = vmax.f32 %v582_v0, 0.0  ;;  %v1270_v49 = vld [vmem:[#allocation2 + $0x18] sm:$0xf] }
 0x115   : > { %v982_v12 = vshrl.u32 %v6906_v3, 16  ;;  %v985_v13 = vshll.u32 %v6906_v3, 16  ;;  %v965_v14 = vshrl.u32 %v6904_v4, 16  ;;  %v968_v15 = vshll.u32 %v6904_v4, 16  ;;  %v7862_v31 = vld [vmem:[#allocation2 + $0x48] sm:$0xff]  }
 0x116   : > { %v962_v17 = vsel %vm8161_vm13, %v954_v46, %v961_v44  ;;  %v1208_v19 = vsel %vm8167_vm14, %v963_v9, %v1207_v61  ;;  %v945_v20 = vsel %vm8161_vm13, %v937_v48, %v944_v10  ;;  %v1201_v21 = vsel %vm8167_vm14, %v946_v11, %v1200_v2  ;;  %v7861_v26 = vld [vmem:[#allocation2 + $0x3c] sm:$0xff]   ;;  %v1214_v0 = vld [vmem:[#allocation2 + $0x74] sm:$0x1] }
 0x117   : > { %1206 = vst.msk [vmem:[#allocation2 + $0x64] sm:$0xf] %vm673_vm2, %v962_v17  ;;  %1209 = vst [vmem:[#allocation2 + $0x68] sm:$0x1] %v1208_v19  ;;  %v8279_v27 = vrot.slane %v982_v12, 7  ;;  %v8281_v28 = vrot.slane %v965_v14, 7  ;;  %7270 = vmatprep.mubr.msk.bf16.mxu1 %vm1751_vm8, %v7861_v26  ;;  %v6907_v43 = vpack.c.bf16 %v660_v29, %v660_v29  ;;  %v6905_v46 = vpack.c.bf16 %v658_v30, %v658_v30 }
 0x118   : > { %1199 = vst.msk [vmem:[#allocation2 + $0x58] sm:$0xf] %vm673_vm2, %v945_v20  ;;  %1202 = vst [vmem:[#allocation2 + $0x5c] sm:$0x1] %v1201_v21  ;;  %v1345_v32 = vrot.slane %v1343_v5, 4  ;;  %v1348_v33 = vrot.slane %v1346_v6, 5  ;;  %7271 = vmatmul.mubr.msk.bf16.gmra.mrb[8].mxu1 %vm1751_vm8, %v7862_v31 }
 0x119   : > { %v1352_v34 = vshll.u32 %v1269_v16, 16  ;;  %v1356_v35 = vshrl.u32 %v1269_v16, 16  ;;  %v8284_v36 = vpop.f32.mrb[24].mxu0  ;;  %v987_v37 = vor.u32 %v985_v13, %v8279_v27  ;;  %v988_v38 = vrot.slane %v8279_v27, 4  ;;  %v1271_v50 = vld [vmem:[#allocation2 + $0x1c] sm:$0xf] }
 0x11a   : > { %v970_v40 = vor.u32 %v968_v15, %v8281_v28  ;;  %v971_v41 = vrot.slane %v8281_v28, 4  ;;  %v8291_v42 = vpop.f32.mrb[25].mxu0  ;;  %v1349_v47 = vor.u32 %v1348_v33, %v1345_v32  ;;  %v1362_v56 = vshll.u32 %v1300_v25, 16  ;;  %v1221_v63 = vld [vmem:[#allocation2 + $0x80] sm:$0x1] }
 0x11b   : > { %v1354_v48 = vrot.slane %v1352_v34, 5  ;;  %v8293_v52 = vpop.f32.mrb[26].mxu0  ;;  %v1218_v51 = vsel %vm8154_vm12, %v987_v37, %v1217_v22  ;;  %v1358_v55 = vrot.slane %v1356_v35, 4  ;;  %v990_v58 = vshrl.u32 %v6907_v43, 16  ;;  %v1301_v21 = vld [vmem:[#allocation2 + $0x20] sm:$0x1] }
 0x11c   : > { %v1211_v53 = vsel %vm8154_vm12, %v970_v40, %v1210_v23  ;;  %v8299_v57 = vpop.f32.mrb[27].mxu0  ;;  %1219 = vst [vmem:[#allocation2 + $0x78] sm:$0xf] %v1218_v51  ;;  %v993_v60 = vshll.u32 %v6907_v43, 16  ;;  %v973_v61 = vshrl.u32 %v6905_v46, 16  ;;  %v976_v62 = vshll.u32 %v6905_v46, 16 }
 0x11d   : > { %1212 = vst [vmem:[#allocation2 + $0x6c] sm:$0xf] %v1211_v53  ;;  %v1350_v2 = vrot.slane %v1349_v47, 4  ;;  %v1359_v3 = vor.u32 %v1358_v55, %v1354_v48  ;;  %v1364_v4 = vrot.slane %v1362_v56, 5  ;;  %v1367_v5 = vshrl.u32 %v1270_v49, 16 }
 0x11e   : > { %v992_v6 = vrot.slane %v990_v58, 7  ;;  %v975_v44 = vrot.slane %v973_v61, 7  ;;  %v1370_v9 = vshll.u32 %v1270_v49, 16  ;;  %v1376_v10 = vshll.u32 %v1271_v50, 16  ;;  %v7864_v22 = vld [vmem:[#allocation2 + $0x60] sm:$0xff]  }
 0x11f   : > { %v1355_v11 = vsel %vm8126_vm7, %v1350_v2, %v1354_v48  ;;  %v1360_v12 = vrot.slane %v1359_v3, 4  ;;  %v1369_v13 = vrot.slane %v1367_v5, 4  ;;  %v1380_v14 = vshrl.u32 %v1271_v50, 16  ;;  %v7863_v15 = vld [vmem:[#allocation2 + $0x54] sm:$0xff]   ;;  %v8303_v23 = vpop.f32.mrb[28].mxu0 }
 0x120   : > { %v995_v16 = vor.u32 %v993_v60, %v992_v6  ;;  %v997_v17 = vrot.slane %v992_v6, 4  ;;  %v978_v19 = vor.u32 %v976_v62, %v975_v44  ;;  %v980_v20 = vrot.slane %v975_v44, 4  ;;  %7274 = vmatprep.mubr.msk.bf16.mxu1 %vm1751_vm8, %v7863_v15  ;;  %v8308_v29 = vpop.f32.mrb[29].mxu0  ;;  %v1272_v34 = vld [vmem:[#allocation2 + $0x24] sm:$0xf] }
 0x121   : > { %v1365_v25 = vsel %vm8126_vm7, %v1360_v12, %v1364_v4  ;;  %v1372_v26 = vrot.slane %v1370_v9, 5  ;;  %v1378_v27 = vrot.slane %v1376_v10, 5  ;;  %v1382_v28 = vrot.slane %v1380_v14, 4  ;;  %7275 = vmatmul.mubr.msk.bf16.gmra.mrb[12].mxu1 %vm1751_vm8, %v7864_v22  ;;  %v8319_v35 = vpop.f32.mrb[30].mxu0  ;;  %v1302_v5 = vld [vmem:[#allocation2 + $0x2c] sm:$0x1] }
 0x122   : > { %v996_v30 = vsel %vm8161_vm13, %v988_v38, %v995_v16  ;;  %v1222_v31 = vsel %vm8167_vm14, %v997_v17, %v1221_v63  ;;  %v979_v32 = vsel %vm8161_vm13, %v971_v41, %v978_v19  ;;  %v1215_v33 = vsel %vm8167_vm14, %v980_v20, %v1214_v0  ;;  %v8323_v46 = vpop.f32.mrb[31].mxu0  ;;  %v1231_v14 = vld [vmem:[#allocation2 + $0x90] sm:$0xf] }
 0x123   : > { %1220 = vst.msk [vmem:[#allocation2 + $0x7c] sm:$0xf] %vm673_vm2, %v996_v30  ;;  %1223 = vst [vmem:[#allocation2 + $0x80] sm:$0x1] %v1222_v31  ;;  %v6515_v37 = vcombine.low %v1355_v11, %v1365_v25  ;;  %v1373_v38 = vor.u32 %v1372_v26, %v1369_v13  ;;  %v1383_v40 = vor.u32 %v1382_v28, %v1378_v27  ;;  %v1386_v43 = vshll.u32 %v1301_v21, 16 }
 0x124   : > { %1213 = vst.msk [vmem:[#allocation2 + $0x70] sm:$0xf] %vm673_vm2, %v979_v32  ;;  %1216 = vst [vmem:[#allocation2 + $0x74] sm:$0x1] %v1215_v33  ;;  %v603_v41 = vadd.f32 %v8255_v54, %v8145_v45  ;;  %v595_v47 = vadd.f32 %v8145_v45, %v8261_v59  ;;  %v606_v48 = vadd.f32 %v8265_v1, %v8145_v45  ;;  %v1391_v55 = vshrl.u32 %v1272_v34, 16 }
 0x125   : > { %v598_v49 = vadd.f32 %v8145_v45, %v8267_v7  ;;  %7161 = vmatmul.mubr.msk.bf16.vlgmr.msra.gmra.mrb[32].mxu0 %vm1751_vm8, %v6515_v37  ;;  %v1374_v50 = vrot.slane %v1373_v38, 4  ;;  %v1384_v51 = vrot.slane %v1383_v40, 4  ;;  %v1388_v53 = vrot.slane %v1386_v43, 5  ;;  %v1273_v54 = vld [vmem:[#allocation2 + $0x28] sm:$0xf] }
 0x126   : > { %v663_v56 = vmax.f32 %v603_v41, 0.0  ;;  %v661_v58 = vmax.f32 %v595_v47, 0.0  ;;  %v664_v60 = vmax.f32 %v606_v48, 0.0  ;;  %v1393_v62 = vrot.slane %v1391_v55, 4  ;;  %v1224_v28 = vld [vmem:[#allocation2 + $0x84] sm:$0xf] }
 0x127   : > { %v662_v61 = vmax.f32 %v598_v49, 0.0  ;;  %v1379_v59 = vsel %vm8126_vm7, %v1374_v50, %v1378_v27  ;;  %v1389_v1 = vsel %vm8126_vm7, %v1384_v51, %v1388_v53  ;;  %v1394_v63 = vshll.u32 %v1272_v34, 16  ;;  %v1235_v43 = vld [vmem:[#allocation2 + $0x98] sm:$0x1]  ;;  %v1228_v41 = vld [vmem:[#allocation2 + $0x8c] sm:$0x1] }
 0x128   : > { %v6516_v7 = vcombine.low %v1379_v59, %v1389_v1  ;;  %v6910_v0 = vpack.c.bf16 %v663_v56, %v663_v56  ;;  %v6908_v2 = vpack.c.bf16 %v661_v58, %v661_v58  ;;  %v6911_v3 = vpack.c.bf16 %v664_v60, %v664_v60  ;;  %v1274_v51 = vld [vmem:[#allocation2 + $0x30] sm:$0xf]  ;;  %v1275_v60 = vld [vmem:[#allocation2 + $0x34] sm:$0xf] }
 0x129   : > { %v6909_v4 = vpack.c.bf16 %v662_v61, %v662_v61  ;;  %v1396_v6 = vrot.slane %v1394_v63, 5  ;;  %v1400_v44 = vshll.u32 %v1273_v54, 16  ;;  %v1404_v9 = vshrl.u32 %v1273_v54, 16  ;;  %v1303_v61 = vld [vmem:[#allocation2 + $0x38] sm:$0x1] }
 0x12a   : > { %7164 = vmatprep.mubr.msk.bf16.mxu0 %vm1751_vm8, %v6516_v7  ;;  %v1016_v10 = vshrl.u32 %v6910_v0, 16  ;;  %v1019_v11 = vshll.u32 %v6910_v0, 16  ;;  %v999_v12 = vshrl.u32 %v6908_v2, 16  ;;  %v1002_v13 = vshll.u32 %v6908_v2, 16  ;;  %v7866_v27 = vld [vmem:[#allocation2 + $0x78] sm:$0xff]  }
 0x12b   : > { %v1024_v15 = vshrl.u32 %v6911_v3, 16  ;;  %v1027_v16 = vshll.u32 %v6911_v3, 16  ;;  %v1007_v17 = vshrl.u32 %v6909_v4, 16  ;;  %v1010_v19 = vshll.u32 %v6909_v4, 16  ;;  %v7865_v20 = vld [vmem:[#allocation2 + $0x6c] sm:$0xff]  }
 0x12c   : > { %v1018_v21 = vrot.slane %v1016_v10, 7  ;;  %v1001_v22 = vrot.slane %v999_v12, 7  ;;  %v1397_v25 = vor.u32 %v1396_v6, %v1393_v62  ;;  %v1402_v26 = vrot.slane %v1400_v44, 5  ;;  %7278 = vmatprep.mubr.msk.bf16.mxu1 %vm1751_vm8, %v7865_v20  ;;  %v1276_v12 = vld [vmem:[#allocation2 + $0x3c] sm:$0xf] }
 0x12d   : > { %v1026_v30 = vrot.slane %v1024_v15, 7  ;;  %v1009_v31 = vrot.slane %v1007_v17, 7  ;;  %v1406_v32 = vrot.slane %v1404_v9, 4  ;;  %v1410_v33 = vshll.u32 %v1302_v5, 16  ;;  %7279 = vmatmul.mubr.msk.bf16.gmra.mrb[16].mxu1 %vm1751_vm8, %v7866_v27 }
 0x12e   : > { %v1021_v34 = vor.u32 %v1019_v11, %v1018_v21  ;;  %v1022_v37 = vrot.slane %v1018_v21, 4  ;;  %v1004_v38 = vor.u32 %v1002_v13, %v1001_v22  ;;  %v1005_v40 = vrot.slane %v1001_v22, 4 }
 0x12f   : > { %v1029_v47 = vor.u32 %v1027_v16, %v1026_v30  ;;  %v1031_v48 = vrot.slane %v1026_v30, 4  ;;  %v1012_v49 = vor.u32 %v1010_v19, %v1009_v31  ;;  %v1014_v50 = vrot.slane %v1009_v31, 4 }
 0x130   : > { %v1232_v53 = vsel %vm8154_vm12, %v1021_v34, %v1231_v14  ;;  %v1225_v55 = vsel %vm8154_vm12, %v1004_v38, %v1224_v28  ;;  %v1398_v56 = vrot.slane %v1397_v25, 4  ;;  %v1407_v58 = vor.u32 %v1406_v32, %v1402_v26 }
 0x131   : > { %1233 = vst [vmem:[#allocation2 + $0x90] sm:$0xf] %v1232_v53  ;;  %1226 = vst [vmem:[#allocation2 + $0x84] sm:$0xf] %v1225_v55  ;;  %v1030_v54 = vsel %vm8161_vm13, %v1022_v37, %v1029_v47  ;;  %v1236_v59 = vsel %vm8167_vm14, %v1031_v48, %v1235_v43  ;;  %v1013_v1 = vsel %vm8161_vm13, %v1005_v40, %v1012_v49  ;;  %v1412_v0 = vrot.slane %v1410_v33, 5 }
 0x132   : > { %v1229_v62 = vsel %vm8167_vm14, %v1014_v50, %v1228_v41  ;;  %1234 = vst.msk [vmem:[#allocation2 + $0x94] sm:$0xf] %vm673_vm2, %v1030_v54  ;;  %1237 = vst [vmem:[#allocation2 + $0x98] sm:$0x1] %v1236_v59  ;;  %v1403_v63 = vsel %vm8126_vm7, %v1398_v56, %v1402_v26  ;;  %v1408_v7 = vrot.slane %v1407_v58, 4  ;;  %v1415_v2 = vshrl.u32 %v1274_v51, 16 }
 0x133   : > { %1227 = vst.msk [vmem:[#allocation2 + $0x88] sm:$0xf] %vm673_vm2, %v1013_v1  ;;  %1230 = vst [vmem:[#allocation2 + $0x8c] sm:$0x1] %v1229_v62  ;;  %v1418_v3 = vshll.u32 %v1274_v51, 16  ;;  %v1424_v4 = vshll.u32 %v1275_v60, 16  ;;  %v619_v10 = vadd.f32 %v8284_v36, %v8145_v45  ;;  %v611_v11 = vadd.f32 %v8145_v45, %v8291_v42 }
 0x134   : > { %v1428_v5 = vshrl.u32 %v1275_v60, 16  ;;  %v1434_v6 = vshll.u32 %v1303_v61, 16  ;;  %v1413_v44 = vsel %vm8126_vm7, %v1408_v7, %v1412_v0  ;;  %v1417_v9 = vrot.slane %v1415_v2, 4  ;;  %v1238_v47 = vld [vmem:[#allocation2 + $0x9c] sm:$0xf] }
 0x135   : > { %v6517_v13 = vcombine.low %v1403_v63, %v1413_v44  ;;  %v1420_v14 = vrot.slane %v1418_v3, 5  ;;  %v1426_v15 = vrot.slane %v1424_v4, 5  ;;  %v667_v19 = vmax.f32 %v619_v10, 0.0  ;;  %v8372_v56 = vld [vmem:[#allocation2 + $0x40] sm:$0xf] }
 0x136   : > { %v1430_v16 = vrot.slane %v1428_v5, 4  ;;  %v1436_v17 = vrot.slane %v1434_v6, 5  ;;  %v665_v20 = vmax.f32 %v611_v11, 0.0  ;;  %v622_v21 = vadd.f32 %v8293_v52, %v8145_v45  ;;  %v1304_v1 = vld [vmem:[#allocation2 + $0x44] sm:$0x1] }
 0x137   : > { %7165 = vmatmul.mubr.msk.bf16.gmra.mrb[36].mxu0 %vm1751_vm8, %v6517_v13  ;;  %v1421_v22 = vor.u32 %v1420_v14, %v1417_v9  ;;  %v614_v36 = vadd.f32 %v8145_v45, %v8299_v57  ;;  %v1439_v26 = vshrl.u32 %v1276_v12, 16  ;;  %v6914_v42 = vpack.c.bf16 %v667_v19, %v667_v19  ;;  %v1245_v57 = vld [vmem:[#allocation2 + $0xa8] sm:$0xf]  ;;  %v1249_v9 = vld [vmem:[#allocation2 + $0xb0] sm:$0x1] }
 0x138   : > { %v1431_v25 = vor.u32 %v1430_v16, %v1426_v15  ;;  %v6912_v27 = vpack.c.bf16 %v665_v20, %v665_v20  ;;  %v668_v28 = vmax.f32 %v622_v21, 0.0  ;;  %v1442_v30 = vshll.u32 %v1276_v12, 16  ;;  %v1242_v10 = vld [vmem:[#allocation2 + $0xa4] sm:$0x1]  ;;  %v8385_v19 = vld [vmem:[#allocation2 + $0x4c] sm:$0xf] }
 0x139   : > { %v1422_v31 = vrot.slane %v1421_v22, 4  ;;  %v666_v33 = vmax.f32 %v614_v36, 0.0  ;;  %v1441_v34 = vrot.slane %v1439_v26, 4  ;;  %v1050_v37 = vshrl.u32 %v6914_v42, 16  ;;  %v7868_v50 = vld [vmem:[#allocation2 + $0x90] sm:$0xff]  }
 0x13a   : > { %v1432_v32 = vrot.slane %v1431_v25, 4  ;;  %v1053_v38 = vshll.u32 %v6914_v42, 16  ;;  %v1033_v40 = vshrl.u32 %v6912_v27, 16  ;;  %v1036_v52 = vshll.u32 %v6912_v27, 16  ;;  %v7867_v43 = vld [vmem:[#allocation2 + $0x84] sm:$0xff]  }
 0x13b   : > { %v1427_v41 = vsel %vm8126_vm7, %v1422_v31, %v1426_v15  ;;  %v6915_v48 = vpack.c.bf16 %v668_v28, %v668_v28  ;;  %v6913_v49 = vpack.c.bf16 %v666_v33, %v666_v33  ;;  %v1052_v53 = vrot.slane %v1050_v37, 7  ;;  %7282 = vmatprep.mubr.msk.bf16.mxu1 %vm1751_vm8, %v7867_v43  ;;  %v1305_v36 = vld [vmem:[#allocation2 + $0x50] sm:$0x1] }
 0x13c   : > { %v1437_v45 = vsel %vm8126_vm7, %v1432_v32, %v1436_v17  ;;  %v1035_v55 = vrot.slane %v1033_v40, 7  ;;  %v1444_v58 = vrot.slane %v1442_v30, 5  ;;  %7283 = vmatmul.mubr.msk.bf16.gmra.mrb[20].mxu1 %vm1751_vm8, %v7868_v50  ;;  %v1448_v5 = vshll.u32 %v8372_v56, 16  ;;  %v8383_v17 = vld [vmem:[#allocation2 + $0x48] sm:$0xf] }
 0x13d   : > { %v6518_v51 = vcombine.low %v1427_v41, %v1437_v45  ;;  %v1058_v60 = vshrl.u32 %v6915_v48, 16  ;;  %v1061_v61 = vshll.u32 %v6915_v48, 16  ;;  %v1041_v54 = vshrl.u32 %v6913_v49, 16  ;;  %v7898_v40 = vld [vmem:[%s9908_s2] ss:$0 sm:$0xff] }
 0x13e   : > { %v1044_v59 = vshll.u32 %v6913_v49, 16  ;;  %v1055_v62 = vor.u32 %v1053_v38, %v1052_v53  ;;  %v1056_v63 = vrot.slane %v1052_v53, 4  ;;  %v1038_v7 = vor.u32 %v1036_v52, %v1035_v55 }
 0x13f   : > { %7168 = vmatprep.mubr.msk.bf16.mxu0 %vm1751_vm8, %v6518_v51  ;;  %v1039_v0 = vrot.slane %v1035_v55, 4  ;;  %v1060_v2 = vrot.slane %v1058_v60, 7  ;;  %v1043_v3 = vrot.slane %v1041_v54, 7  ;;  %v1445_v4 = vor.u32 %v1444_v58, %v1441_v34 }
 0x140   : > { %v1246_v6 = vsel %vm8154_vm12, %v1055_v62, %v1245_v57  ;;  %v1239_v44 = vsel %vm8154_vm12, %v1038_v7, %v1238_v47  ;;  %v1452_v11 = vshrl.u32 %v8372_v56, 16  ;;  %v1458_v12 = vshll.u32 %v1304_v1, 16  ;;  %v8408_v47 = vld [vmem:[#allocation2 + $0x54] sm:$0xf] }
 0x141   : > { %1247 = vst [vmem:[#allocation2 + $0xa8] sm:$0xf] %v1246_v6  ;;  %1240 = vst [vmem:[#allocation2 + $0x9c] sm:$0xf] %v1239_v44  ;;  %v1063_v13 = vor.u32 %v1061_v61, %v1060_v2  ;;  %v1065_v14 = vrot.slane %v1060_v2, 4  ;;  %v1046_v15 = vor.u32 %v1044_v59, %v1043_v3  ;;  %v1048_v16 = vrot.slane %v1043_v3, 4 }
 0x142   : > { %v1446_v20 = vrot.slane %v1445_v4, 4  ;;  %v1450_v21 = vrot.slane %v1448_v5, 5  ;;  %v1454_v22 = vrot.slane %v1452_v11, 4  ;;  %v1460_v25 = vrot.slane %v1458_v12, 5 }
 0x143   : > { %v1064_v26 = vsel %vm8161_vm13, %v1056_v63, %v1063_v13  ;;  %v1250_v42 = vsel %vm8167_vm14, %v1065_v14, %v1249_v9  ;;  %v1047_v27 = vsel %vm8161_vm13, %v1039_v0, %v1046_v15  ;;  %v1243_v28 = vsel %vm8167_vm14, %v1048_v16, %v1242_v10  ;;  %v1259_v10 = vld [vmem:[#allocation2 + $0xc0] sm:$0xf] }
 0x144   : > { %1248 = vst.msk [vmem:[#allocation2 + $0xac] sm:$0xf] %vm673_vm2, %v1064_v26  ;;  %1251 = vst [vmem:[#allocation2 + $0xb0] sm:$0x1] %v1250_v42  ;;  %v1451_v30 = vsel %vm8126_vm7, %v1446_v20, %v1450_v21  ;;  %v1455_v31 = vor.u32 %v1454_v22, %v1450_v21  ;;  %v1463_v32 = vshrl.u32 %v8383_v17, 16  ;;  %v1466_v33 = vshll.u32 %v8383_v17, 16 }
 0x145   : > { %1241 = vst.msk [vmem:[#allocation2 + $0xa0] sm:$0xf] %vm673_vm2, %v1047_v27  ;;  %1244 = vst [vmem:[#allocation2 + $0xa4] sm:$0x1] %v1243_v28  ;;  %v1472_v34 = vshll.u32 %v8385_v19, 16  ;;  %v1476_v37 = vshrl.u32 %v8385_v19, 16  ;;  %v635_v52 = vadd.f32 %v7898_v40, %v8303_v23  ;;  %v627_v57 = vadd.f32 %v7898_v40, %v8308_v29 }
 0x146   : > { %v1482_v38 = vshll.u32 %v1305_v36, 16  ;;  %v1456_v43 = vrot.slane %v1455_v31, 4  ;;  %v1465_v41 = vrot.slane %v1463_v32, 4  ;;  %v1468_v45 = vrot.slane %v1466_v33, 5  ;;  %v8420_v21 = vld [vmem:[#allocation2 + $0x58] sm:$0xf] }
 0x147   : > { %v1474_v48 = vrot.slane %v1472_v34, 5  ;;  %v1478_v49 = vrot.slane %v1476_v37, 4  ;;  %v671_v51 = vmax.f32 %v635_v52, 0.0  ;;  %v669_v58 = vmax.f32 %v627_v57, 0.0  ;;  %v1252_v36 = vld [vmem:[#allocation2 + $0xb4] sm:$0xf] }
 0x148   : > { %v1484_v50 = vrot.slane %v1482_v38, 5  ;;  %v1461_v53 = vsel %vm8126_vm7, %v1456_v43, %v1460_v25  ;;  %v1469_v55 = vor.u32 %v1468_v45, %v1465_v41  ;;  %v638_v60 = vadd.f32 %v7898_v40, %v8319_v35  ;;  %v1263_v31 = vld [vmem:[#allocation2 + $0xc8] sm:$0x1]  ;;  %v1306_v37 = vld [vmem:[#allocation2 + $0x5c] sm:$0x1] }
 0x149   : > { %v6519_v61 = vcombine.low %v1451_v30, %v1461_v53  ;;  %v1479_v23 = vor.u32 %v1478_v49, %v1474_v48  ;;  %v6918_v54 = vpack.c.bf16 %v671_v51, %v671_v51  ;;  %v630_v59 = vadd.f32 %v7898_v40, %v8323_v46  ;;  %v1256_v45 = vld [vmem:[#allocation2 + $0xbc] sm:$0x1] }
 0x14a   : > { %v1470_v1 = vrot.slane %v1469_v55, 4  ;;  %v6916_v29 = vpack.c.bf16 %v669_v58, %v669_v58  ;;  %v672_v62 = vmax.f32 %v638_v60, 0.0  ;;  %v1487_v63 = vshrl.u32 %v8408_v47, 16  ;;  %v8434_v55 = vld [vmem:[#allocation2 + $0x64] sm:$0xf] }
 0x14b   : > { %7169 = vmatmul.mubr.msk.bf16.gmra.mrb[40].mxu0 %vm1751_vm8, %v6519_v61  ;;  %v1480_v7 = vrot.slane %v1479_v23, 4  ;;  %v1084_v0 = vshrl.u32 %v6918_v54, 16  ;;  %v1087_v2 = vshll.u32 %v6918_v54, 16  ;;  %v670_v3 = vmax.f32 %v630_v59, 0.0  ;;  %v7870_v13 = vld [vmem:[#allocation2 + $0xa8] sm:$0xff]  }
 0x14c   : > { %v1475_v4 = vsel %vm8126_vm7, %v1470_v1, %v1474_v48  ;;  %v1067_v35 = vshrl.u32 %v6916_v29, 16  ;;  %v1070_v5 = vshll.u32 %v6916_v29, 16  ;;  %v6919_v6 = vpack.c.bf16 %v672_v62, %v672_v62  ;;  %v7869_v44 = vld [vmem:[#allocation2 + $0x9c] sm:$0xff]   ;;  %v1307_v23 = vld [vmem:[#allocation2 + $0x68] sm:$0x1] }
 0x14d   : > { %v1485_v46 = vsel %vm8126_vm7, %v1480_v7, %v1484_v50  ;;  %v1086_v9 = vrot.slane %v1084_v0, 7  ;;  %v6917_v11 = vpack.c.bf16 %v670_v3, %v670_v3  ;;  %v1489_v12 = vrot.slane %v1487_v63, 4  ;;  %7286 = vmatprep.mubr.msk.bf16.mxu1 %vm1751_vm8, %v7869_v44  ;;  %v8432_v48 = vld [vmem:[#allocation2 + $0x60] sm:$0xf]  ;;  %v8446_v62 = vld [vmem:[#allocation2 + $0x6c] sm:$0xf] }
 0x14e   : > { %v6520_v14 = vcombine.low %v1475_v4, %v1485_v46  ;;  %v1069_v15 = vrot.slane %v1067_v35, 7  ;;  %v1092_v16 = vshrl.u32 %v6919_v6, 16  ;;  %v1095_v20 = vshll.u32 %v6919_v6, 16  ;;  %7287 = vmatmul.mubr.msk.bf16.gmra.mrb[24].mxu1 %vm1751_vm8, %v7870_v13  ;;  %v8452_v35 = vld [vmem:[#allocation2 + $0x70] sm:$0xf] }
 0x14f   : > { %v1089_v22 = vor.u32 %v1087_v2, %v1086_v9  ;;  %v1090_v25 = vrot.slane %v1086_v9, 4  ;;  %v1075_v26 = vshrl.u32 %v6917_v11, 16  ;;  %v1078_v42 = vshll.u32 %v6917_v11, 16  ;;  %v1308_v9 = vld [vmem:[#allocation2 + $0x74] sm:$0x1] }
 0x150   : > { %7172 = vmatprep.mubr.msk.bf16.mxu0 %vm1751_vm8, %v6520_v14  ;;  %v1072_v27 = vor.u32 %v1070_v5, %v1069_v15  ;;  %v1073_v28 = vrot.slane %v1069_v15, 4  ;;  %v1094_v30 = vrot.slane %v1092_v16, 7  ;;  %v1490_v32 = vshll.u32 %v8408_v47, 16  ;;  %v8454_v5 = vld [vmem:[#allocation2 + $0x78] sm:$0xf] }
 0x151   : > { %v1260_v33 = vsel %vm8154_vm12, %v1089_v22, %v1259_v10  ;;  %v1077_v34 = vrot.slane %v1075_v26, 7  ;;  %v1496_v38 = vshll.u32 %v8420_v21, 16  ;;  %v1500_v40 = vshrl.u32 %v8420_v21, 16 }
 0x152   : > { %1261 = vst [vmem:[#allocation2 + $0xc0] sm:$0xf] %v1260_v33  ;;  %v1253_v52 = vsel %vm8154_vm12, %v1072_v27, %v1252_v36  ;;  %v1097_v43 = vor.u32 %v1095_v20, %v1094_v30  ;;  %v1099_v41 = vrot.slane %v1094_v30, 4  ;;  %v1492_v57 = vrot.slane %v1490_v32, 5 }
 0x153   : > { %1254 = vst [vmem:[#allocation2 + $0xb4] sm:$0xf] %v1253_v52  ;;  %v1080_v49 = vor.u32 %v1078_v42, %v1077_v34  ;;  %v1082_v50 = vrot.slane %v1077_v34, 4  ;;  %v1498_v51 = vrot.slane %v1496_v38, 5  ;;  %v1502_v53 = vrot.slane %v1500_v40, 4 }
 0x154   : > { %v1098_v58 = vsel %vm8161_vm13, %v1090_v25, %v1097_v43  ;;  %v1264_v8 = vsel %vm8167_vm14, %v1099_v41, %v1263_v31  ;;  %v1493_v60 = vor.u32 %v1492_v57, %v1489_v12  ;;  %v1506_v61 = vshll.u32 %v1306_v37, 16  ;;  %v8463_v25 = vld [vmem:[#allocation2 + $0x7c] sm:$0xf] }
 0x155   : > { %1262 = vst.msk [vmem:[#allocation2 + $0xc4] sm:$0xf] %vm673_vm2, %v1098_v58  ;;  %1265 = vst [vmem:[#allocation2 + $0xc8] sm:$0x1] %v1264_v8  ;;  %v1081_v54 = vsel %vm8161_vm13, %v1073_v28, %v1080_v49  ;;  %v1257_v59 = vsel %vm8167_vm14, %v1082_v50, %v1256_v45  ;;  %v1503_v1 = vor.u32 %v1502_v53, %v1498_v51  ;;  %v1511_v29 = vshrl.u32 %v8432_v48, 16 }
 0x156   : > { %1255 = vst.msk [vmem:[#allocation2 + $0xb8] sm:$0xf] %vm673_vm2, %v1081_v54  ;;  %1258 = vst [vmem:[#allocation2 + $0xbc] sm:$0x1] %v1257_v59  ;;  %v1494_v63 = vrot.slane %v1493_v60, 4  ;;  %v1508_v7 = vrot.slane %v1506_v61, 5 }
 0x157   : > { %v1514_v0 = vshll.u32 %v8432_v48, 16  ;;  %v1520_v2 = vshll.u32 %v8434_v55, 16  ;;  %v1504_v3 = vrot.slane %v1503_v1, 4  ;;  %v1513_v18 = vrot.slane %v1511_v29, 4  ;;  %v1309_v28 = vld [vmem:[#allocation2 + $0x80] sm:$0x1] }
 0x158   : > { %v1524_v4 = vshrl.u32 %v8434_v55, 16  ;;  %v1530_v24 = vshll.u32 %v1307_v23, 16  ;;  %v1499_v6 = vsel %vm8126_vm7, %v1494_v63, %v1498_v51  ;;  %v1535_v10 = vshrl.u32 %v8446_v62, 16  ;;  %v8472_v49 = vld [vmem:[#allocation2 + $0x84] sm:$0xf] }
 0x159   : > { %v1516_v44 = vrot.slane %v1514_v0, 5  ;;  %v1522_v46 = vrot.slane %v1520_v2, 5  ;;  %v1509_v11 = vsel %vm8126_vm7, %v1504_v3, %v1508_v7  ;;  %v1538_v14 = vshll.u32 %v8446_v62, 16  ;;  %v8477_v60 = vld [vmem:[#allocation2 + $0x88] sm:$0xf] }
 0x15a   : > { %v1526_v12 = vrot.slane %v1524_v4, 4  ;;  %v1532_v13 = vrot.slane %v1530_v24, 5  ;;  %v6521_v15 = vcombine.low %v1499_v6, %v1509_v11  ;;  %v1537_v20 = vrot.slane %v1535_v10, 4  ;;  %v1310_v7 = vld [vmem:[#allocation2 + $0x8c] sm:$0x1] }
 0x15b   : > { %v1517_v16 = vor.u32 %v1516_v44, %v1513_v18  ;;  %v1544_v22 = vshll.u32 %v8452_v35, 16  ;;  %v1540_v26 = vrot.slane %v1538_v14, 5  ;;  %v1548_v42 = vshrl.u32 %v8452_v35, 16  ;;  %v8487_v24 = vld [vmem:[#allocation2 + $0x90] sm:$0xf] }
 0x15c   : > { %v1527_v36 = vor.u32 %v1526_v12, %v1522_v46  ;;  %v1554_v27 = vshll.u32 %v1308_v9, 16  ;;  %7173 = vmatmul.mubr.msk.bf16.gmra.mrb[44].mxu0 %vm1751_vm8, %v6521_v15  ;;  %v1559_v32 = vshrl.u32 %v8454_v5, 16  ;;  %v1562_v33 = vshll.u32 %v8454_v5, 16  ;;  %v7872_v50 = vld [vmem:[#allocation2 + $0xc0] sm:$0xff]   ;;  %v8492_v10 = vld [vmem:[#allocation2 + $0x94] sm:$0xf] }
 0x15d   : > { %v1518_v30 = vrot.slane %v1517_v16, 4  ;;  %v1546_v31 = vrot.slane %v1544_v22, 5  ;;  %v1541_v37 = vor.u32 %v1540_v26, %v1537_v20  ;;  %v1550_v38 = vrot.slane %v1548_v42, 4  ;;  %v7871_v52 = vld [vmem:[#allocation2 + $0xb4] sm:$0xff]  }
 0x15e   : > { %v1528_v34 = vrot.slane %v1527_v36, 4  ;;  %v1556_v40 = vrot.slane %v1554_v27, 5  ;;  %v1561_v41 = vrot.slane %v1559_v32, 4  ;;  %v1564_v45 = vrot.slane %v1562_v33, 5  ;;  %7290 = vmatprep.mubr.msk.bf16.mxu1 %vm1751_vm8, %v7871_v52  ;;  %v1311_v22 = vld [vmem:[#allocation2 + $0x98] sm:$0x1] }
 0x15f   : > { %v1523_v43 = vsel %vm8126_vm7, %v1518_v30, %v1522_v46  ;;  %v1568_v57 = vshll.u32 %v8463_v25, 16  ;;  %v1542_v53 = vrot.slane %v1541_v37, 4  ;;  %v1551_v58 = vor.u32 %v1550_v38, %v1546_v31  ;;  %7291 = vmatmul.mubr.msk.bf16.gmra.mrb[28].mxu1 %vm1751_vm8, %v7872_v50  ;;  %v8501_v30 = vld [vmem:[#allocation2 + $0x9c] sm:$0xf]  ;;  %v8505_v37 = vld [vmem:[#allocation2 + $0xa0] sm:$0xf] }
 0x160   : > { %v1533_v51 = vsel %vm8126_vm7, %v1528_v34, %v1532_v13  ;;  %v1572_v8 = vshrl.u32 %v8463_v25, 16  ;;  %v1565_v23 = vor.u32 %v1564_v45, %v1561_v41  ;;  %v1578_v59 = vshll.u32 %v1309_v28, 16  ;;  %v8507_v41 = vld [vmem:[#allocation2 + $0xa8] sm:$0xf] }
 0x161   : > { %v6522_v61 = vcombine.low %v1523_v43, %v1533_v51  ;;  %v1570_v54 = vrot.slane %v1568_v57, 5  ;;  %v1547_v1 = vsel %vm8126_vm7, %v1542_v53, %v1546_v31  ;;  %v1552_v29 = vrot.slane %v1551_v58, 4 }
 0x162   : > { %v1574_v63 = vrot.slane %v1572_v8, 4  ;;  %v1583_v0 = vshrl.u32 %v8472_v49, 16  ;;  %v1566_v2 = vrot.slane %v1565_v23, 4  ;;  %v1580_v3 = vrot.slane %v1578_v59, 5  ;;  %v1312_v8 = vld [vmem:[#allocation2 + $0xa4] sm:$0x1] }
 0x163   : > { %7176 = vmatprep.mubr.msk.bf16.mxu0 %vm1751_vm8, %v6522_v61  ;;  %v1586_v18 = vshll.u32 %v8472_v49, 16  ;;  %v1592_v4 = vshll.u32 %v8477_v60, 16  ;;  %v1557_v6 = vsel %vm8126_vm7, %v1552_v29, %v1556_v40  ;;  %v1596_v9 = vshrl.u32 %v8477_v60, 16 }
 0x164   : > { %v1575_v44 = vor.u32 %v1574_v63, %v1570_v54  ;;  %v1585_v46 = vrot.slane %v1583_v0, 4  ;;  %v6523_v11 = vcombine.low %v1547_v1, %v1557_v6  ;;  %v1571_v12 = vsel %vm8126_vm7, %v1566_v2, %v1570_v54  ;;  %v8517_v63 = vld [vmem:[#allocation2 + $0xac] sm:$0xf] }
 0x165   : > { %v1588_v13 = vrot.slane %v1586_v18, 5  ;;  %v1594_v14 = vrot.slane %v1592_v4, 5  ;;  %v1598_v16 = vrot.slane %v1596_v9, 4  ;;  %v1602_v20 = vshll.u32 %v1310_v7, 16  ;;  %v1313_v18 = vld [vmem:[#allocation2 + $0xb0] sm:$0x1] }
 0x166   : > { %v1576_v15 = vrot.slane %v1575_v44, 4  ;;  %v1607_v36 = vshrl.u32 %v8487_v24, 16  ;;  %7177 = vmatmul.mubr.msk.bf16.gmra.mrb[48].mxu0 %vm1751_vm8, %v6523_v11  ;;  %v1610_v42 = vshll.u32 %v8487_v24, 16  ;;  %v1616_v27 = vshll.u32 %v8492_v10, 16  ;;  %v3070_v4 = vld [vmem:[#allocation2 + $0xc] sm:$0xf] }
 0x167   : > { %v1589_v26 = vor.u32 %v1588_v13, %v1585_v46  ;;  %v1620_v28 = vshrl.u32 %v8492_v10, 16  ;;  %v1599_v32 = vor.u32 %v1598_v16, %v1594_v14  ;;  %v1604_v33 = vrot.slane %v1602_v20, 5 }
 0x168   : > { %v1581_v31 = vsel %vm8126_vm7, %v1576_v15, %v1580_v3  ;;  %v1609_v34 = vrot.slane %v1607_v36, 4  ;;  %v1612_v52 = vrot.slane %v1610_v42, 5  ;;  %v1618_v43 = vrot.slane %v1616_v27, 5  ;;  %v8528_v36 = vld [vmem:[#allocation2 + $0x10] sm:$0xf] }
 0x169   : > { %v6524_v38 = vcombine.low %v1571_v12, %v1581_v31  ;;  %v1590_v40 = vrot.slane %v1589_v26, 4  ;;  %v1600_v45 = vrot.slane %v1599_v32, 4  ;;  %v1622_v57 = vrot.slane %v1620_v28, 4  ;;  %v8530_v31 = vld [vmem:[#allocation2 + $0x14] sm:$0x1] }
 0x16a   : > { %v1626_v50 = vshll.u32 %v1311_v22, 16  ;;  %v1631_v51 = vshrl.u32 %v8501_v30, 16  ;;  %v1613_v58 = vor.u32 %v1612_v52, %v1609_v34  ;;  %v1634_v61 = vshll.u32 %v8501_v30, 16 }
 0x16b   : > { %7180 = vmatprep.mubr.msk.bf16.mxu0 %vm1751_vm8, %v6524_v38  ;;  %v1595_v53 = vsel %vm8126_vm7, %v1590_v40, %v1594_v14  ;;  %v1640_v23 = vshll.u32 %v8505_v37, 16  ;;  %v1605_v54 = vsel %vm8126_vm7, %v1600_v45, %v1604_v33  ;;  %v1623_v59 = vor.u32 %v1622_v57, %v1618_v43  ;;  %v8537_v57 = vld [vmem:[#allocation2 + $0xb4] sm:$0xf] }
 0x16c   : > { %v1628_v1 = vrot.slane %v1626_v50, 5  ;;  %v1633_v29 = vrot.slane %v1631_v51, 4  ;;  %v6525_v7 = vcombine.low %v1595_v53, %v1605_v54  ;;  %v1614_v0 = vrot.slane %v1613_v58, 4 }
 0x16d   : > { %v1636_v2 = vrot.slane %v1634_v61, 5  ;;  %v1642_v3 = vrot.slane %v1640_v23, 5  ;;  %v1624_v6 = vrot.slane %v1623_v59, 4  ;;  %v1644_v44 = vshrl.u32 %v8505_v37, 16 }
 0x16e   : > { %v1650_v46 = vshll.u32 %v1312_v8, 16  ;;  %v1655_v9 = vshrl.u32 %v8507_v41, 16  ;;  %7181 = vmatmul.mubr.msk.bf16.gmra.mrb[52].mxu0 %vm1751_vm8, %v6525_v7  ;;  %v1619_v11 = vsel %vm8126_vm7, %v1614_v0, %v1618_v43  ;;  %v1658_v13 = vshll.u32 %v8507_v41, 16  ;;  %v8539_v8 = vld [vmem:[#allocation2 + $0xb8] sm:$0xf] }
 0x16f   : > { %v1637_v12 = vor.u32 %v1636_v2, %v1633_v29  ;;  %v1664_v14 = vshll.u32 %v8517_v63, 16  ;;  %v1629_v15 = vsel %vm8126_vm7, %v1624_v6, %v1628_v1  ;;  %v1646_v16 = vrot.slane %v1644_v44, 4  ;;  %v1314_v1 = vld [vmem:[#allocation2 + $0xbc] sm:$0x1]  ;;  %v3073_v29 = vld [vmem:[#allocation2 + $0x18] sm:$0xf] }
 0x170   : > { %v1652_v20 = vrot.slane %v1650_v46, 5  ;;  %v1657_v22 = vrot.slane %v1655_v9, 4  ;;  %v6526_v26 = vcombine.low %v1619_v11, %v1629_v15  ;;  %v1660_v27 = vrot.slane %v1658_v13, 5  ;;  %v8549_v13 = vld [vmem:[#allocation2 + $0x1c] sm:$0xf] }
 0x171   : > { %v1638_v42 = vrot.slane %v1637_v12, 4  ;;  %v1666_v28 = vrot.slane %v1664_v14, 5  ;;  %v1647_v32 = vor.u32 %v1646_v16, %v1642_v3  ;;  %v1668_v33 = vshrl.u32 %v8517_v63, 16 }
 0x172   : > { %v1674_v34 = vshll.u32 %v1313_v18, 16  ;;  %v3119_v38 = vshrl.u32 %v3070_v4, 16  ;;  %7184 = vmatprep.mubr.msk.bf16.mxu0 %vm1751_vm8, %v6526_v26  ;;  %v1661_v52 = vor.u32 %v1660_v27, %v1657_v22  ;;  %v3122_v43 = vshll.u32 %v3070_v4, 16  ;;  %v8554_v22 = vld [vmem:[#allocation2 + $0x20] sm:$0x1] }
 0x173   : > { %v1643_v40 = vsel %vm8126_vm7, %v1638_v42, %v1642_v3  ;;  %v3128_v45 = vshll.u32 %v8528_v36, 16  ;;  %v1648_v50 = vrot.slane %v1647_v32, 4  ;;  %v1670_v51 = vrot.slane %v1668_v33, 4 }
 0x174   : > { %v1676_v53 = vrot.slane %v1674_v34, 5  ;;  %v3121_v58 = vrot.slane %v3119_v38, 4  ;;  %v1662_v61 = vrot.slane %v1661_v52, 4  ;;  %v3124_v23 = vrot.slane %v3122_v43, 5 }
 0x175   : > { %v3130_v54 = vrot.slane %v3128_v45, 5  ;;  %v3132_v59 = vshrl.u32 %v8528_v36, 16  ;;  %v1653_v7 = vsel %vm8126_vm7, %v1648_v50, %v1652_v20  ;;  %v1671_v0 = vor.u32 %v1670_v51, %v1666_v28  ;;  %v8560_v51 = vld [vmem:[#allocation2 + $0x28] sm:$0xf] }
 0x176   : > { %v3138_v2 = vshll.u32 %v8530_v31, 16  ;;  %v1679_v3 = vshrl.u32 %v8537_v57, 16  ;;  %v6527_v18 = vcombine.low %v1643_v40, %v1653_v7  ;;  %v1667_v4 = vsel %vm8126_vm7, %v1662_v61, %v1666_v28  ;;  %v3076_v40 = vld [vmem:[#allocation2 + $0x24] sm:$0xf] }
 0x177   : > { %v3125_v6 = vor.u32 %v3124_v23, %v3121_v58  ;;  %v3134_v44 = vrot.slane %v3132_v59, 4  ;;  %v1672_v46 = vrot.slane %v1671_v0, 4  ;;  %v1682_v12 = vshll.u32 %v8537_v57, 16 }
 0x178   : > { %v3140_v9 = vrot.slane %v3138_v2, 5  ;;  %v1681_v11 = vrot.slane %v1679_v3, 4  ;;  %7185 = vmatmul.mubr.msk.bf16.gmra.mrb[56].mxu0 %vm1751_vm8, %v6527_v18  ;;  %v1688_v16 = vshll.u32 %v8539_v8, 16  ;;  %v1692_v20 = vshrl.u32 %v8539_v8, 16 }
 0x179   : > { %v3126_v14 = vrot.slane %v3125_v6, 4  ;;  %v3135_v15 = vor.u32 %v3134_v44, %v3130_v54  ;;  %v1677_v26 = vsel %vm8126_vm7, %v1672_v46, %v1676_v53  ;;  %v1684_v42 = vrot.slane %v1682_v12, 5 }
 0x17a   : > { %v1698_v27 = vshll.u32 %v1314_v1, 16  ;;  %v3143_v28 = vshrl.u32 %v3073_v29, 16  ;;  %v6528_v32 = vcombine.low %v1667_v4, %v1677_v26  ;;  %v1690_v38 = vrot.slane %v1688_v16, 5  ;;  %v7899_v4 = vld [vmem:[%s9909_s3 + $0x14] sm:$0xf] }
 0x17b   : > { %v3131_v33 = vsel %vm8126_vm7, %v3126_v14, %v3130_v54  ;;  %v3136_v34 = vrot.slane %v3135_v15, 4  ;;  %v1685_v52 = vor.u32 %v1684_v42, %v1681_v11  ;;  %v1694_v43 = vrot.slane %v1692_v20, 4  ;;  %v8567_v54 = vld [vmem:[#allocation2 + $0x2c] sm:$0x1]  ;;  %v3079_v16 = vld [vmem:[#allocation2 + $0x30] sm:$0xf] }
 0x17c   : > { %v1700_v45 = vrot.slane %v1698_v27, 5  ;;  %v3145_v50 = vrot.slane %v3143_v28, 4  ;;  %7188 = vmatprep.mubr.msk.bf16.mxu0 %vm1751_vm8, %v6528_v32  ;;  %v3146_v58 = vshll.u32 %v3073_v29, 16  ;;  %v3152_v61 = vshll.u32 %v8549_v13, 16  ;;  %v8582_v28 = vld [vmem:[#allocation2 + $0x34] sm:$0xf] }
 0x17d   : > { %v3141_v53 = vsel %vm8126_vm7, %v3136_v34, %v3140_v9  ;;  %v3156_v23 = vshrl.u32 %v8549_v13, 16  ;;  %v1686_v1 = vrot.slane %v1685_v52, 4  ;;  %v1695_v7 = vor.u32 %v1694_v43, %v1690_v38  ;;  %v8584_v52 = vld [vmem:[#allocation2 + $0x38] sm:$0x1] }
 0x17e   : > { %v6658_v59 = vcombine.low %v3131_v33, %v3141_v53  ;;  %v3162_v0 = vshll.u32 %v8554_v22, 16  ;;  %v3148_v2 = vrot.slane %v3146_v58, 5  ;;  %v3154_v3 = vrot.slane %v3152_v61, 5  ;;  %v8593_v58 = vld [vmem:[%s9909_s3 + $0x8] sm:$0xf] }
 0x17f   : > { %v3158_v18 = vrot.slane %v3156_v23, 4  ;;  %v4069_v29 = vsel %vm1800_vm4, %v7899_v4, 0  ;;  %v1691_v6 = vsel %vm8126_vm7, %v1686_v1, %v1690_v38  ;;  %v1696_v44 = vrot.slane %v1695_v7, 4  ;;  %v7901_v1 = vld [vmem:[#allocation2] sm:$0xf] }
 0x180   : > { %7296 = vmatprep.mubr.msk.bf16.mxu1 %vm1751_vm8, %v6658_v59  ;;  %v3164_v46 = vrot.slane %v3162_v0, 5  ;;  %v3167_v9 = vshrl.u32 %v3076_v40, 16  ;;  %v3149_v11 = vor.u32 %v3148_v2, %v3145_v50  ;;  %v3170_v14 = vshll.u32 %v3076_v40, 16  ;;  %v8600_v7 = vld [vmem:[#allocation2 + $0x4] sm:$0xf] }
 0x181   : > { %v3159_v12 = vor.u32 %v3158_v18, %v3154_v3  ;;  %v3176_v15 = vshll.u32 %v8560_v51, 16  ;;  %v1701_v20 = vsel %vm8126_vm7, %v1696_v44, %v1700_v45  ;;  %v3180_v42 = vshrl.u32 %v8560_v51, 16  ;;  %v7900_v45 = vld [vmem:[%s9909_s3] sm:$0xf]  ;;  %v7903_v4 = vld [vmem:[#allocation2 + $0xc] sm:$0xf] }
 0x182   : > { %v3169_v26 = vrot.slane %v3167_v9, 4  ;;  %v3186_v27 = vshll.u32 %v8567_v54, 16  ;;  %v6529_v32 = vcombine.low %v1691_v6, %v1701_v20  ;;  %v3150_v33 = vrot.slane %v3149_v11, 4  ;;  %v8603_v6 = vld [vmem:[#allocation2 + $0x10] sm:$0xf] }
 0x183   : > { %v3160_v34 = vrot.slane %v3159_v12, 4  ;;  %v3172_v38 = vrot.slane %v3170_v14, 5  ;;  %v3178_v40 = vrot.slane %v3176_v15, 5  ;;  %v3182_v43 = vrot.slane %v3180_v42, 4  ;;  %v3082_v11 = vld [vmem:[#allocation2 + $0x3c] sm:$0xf] }
 0x184   : > { %v3188_v50 = vrot.slane %v3186_v27, 5  ;;  %v2094_v53 = vsel %vm1800_vm4, %v7900_v45, 0  ;;  %7189 = vmatmul.mubr.msk.bf16.gmra.mrb[60].mxu0 %vm1751_vm8, %v6529_v32  ;;  %v3155_v61 = vsel %vm8126_vm7, %v3150_v33, %v3154_v3  ;;  %v6546_v0 = vcombine.low %v7901_v1, %v8600_v7  ;;  %v8612_v15 = vld [vmem:[%s9909_s3 + $0x18] sm:$0xf]  ;;  %v8621_v33 = vld [vmem:[#allocation2 + $0x40] sm:$0xf] }
 0x185   : > { %v3165_v23 = vsel %vm8126_vm7, %v3160_v34, %v3164_v46  ;;  %v3173_v59 = vor.u32 %v3172_v38, %v3169_v26  ;;  %v3183_v18 = vor.u32 %v3182_v43, %v3178_v40  ;;  %7193 = vmatpush3.bf16.msra.mxu0 %v2094_v53  ;;  %v6547_v44 = vcombine.low %v7903_v4, %v8603_v6  ;;  %v7905_v27 = vld [vmem:[#allocation2 + $0x18] sm:$0xf]  ;;  %v8625_v53 = vld [vmem:[#allocation2 + $0x44] sm:$0x1] }
 0x186   : > { %v6659_v2 = vcombine.low %v3155_v61, %v3165_v23  ;;  %v3191_v9 = vshrl.u32 %v3079_v16, 16  ;;  %7194 = vmatprep.mubr.msk.bf16.mxu0 %vm1751_vm8, %v6546_v0  ;;  %v3194_v46 = vshll.u32 %v3079_v16, 16  ;;  %v3200_v12 = vshll.u32 %v8582_v28, 16  ;;  %7823 = vmatprep.subr.msk.bf16.mxu0 %vm1800_vm4, %v8593_v58  ;;  %v8618_v16 = vld [vmem:[#allocation2 + $0x1c] sm:$0xf]  ;;  %9943 = vst [vmem:[#allocation3_spill] sm:$0xff] %v8625_v53 }
 0x187   : > { %v3174_v3 = vrot.slane %v3173_v59, 4  ;;  %v3204_v14 = vshrl.u32 %v8582_v28, 16  ;;  %v3184_v20 = vrot.slane %v3183_v18, 4  ;;  %v3210_v42 = vshll.u32 %v8584_v52, 16 }
 0x188   : > { %7297 = vmatmul.mubr.msk.bf16.vlgmr.msra.gmra.mrb[0].mxu1 %vm1751_vm8, %v6659_v2  ;;  %v3193_v26 = vrot.slane %v3191_v9, 4  ;;  %v6548_v32 = vcombine.low %v7905_v27, %v8618_v16  ;;  %v3196_v38 = vrot.slane %v3194_v46, 5  ;;  %v3202_v43 = vrot.slane %v3200_v12, 5  ;;  %v8634_v12 = vld [vmem:[#allocation2 + $0x4c] sm:$0xf] }
 0x189   : > { %7329 = vmatpush3.bf16.msra.mxu1 %v4069_v29  ;;  %v3179_v34 = vsel %vm8126_vm7, %v3174_v3, %v3178_v40  ;;  %v3206_v45 = vrot.slane %v3204_v14, 4  ;;  %v3189_v61 = vsel %vm8126_vm7, %v3184_v20, %v3188_v50  ;;  %v3212_v23 = vrot.slane %v3210_v42, 5  ;;  %v3085_v40 = vld [vmem:[#allocation2 + $0x48] sm:$0xf]  ;;  %v7907_v20 = vld [vmem:[#allocation2 + $0x24] sm:$0xf] }
 0x18a   : > { %v3215_v59 = vshrl.u32 %v3082_v11, 16  ;;  %v3218_v1 = vshll.u32 %v3082_v11, 16  ;;  %7827 = vmatprep.subr.msk.bf16.mxu1 %vm1800_vm4, %v8612_v15  ;;  %v6660_v0 = vcombine.low %v3179_v34, %v3189_v61  ;;  %v3197_v2 = vor.u32 %v3196_v38, %v3193_v26  ;;  %v8638_v26 = vld [vmem:[#allocation2 + $0x28] sm:$0xf] }
 0x18b   : > { %v3207_v29 = vor.u32 %v3206_v45, %v3202_v43  ;;  %v3224_v18 = vshll.u32 %v8621_v33, 16  ;;  %v3228_v3 = vshrl.u32 %v8621_v33, 16  ;;  %v3234_v46 = vshll.u32 %v8625_v53, 16  ;;  %v8642_v45 = vld [vmem:[#allocation2 + $0x50] sm:$0x1] }
 0x18c   : > { %v3217_v4 = vrot.slane %v3215_v59, 4  ;;  %v3220_v9 = vrot.slane %v3218_v1, 5  ;;  %7300 = vmatprep.mubr.msk.bf16.mxu1 %vm1751_vm8, %v6660_v0  ;;  %7195 = vmatmul.mubr.msk.bf16.vlgmr.msra.gmra.mrb[32].mxu0 %vm1751_vm8, %v6547_v44  ;;  %v3198_v50 = vrot.slane %v3197_v2, 4  ;;  %v6549_v42 = vcombine.low %v7907_v20, %v8638_v26  ;;  %9944 = vst [vmem:[#allocation4_spill] sm:$0xff] %v8642_v45  ;;  %v3088_v2 = vld [vmem:[#allocation2 + $0x54] sm:$0xf] }
 0x18d   : > { %v3208_v11 = vrot.slane %v3207_v29, 4  ;;  %v3226_v14 = vrot.slane %v3224_v18, 5  ;;  %7198 = vmatprep.mubr.msk.bf16.mxu0 %vm1751_vm8, %v6548_v32  ;;  %v3230_v34 = vrot.slane %v3228_v3, 4  ;;  %v3236_v38 = vrot.slane %v3234_v46, 5  ;;  %v8651_v53 = vld [vmem:[#allocation2 + $0x58] sm:$0xf] }
 0x18e   : > { %v3221_v27 = vor.u32 %v3220_v9, %v3217_v4  ;;  %v3239_v61 = vshrl.u32 %v3085_v40, 16  ;;  %v3203_v59 = vsel %vm8126_vm7, %v3198_v50, %v3202_v43  ;;  %v3242_v1 = vshll.u32 %v3085_v40, 16  ;;  %9945 = vst [vmem:[#allocation5_spill] sm:$0xff] %v8651_v53  ;;  %v7909_v40 = vld [vmem:[#allocation2 + $0x30] sm:$0xf] }
 0x18f   : > { %v3213_v44 = vsel %vm8126_vm7, %v3208_v11, %v3212_v23  ;;  %v3248_v0 = vshll.u32 %v8634_v12, 16  ;;  %v3231_v20 = vor.u32 %v3230_v34, %v3226_v14  ;;  %v3252_v3 = vshrl.u32 %v8634_v12, 16  ;;  %v8656_v50 = vld [vmem:[#allocation2 + $0x34] sm:$0xf] }
 0x190   : > { %v6661_v29 = vcombine.low %v3203_v59, %v3213_v44  ;;  %v3222_v18 = vrot.slane %v3221_v27, 4  ;;  %v3241_v32 = vrot.slane %v3239_v61, 4  ;;  %v3244_v4 = vrot.slane %v3242_v1, 5  ;;  %9946 = vst [vmem:[#allocation6_spill] sm:$0xff] %v8656_v50  ;;  %v8659_v44 = vld [vmem:[#allocation2 + $0x5c] sm:$0x1] }
 0x191   : > { %v3250_v9 = vrot.slane %v3248_v0, 5  ;;  %v3258_v46 = vshll.u32 %v8642_v45, 16  ;;  %v3232_v23 = vrot.slane %v3231_v20, 4  ;;  %v6550_v11 = vcombine.low %v7909_v40, %v8656_v50  ;;  %9947 = vst [vmem:[#allocation7_spill] sm:$0xff] %v8659_v44 }
 0x192   : > { %7301 = vmatmul.mubr.msk.bf16.gmra.mrb[4].mxu1 %vm1751_vm8, %v6661_v29  ;;  %v3227_v43 = vsel %vm8126_vm7, %v3222_v18, %v3226_v14  ;;  %v3263_v27 = vshrl.u32 %v3088_v2, 16  ;;  %v3245_v34 = vor.u32 %v3244_v4, %v3241_v32  ;;  %v3254_v61 = vrot.slane %v3252_v3, 4  ;;  %v3091_v18 = vld [vmem:[#allocation2 + $0x60] sm:$0xf]  ;;  %v8666_v4 = vld [vmem:[#allocation2 + $0x64] sm:$0xf] }
 0x193   : > { %v3260_v59 = vrot.slane %v3258_v46, 5  ;;  %v3266_v1 = vshll.u32 %v3088_v2, 16  ;;  %v3237_v0 = vsel %vm8126_vm7, %v3232_v23, %v3236_v38  ;;  %v3272_v45 = vshll.u32 %v8651_v53, 16  ;;  %v7911_v46 = vld [vmem:[#allocation2 + $0x3c] sm:$0xf] }
 0x194   : > { %v3265_v29 = vrot.slane %v3263_v27, 4  ;;  %v3276_v14 = vshrl.u32 %v8651_v53, 16  ;;  %v6662_v20 = vcombine.low %v3227_v43, %v3237_v0  ;;  %7199 = vmatmul.mubr.msk.bf16.gmra.mrb[36].mxu0 %vm1751_vm8, %v6549_v42  ;;  %v3246_v40 = vrot.slane %v3245_v34, 4  ;;  %v8674_v0 = vld [vmem:[#allocation2 + $0x68] sm:$0x1] }
 0x195   : > { %v3255_v50 = vor.u32 %v3254_v61, %v3250_v9  ;;  %v3268_v32 = vrot.slane %v3266_v1, 5  ;;  %7202 = vmatprep.mubr.msk.bf16.mxu0 %vm1751_vm8, %v6550_v11  ;;  %v3274_v2 = vrot.slane %v3272_v45, 5  ;;  %v3282_v38 = vshll.u32 %v8659_v44, 16 }
 0x196   : > { %v3278_v3 = vrot.slane %v3276_v14, 4  ;;  %v6551_v23 = vcombine.low %v7911_v46, %v8372_v56  ;;  %7304 = vmatprep.mubr.msk.bf16.mxu1 %vm1751_vm8, %v6662_v20  ;;  %v3251_v43 = vsel %vm8126_vm7, %v3246_v40, %v3250_v9  ;;  %v3287_v34 = vshrl.u32 %v3091_v18, 16  ;;  %v3094_v46 = vld [vmem:[#allocation2 + $0x6c] sm:$0xf]  ;;  %v8680_v40 = vld [vmem:[#allocation2 + $0x70] sm:$0xf] }
 0x197   : > { %v3256_v42 = vrot.slane %v3255_v50, 4  ;;  %v3269_v27 = vor.u32 %v3268_v32, %v3265_v29  ;;  %v3284_v1 = vrot.slane %v3282_v38, 5  ;;  %v3290_v11 = vshll.u32 %v3091_v18, 16 }
 0x198   : > { %v3279_v61 = vor.u32 %v3278_v3, %v3274_v2  ;;  %v3296_v45 = vshll.u32 %v8666_v4, 16  ;;  %v3289_v56 = vrot.slane %v3287_v34, 4  ;;  %v3300_v20 = vshrl.u32 %v8666_v4, 16 }
 0x199   : > { %v3261_v14 = vsel %vm8126_vm7, %v3256_v42, %v3260_v59  ;;  %v3270_v44 = vrot.slane %v3269_v27, 4  ;;  %v3292_v50 = vrot.slane %v3290_v11, 5  ;;  %v3306_v3 = vshll.u32 %v8674_v0, 16  ;;  %v8690_v42 = vld [vmem:[#allocation2 + $0x74] sm:$0x1] }
 0x19a   : > { %v6663_v53 = vcombine.low %v3251_v43, %v3261_v14  ;;  %v3280_v9 = vrot.slane %v3279_v61, 4  ;;  %v3298_v29 = vrot.slane %v3296_v45, 5  ;;  %v3302_v18 = vrot.slane %v3300_v20, 4  ;;  %9948 = vst [vmem:[#allocation8_spill] sm:$0xff] %v8690_v42  ;;  %v3097_v45 = vld [vmem:[#allocation2 + $0x78] sm:$0xf] }
 0x19b   : > { %v3275_v32 = vsel %vm8126_vm7, %v3270_v44, %v3274_v2  ;;  %v6552_v59 = vcombine.low %v8383_v17, %v8385_v19  ;;  %v3293_v43 = vor.u32 %v3292_v50, %v3289_v56  ;;  %v3311_v27 = vshrl.u32 %v3094_v46, 16 }
 0x19c   : > { %7305 = vmatmul.mubr.msk.bf16.gmra.mrb[8].mxu1 %vm1751_vm8, %v6663_v53  ;;  %v3285_v38 = vsel %vm8126_vm7, %v3280_v9, %v3284_v1  ;;  %v3314_v34 = vshll.u32 %v3094_v46, 16  ;;  %7203 = vmatmul.mubr.msk.bf16.gmra.mrb[40].mxu0 %vm1751_vm8, %v6551_v23  ;;  %v3303_v44 = vor.u32 %v3302_v18, %v3298_v29  ;;  %v3308_v2 = vrot.slane %v3306_v3, 5  ;;  %v8696_v1 = vld [vmem:[#allocation2 + $0x7c] sm:$0xf]  ;;  %v8704_v18 = vld [vmem:[#allocation2 + $0x80] sm:$0x1] }
 0x19d   : > { %v6664_v61 = vcombine.low %v3275_v32, %v3285_v38  ;;  %v3320_v11 = vshll.u32 %v8680_v40, 16  ;;  %v3294_v14 = vrot.slane %v3293_v43, 4  ;;  %7206 = vmatprep.mubr.msk.bf16.mxu0 %vm1751_vm8, %v6552_v59  ;;  %v3313_v17 = vrot.slane %v3311_v27, 4 }
 0x19e   : > { %v3316_v19 = vrot.slane %v3314_v34, 5  ;;  %v3324_v53 = vshrl.u32 %v8680_v40, 16  ;;  %v3304_v56 = vrot.slane %v3303_v44, 4  ;;  %v3330_v23 = vshll.u32 %v8690_v42, 16  ;;  %v3100_v34 = vld [vmem:[#allocation2 + $0x84] sm:$0xf] }
 0x19f   : > { %7308 = vmatprep.mubr.msk.bf16.mxu1 %vm1751_vm8, %v6664_v61  ;;  %v3322_v20 = vrot.slane %v3320_v11, 5  ;;  %v6553_v46 = vcombine.low %v8408_v47, %v8420_v21  ;;  %v3299_v9 = vsel %vm8126_vm7, %v3294_v14, %v3298_v29  ;;  %v3335_v3 = vshrl.u32 %v3097_v45, 16 }
 0x1a0   : > { %v3317_v50 = vor.u32 %v3316_v19, %v3313_v17  ;;  %v3326_v32 = vrot.slane %v3324_v53, 4  ;;  %v3309_v59 = vsel %vm8126_vm7, %v3304_v56, %v3308_v2  ;;  %v3332_v38 = vrot.slane %v3330_v23, 5  ;;  %v8711_v17 = vld [vmem:[#allocation2 + $0x88] sm:$0xf] }
 0x1a1   : > { %v3338_v43 = vshll.u32 %v3097_v45, 16  ;;  %v3344_v27 = vshll.u32 %v8696_v1, 16  ;;  %v6665_v61 = vcombine.low %v3299_v9, %v3309_v59  ;;  %v3337_v47 = vrot.slane %v3335_v3, 4 }
 0x1a2   : > { %v3318_v44 = vrot.slane %v3317_v50, 4  ;;  %v3327_v11 = vor.u32 %v3326_v32, %v3322_v20  ;;  %v3348_v29 = vshrl.u32 %v8696_v1, 16  ;;  %v3354_v14 = vshll.u32 %v8704_v18, 16  ;;  %v8719_v50 = vld [vmem:[#allocation2 + $0x8c] sm:$0x1] }
 0x1a3   : > { %v3340_v21 = vrot.slane %v3338_v43, 5  ;;  %v3346_v42 = vrot.slane %v3344_v27, 5  ;;  %v6554_v19 = vcombine.low %v8432_v48, %v8434_v55  ;;  %v3359_v53 = vshrl.u32 %v3100_v34, 16  ;;  %v3103_v48 = vld [vmem:[#allocation2 + $0x90] sm:$0xf] }
 0x1a4   : > { %7309 = vmatmul.mubr.msk.bf16.gmra.mrb[12].mxu1 %vm1751_vm8, %v6665_v61  ;;  %v3323_v2 = vsel %vm8126_vm7, %v3318_v44, %v3322_v20  ;;  %v3328_v45 = vrot.slane %v3327_v11, 4  ;;  %7207 = vmatmul.mubr.msk.bf16.gmra.mrb[44].mxu0 %vm1751_vm8, %v6553_v46  ;;  %v3350_v23 = vrot.slane %v3348_v29, 4  ;;  %v3356_v9 = vrot.slane %v3354_v14, 5  ;;  %v8726_v44 = vld [vmem:[#allocation2 + $0x94] sm:$0xf] }
 0x1a5   : > { %v3341_v56 = vor.u32 %v3340_v21, %v3337_v47  ;;  %v3362_v32 = vshll.u32 %v3100_v34, 16  ;;  %7210 = vmatprep.mubr.msk.bf16.mxu0 %vm1751_vm8, %v6554_v19  ;;  %v3361_v59 = vrot.slane %v3359_v53, 4  ;;  %v3368_v20 = vshll.u32 %v8711_v17, 16  ;;  %v8734_v53 = vld [vmem:[#allocation2 + $0x98] sm:$0x1] }
 0x1a6   : > { %v3333_v3 = vsel %vm8126_vm7, %v3328_v45, %v3332_v38  ;;  %v3372_v43 = vshrl.u32 %v8711_v17, 16  ;;  %v3351_v46 = vor.u32 %v3350_v23, %v3346_v42  ;;  %v3378_v34 = vshll.u32 %v8719_v50, 16 }
 0x1a7   : > { %v6666_v55 = vcombine.low %v3323_v2, %v3333_v3  ;;  %v3342_v27 = vrot.slane %v3341_v56, 4  ;;  %v3364_v61 = vrot.slane %v3362_v32, 5  ;;  %v3370_v11 = vrot.slane %v3368_v20, 5  ;;  %v3106_v20 = vld [vmem:[#allocation2 + $0x9c] sm:$0xf] }
 0x1a8   : > { %v3374_v47 = vrot.slane %v3372_v43, 4  ;;  %v6555_v38 = vcombine.low %v8446_v62, %v8452_v35  ;;  %v3352_v29 = vrot.slane %v3351_v46, 4  ;;  %v3383_v2 = vshrl.u32 %v3103_v48, 16 }
 0x1a9   : > { %7312 = vmatprep.mubr.msk.bf16.mxu1 %vm1751_vm8, %v6666_v55  ;;  %v3347_v21 = vsel %vm8126_vm7, %v3342_v27, %v3346_v42  ;;  %v3365_v14 = vor.u32 %v3364_v61, %v3361_v59  ;;  %v3380_v19 = vrot.slane %v3378_v34, 5  ;;  %v3386_v56 = vshll.u32 %v3103_v48, 16  ;;  %v8740_v27 = vld [vmem:[#allocation2 + $0xa0] sm:$0xf] }
 0x1aa   : > { %v3375_v45 = vor.u32 %v3374_v47, %v3370_v11  ;;  %v3392_v23 = vshll.u32 %v8726_v44, 16  ;;  %v3357_v32 = vsel %vm8126_vm7, %v3352_v29, %v3356_v9  ;;  %v3385_v62 = vrot.slane %v3383_v2, 4 }
 0x1ab   : > { %v3366_v3 = vrot.slane %v3365_v14, 4  ;;  %v3396_v35 = vshrl.u32 %v8726_v44, 16  ;;  %v6667_v43 = vcombine.low %v3347_v21, %v3357_v32  ;;  %v3388_v55 = vrot.slane %v3386_v56, 5  ;;  %v8751_v21 = vld [vmem:[#allocation2 + $0xa4] sm:$0x1] }
 0x1ac   : > { %v3376_v42 = vrot.slane %v3375_v45, 4  ;;  %v3394_v59 = vrot.slane %v3392_v23, 5  ;;  %7211 = vmatmul.mubr.msk.bf16.gmra.mrb[48].mxu0 %vm1751_vm8, %v6555_v38  ;;  %v3402_v61 = vshll.u32 %v8734_v53, 16  ;;  %v6556_v9 = vcombine.low %v8454_v5, %v8463_v25  ;;  %v3109_v56 = vld [vmem:[#allocation2 + $0xa8] sm:$0xf] }
 0x1ad   : > { %v3371_v46 = vsel %vm8126_vm7, %v3366_v3, %v3370_v11  ;;  %v3398_v48 = vrot.slane %v3396_v35, 4  ;;  %7313 = vmatmul.mubr.msk.bf16.gmra.mrb[16].mxu1 %vm1751_vm8, %v6667_v43  ;;  %v3389_v34 = vor.u32 %v3388_v55, %v3385_v62  ;;  %v3407_v29 = vshrl.u32 %v3106_v20, 16  ;;  %v8756_v3 = vld [vmem:[#allocation2 + $0xac] sm:$0xf] }
 0x1ae   : > { %v3381_v47 = vsel %vm8126_vm7, %v3376_v42, %v3380_v19  ;;  %v3410_v14 = vshll.u32 %v3106_v20, 16  ;;  %v3404_v45 = vrot.slane %v3402_v61, 5  ;;  %7214 = vmatprep.mubr.msk.bf16.mxu0 %vm1751_vm8, %v6556_v9  ;;  %v3416_v38 = vshll.u32 %v8740_v27, 16 }
 0x1af   : > { %v6668_v2 = vcombine.low %v3371_v46, %v3381_v47  ;;  %v3399_v11 = vor.u32 %v3398_v48, %v3394_v59  ;;  %v3390_v23 = vrot.slane %v3389_v34, 4  ;;  %v3409_v5 = vrot.slane %v3407_v29, 4  ;;  %v8764_v46 = vld [vmem:[#allocation2 + $0xb0] sm:$0x1]  ;;  %v3112_v29 = vld [vmem:[#allocation2 + $0xb4] sm:$0xf] }
 0x1b0   : > { %v3412_v25 = vrot.slane %v3410_v14, 5  ;;  %v3420_v32 = vshrl.u32 %v8740_v27, 16  ;;  %v3418_v62 = vrot.slane %v3416_v38, 5  ;;  %v3426_v35 = vshll.u32 %v8751_v21, 16 }
 0x1b1   : > { %7316 = vmatprep.mubr.msk.bf16.mxu1 %vm1751_vm8, %v6668_v2  ;;  %v3400_v19 = vrot.slane %v3399_v11, 4  ;;  %v6557_v20 = vcombine.low %v8472_v49, %v8477_v60  ;;  %v3395_v43 = vsel %vm8126_vm7, %v3390_v23, %v3394_v59  ;;  %v3431_v48 = vshrl.u32 %v3109_v56, 16 }
 0x1b2   : > { %v3413_v42 = vor.u32 %v3412_v25, %v3409_v5  ;;  %v3422_v55 = vrot.slane %v3420_v32, 4  ;;  %v3428_v9 = vrot.slane %v3426_v35, 5  ;;  %v3434_v47 = vshll.u32 %v3109_v56, 16  ;;  %v8772_v5 = vld [vmem:[#allocation2 + $0xb8] sm:$0xf] }
 0x1b3   : > { %v3405_v61 = vsel %vm8126_vm7, %v3400_v19, %v3404_v45  ;;  %v3440_v34 = vshll.u32 %v8756_v3, 16  ;;  %v3433_v49 = vrot.slane %v3431_v48, 4  ;;  %v3444_v38 = vshrl.u32 %v8756_v3, 16 }
 0x1b4   : > { %v6669_v14 = vcombine.low %v3395_v43, %v3405_v61  ;;  %v3414_v2 = vrot.slane %v3413_v42, 4  ;;  %v3423_v11 = vor.u32 %v3422_v55, %v3418_v62  ;;  %7215 = vmatmul.mubr.msk.bf16.gmra.mrb[52].mxu0 %vm1751_vm8, %v6557_v20  ;;  %v3436_v60 = vrot.slane %v3434_v47, 5  ;;  %v8779_v43 = vld [vmem:[#allocation2 + $0xbc] sm:$0x1]  ;;  %v3115_v47 = vld [vmem:[#allocation2 + $0xc0] sm:$0xf] }
 0x1b5   : > { %v3442_v59 = vrot.slane %v3440_v34, 5  ;;  %v3450_v23 = vshll.u32 %v8764_v46, 16  ;;  %v6558_v25 = vcombine.low %v8487_v24, %v8492_v10  ;;  %v3455_v32 = vshrl.u32 %v3112_v29, 16 }
 0x1b6   : > { %7317 = vmatmul.mubr.msk.bf16.gmra.mrb[20].mxu1 %vm1751_vm8, %v6669_v14  ;;  %v3419_v45 = vsel %vm8126_vm7, %v3414_v2, %v3418_v62  ;;  %v3424_v56 = vrot.slane %v3423_v11, 4  ;;  %v3437_v19 = vor.u32 %v3436_v60, %v3433_v49  ;;  %v3446_v35 = vrot.slane %v3444_v38, 4  ;;  %v8786_v2 = vld [vmem:[#allocation2 + $0xc4] sm:$0xf] }
 0x1b7   : > { %v3452_v20 = vrot.slane %v3450_v23, 5  ;;  %v3458_v42 = vshll.u32 %v3112_v29, 16  ;;  %7218 = vmatprep.mubr.msk.bf16.mxu0 %vm1751_vm8, %v6558_v25  ;;  %v3457_v48 = vrot.slane %v3455_v32, 4  ;;  %v3464_v61 = vshll.u32 %v8772_v5, 16  ;;  %v8794_v32 = vld [vmem:[#allocation2 + $0xc8] sm:$0x1] }
 0x1b8   : > { %v3429_v55 = vsel %vm8126_vm7, %v3424_v56, %v3428_v9  ;;  %v3468_v62 = vshrl.u32 %v8772_v5, 16  ;;  %v3438_v24 = vrot.slane %v3437_v19, 4  ;;  %v3447_v10 = vor.u32 %v3446_v35, %v3442_v59 }
 0x1b9   : > { %v6670_v34 = vcombine.low %v3419_v45, %v3429_v55  ;;  %v3460_v14 = vrot.slane %v3458_v42, 5  ;;  %v3466_v11 = vrot.slane %v3464_v61, 5  ;;  %v3474_v29 = vshll.u32 %v8779_v43, 16 }
 0x1ba   : > { %v3470_v49 = vrot.slane %v3468_v62, 4  ;;  %v6559_v9 = vcombine.low %v8501_v30, %v8505_v37  ;;  %v3443_v60 = vsel %vm8126_vm7, %v3438_v24, %v3442_v59  ;;  %v3448_v38 = vrot.slane %v3447_v10, 4 }
 0x1bb   : > { %7320 = vmatprep.mubr.msk.bf16.mxu1 %vm1751_vm8, %v6670_v34  ;;  %v3461_v23 = vor.u32 %v3460_v14, %v3457_v48  ;;  %v3479_v45 = vshrl.u32 %v3115_v47, 16  ;;  %v3476_v25 = vrot.slane %v3474_v29, 5  ;;  %v3482_v19 = vshll.u32 %v3115_v47, 16 }
 0x1bc   : > { %v3471_v56 = vor.u32 %v3470_v49, %v3466_v11  ;;  %v3488_v35 = vshll.u32 %v8786_v2, 16  ;;  %v3453_v42 = vsel %vm8126_vm7, %v3448_v38, %v3452_v20  ;;  %7219 = vmatmul.mubr.msk.bf16.gmra.mrb[56].mxu0 %vm1751_vm8, %v6559_v9  ;;  %v3492_v37 = vshrl.u32 %v8786_v2, 16  ;;  %v3795_v49 = vld [vmem:[#allocation2 + $0xc] sm:$0xe] }
 0x1bd   : > { %v3462_v55 = vrot.slane %v3461_v23, 4  ;;  %v3481_v30 = vrot.slane %v3479_v45, 4  ;;  %v6671_v59 = vcombine.low %v3443_v60, %v3453_v42  ;;  %v3484_v48 = vrot.slane %v3482_v19, 5 }
 0x1be   : > { %v3472_v61 = vrot.slane %v3471_v56, 4  ;;  %v3490_v62 = vrot.slane %v3488_v35, 5  ;;  %v3494_v24 = vrot.slane %v3492_v37, 4  ;;  %v3498_v47 = vshll.u32 %v8794_v32, 16 }
 0x1bf   : > { %v3467_v34 = vsel %vm8126_vm7, %v3462_v55, %v3466_v11  ;;  %v6560_v10 = vcombine.low %v8507_v41, %v8517_v63  ;;  %7321 = vmatmul.mubr.msk.bf16.gmra.mrb[24].mxu1 %vm1751_vm8, %v6671_v59  ;;  %v3485_v14 = vor.u32 %v3484_v48, %v3481_v30  ;;  %vm2306_vm2 = vcmask 1046532   ;;  %v3796_v11 = vld [vmem:[#allocation2 + $0x18] sm:$0xe]  ;;  %v2257_v30 = vld [vmem:[#allocation2] sm:$0xe] }
 0x1c0   : > { %v3477_v20 = vsel %vm8126_vm7, %v3472_v61, %v3476_v25  ;;  %v3495_v9 = vor.u32 %v3494_v24, %v3490_v62  ;;  %v3500_v38 = vrot.slane %v3498_v47, 5  ;;  %vm8810_vm3 = vmor %vm2305_vm15, %vm2306_vm2  ;;  %v3861_v41 = vrot.slane %v8528_v36, 5  ;;  %v2258_v47 = vld [vmem:[#allocation2 + $0xc] sm:$0xe] }
 0x1c1   : > { %v6672_v29 = vcombine.low %v3467_v34, %v3477_v20  ;;  %7222 = vmatprep.mubr.msk.bf16.mxu0 %vm1751_vm8, %v6560_v10  ;;  %v3486_v60 = vrot.slane %v3485_v14, 4  ;;  %v6690_v45 = vrot.slane %v3795_v49, 9  ;;  %v6561_v56 = vcombine.low %v8537_v57, %v8539_v8  ;;  %v3797_v8 = vld [vmem:[#allocation2 + $0x24] sm:$0xe] }
 0x1c2   : > { %v3496_v63 = vrot.slane %v3495_v9, 4  ;;  %v3868_v25 = vrot.slane %v8549_v13, 5  ;;  %v3863_v19 = vrot.slane %v3861_v41, 4  ;;  %v3864_v35 = vrot.slane %v8530_v31, 5 }
 0x1c3   : > { %7324 = vmatprep.mubr.msk.bf16.mxu1 %vm1751_vm8, %v6672_v29  ;;  %v6691_v42 = vrot.slane %v3796_v11, 9  ;;  %v3871_v55 = vrot.slane %v8554_v22, 5  ;;  %v3491_v37 = vsel %vm8126_vm7, %v3486_v60, %v3490_v62  ;;  %v3862_v59 = vsel %vm8810_vm3, %v6690_v45, %v3861_v41  ;;  %v7912_v29 = vld [vmem:[#allocation2 + $0x8] sm:$0x1]  ;;  %v3798_v11 = vld [vmem:[#allocation2 + $0x30] sm:$0xe] }
 0x1c4   : > { %v3501_v36 = vsel %vm8126_vm7, %v3496_v63, %v3500_v38  ;;  %7223 = vmatmul.mubr.msk.bf16.gmra.mrb[60].mxu0 %vm1751_vm8, %v6561_v56  ;;  %v3870_v57 = vrot.slane %v3868_v25, 4  ;;  %v3865_v31 = vsel %vm8810_vm3, %v3863_v19, %v3864_v35  ;;  %v4427_v22 = vsel %vm1800_vm4, %v8612_v15, 0  ;;  %v7913_v56 = vld [vmem:[#allocation2 + $0x14] sm:$0x1]  ;;  %v2259_v19 = vld [vmem:[#allocation2 + $0x18] sm:$0xe] }
 0x1c5   : > { %v6673_v13 = vcombine.low %v3491_v37, %v3501_v36  ;;  %v3875_v61 = vrot.slane %v8560_v51, 5  ;;  %v6706_v48 = vcombine.low %v3862_v59, %v3865_v31  ;;  %v2518_v34 = vsel %vm1800_vm4, %v8593_v58, 0 }
 0x1c6   : > { %v3872_v62 = vsel %vm8810_vm3, %v3870_v57, %v3871_v55  ;;  %v6578_v24 = vrot.slane %v2257_v30, 9  ;;  %v3869_v10 = vsel %vm8810_vm3, %v6691_v42, %v3868_v25  ;;  %v6692_v20 = vrot.slane %v3797_v8, 9  ;;  %7227 = vmatpush3.bf16.msra.mxu0 %v2518_v34  ;;  %v2260_v34 = vld [vmem:[#allocation2 + $0x24] sm:$0xe] }
 0x1c7   : > { %7325 = vmatmul.mubr.msk.bf16.gmra.mrb[28].mxu1 %vm1751_vm8, %v6673_v13  ;;  %v3877_v14 = vrot.slane %v3875_v61, 4  ;;  %v2310_v15 = vrot.slane %v8600_v7, 5  ;;  %v6707_v51 = vcombine.low %v3869_v10, %v3872_v62  ;;  %v3878_v49 = vrot.slane %v8567_v54, 5  ;;  %v7914_v13 = vld [vmem:[#allocation2 + $0x20] sm:$0x1] }
 0x1c8   : > { %7330 = vmatprep.mubr.msk.bf16.mxu1 %vm1751_vm8, %v6706_v48  ;;  %v2313_v9 = vrot.slane %v7912_v29, 5  ;;  %v2317_v58 = vrot.slane %v8603_v6, 5  ;;  %v3876_v60 = vsel %vm8810_vm3, %v6692_v20, %v3875_v61  ;;  %v6579_v63 = vrot.slane %v2258_v47, 9  ;;  %v3799_v61 = vld [vmem:[#allocation2 + $0x3c] sm:$0xe] }
 0x1c9   : > { %v2311_v38 = vsel %vm8810_vm3, %v6578_v24, %v2310_v15  ;;  %v2312_v41 = vrot.slane %v2310_v15, 4  ;;  %v3879_v7 = vsel %vm8810_vm3, %v3877_v14, %v3878_v49  ;;  %v2320_v25 = vrot.slane %v7913_v56, 5  ;;  %v8866_v24 = vld [vmem:[%s9909_s3 + $0x1c] sm:$0xf]  ;;  %v3800_v29 = vld [vmem:[#allocation2 + $0x48] sm:$0xe] }
 0x1ca   : > { %v2319_v45 = vrot.slane %v2317_v58, 4  ;;  %v3882_v54 = vrot.slane %v8582_v28, 5  ;;  %v2318_v35 = vsel %vm8810_vm3, %v6579_v63, %v2317_v58  ;;  %v6693_v42 = vrot.slane %v3798_v11, 9  ;;  %v7915_v11 = vld [vmem:[#allocation2 + $0x2c] sm:$0x1] }
 0x1cb   : > { %v2314_v6 = vsel %vm8810_vm3, %v2312_v41, %v2313_v9  ;;  %v2324_v55 = vrot.slane %v8618_v16, 5  ;;  %v3885_v59 = vrot.slane %v8584_v52, 5  ;;  %v6580_v8 = vrot.slane %v2259_v19, 9  ;;  %v2261_v41 = vld [vmem:[#allocation2 + $0x30] sm:$0xe]  ;;  %v9953_v19 = vld [vmem:[#allocation4_spill] sm:$0xff] }
 0x1cc   : > { %v6594_v30 = vcombine.low %v2311_v38, %v2314_v6  ;;  %v2321_v37 = vsel %vm8810_vm3, %v2319_v45, %v2320_v25  ;;  %v3884_v36 = vrot.slane %v3882_v54, 4  ;;  %v2327_v31 = vrot.slane %v7914_v13, 5  ;;  %v2262_v13 = vld [vmem:[#allocation2 + $0x3c] sm:$0xe] }
 0x1cd   : > { %v6595_v57 = vcombine.low %v2318_v35, %v2321_v37  ;;  %v2326_v28 = vrot.slane %v2324_v55, 4  ;;  %v6708_v48 = vcombine.low %v3876_v60, %v3879_v7  ;;  %v3883_v62 = vsel %vm8810_vm3, %v6693_v42, %v3882_v54  ;;  %v9952_v7 = vld [vmem:[#allocation6_spill] sm:$0xff] }
 0x1ce   : > { %7228 = vmatprep.mubr.msk.bf16.mxu0 %vm1751_vm8, %v6594_v30  ;;  %v3889_v16 = vrot.slane %v8621_v33, 5  ;;  %v3886_v52 = vsel %vm8810_vm3, %v3884_v36, %v3885_v59  ;;  %v2325_v47 = vsel %vm8810_vm3, %v6580_v8, %v2324_v55  ;;  %v2331_v33 = vrot.slane %v8638_v26, 5  ;;  %v7916_v55 = vld [vmem:[#allocation2 + $0x38] sm:$0x1]  ;;  %v3801_v37 = vld [vmem:[#allocation2 + $0x54] sm:$0xe] }
 0x1cf   : > { %7331 = vmatmul.mubr.msk.bf16.vlgmr.msra.gmra.mrb[0].mxu1 %vm1751_vm8, %v6707_v51  ;;  %7229 = vmatmul.mubr.msk.bf16.vlgmr.msra.gmra.mrb[32].mxu0 %vm1751_vm8, %v6595_v57  ;;  %v2328_v10 = vsel %vm8810_vm3, %v2326_v28, %v2327_v31  ;;  %v6694_v14 = vrot.slane %v3799_v61, 9  ;;  %v9951_v51 = vld [vmem:[#allocation3_spill] sm:$0xff]  ;;  %v6581_v9 = vrot.slane %v2260_v34, 9  ;;  %v2334_v60 = vrot.slane %v7915_v11, 5  ;;  %v9954_v8 = vld [vmem:[#allocation5_spill] sm:$0xff] }
 0x1d0   : > { %7363 = vmatpush3.bf16.msra.mxu1 %v4427_v22  ;;  %7334 = vmatprep.mubr.msk.bf16.mxu1 %vm1751_vm8, %v6708_v48  ;;  %v6596_v20 = vcombine.low %v2325_v47, %v2328_v10  ;;  %v3891_v15 = vrot.slane %v3889_v16, 4  ;;  %v3892_v49 = vrot.slane %v9951_v51, 5  ;;  %v2333_v58 = vrot.slane %v2331_v33, 4  ;;  %v9955_v10 = vld [vmem:[#allocation7_spill] sm:$0xff]  ;;  %v7918_v51 = vld [vmem:[#allocation2 + $0x44] sm:$0x1] }
 0x1d1   : > { %v3896_v38 = vrot.slane %v8634_v12, 5  ;;  %7828 = vmatprep.subr.msk.bf16.mxu1 %vm1800_vm4, %v8866_v24  ;;  %v6709_v26 = vcombine.low %v3883_v62, %v3886_v52  ;;  %v3890_v22 = vsel %vm8810_vm3, %v6694_v14, %v3889_v16  ;;  %v2338_v45 = vrot.slane %v9952_v7, 5  ;;  %v7917_v62 = vld [vmem:[#allocation2 + $0x40] sm:$0xf] }
 0x1d2   : > { %7232 = vmatprep.mubr.msk.bf16.mxu0 %vm1751_vm8, %v6596_v20  ;;  %v3893_v63 = vsel %vm8810_vm3, %v3891_v15, %v3892_v49  ;;  %v2332_v56 = vsel %vm8810_vm3, %v6581_v9, %v2331_v33  ;;  %v2335_v12 = vsel %vm8810_vm3, %v2333_v58, %v2334_v60  ;;  %v6695_v25 = vrot.slane %v3800_v29, 9  ;;  %v3802_v20 = vld [vmem:[#allocation2 + $0x60] sm:$0xe]  ;;  %v2263_v9 = vld [vmem:[#allocation2 + $0x48] sm:$0xe] }
 0x1d3   : > { %v3898_v54 = vrot.slane %v3896_v38, 4  ;;  %v3899_v6 = vrot.slane %v9953_v19, 5  ;;  %v6582_v35 = vrot.slane %v2261_v41, 9  ;;  %v2340_v42 = vrot.slane %v2338_v45, 4 }
 0x1d4   : > { %v2341_v30 = vrot.slane %v7916_v55, 5  ;;  %v6710_v36 = vcombine.low %v3890_v22, %v3893_v63  ;;  %v6597_v59 = vcombine.low %v2332_v56, %v2335_v12  ;;  %v3897_v57 = vsel %vm8810_vm3, %v6695_v25, %v3896_v38  ;;  %v7919_v38 = vld [vmem:[#allocation2 + $0x4c] sm:$0xf]  ;;  %v7920_v12 = vld [vmem:[#allocation2 + $0x50] sm:$0x1] }
 0x1d5   : > { %v3903_v28 = vrot.slane %v9954_v8, 5  ;;  %v3900_v31 = vsel %vm8810_vm3, %v3898_v54, %v3899_v6  ;;  %v2339_v61 = vsel %vm8810_vm3, %v6582_v35, %v2338_v45  ;;  %v2345_v16 = vrot.slane %v7917_v62, 5  ;;  %v3803_v54 = vld [vmem:[#allocation2 + $0x6c] sm:$0xe]  ;;  %v2264_v55 = vld [vmem:[#allocation2 + $0x54] sm:$0xe] }
 0x1d6   : > { %v2342_v48 = vsel %vm8810_vm3, %v2340_v42, %v2341_v30  ;;  %v6696_v52 = vrot.slane %v3801_v37, 9  ;;  %v3906_v33 = vrot.slane %v9955_v10, 5  ;;  %v6583_v14 = vrot.slane %v2262_v13, 9  ;;  %v7922_v62 = vld [vmem:[#allocation2 + $0x5c] sm:$0x1] }
 0x1d7   : > { %7335 = vmatmul.mubr.msk.bf16.gmra.mrb[4].mxu1 %vm1751_vm8, %v6709_v26  ;;  %7233 = vmatmul.mubr.msk.bf16.gmra.mrb[36].mxu0 %vm1751_vm8, %v6597_v59  ;;  %v6598_v34 = vcombine.low %v2339_v61, %v2342_v48  ;;  %v3905_v47 = vrot.slane %v3903_v28, 4  ;;  %v2347_v15 = vrot.slane %v2345_v16, 4  ;;  %v2348_v49 = vrot.slane %v7918_v51, 5 }
 0x1d8   : > { %7338 = vmatprep.mubr.msk.bf16.mxu1 %vm1751_vm8, %v6710_v36  ;;  %v3910_v29 = vrot.slane %v8666_v4, 5  ;;  %v6711_v58 = vcombine.low %v3897_v57, %v3900_v31  ;;  %v3904_v11 = vsel %vm8810_vm3, %v6696_v52, %v3903_v28  ;;  %v2352_v41 = vrot.slane %v7919_v38, 5  ;;  %v7921_v36 = vld [vmem:[#allocation2 + $0x58] sm:$0xf]  ;;  %v9956_v31 = vld [vmem:[#allocation8_spill] sm:$0xff] }
 0x1d9   : > { %7236 = vmatprep.mubr.msk.bf16.mxu0 %vm1751_vm8, %v6598_v34  ;;  %v3907_v60 = vsel %vm8810_vm3, %v3905_v47, %v3906_v33  ;;  %v2346_v26 = vsel %vm8810_vm3, %v6583_v14, %v2345_v16  ;;  %v2349_v22 = vsel %vm8810_vm3, %v2347_v15, %v2348_v49  ;;  %v6697_v63 = vrot.slane %v3802_v20, 9  ;;  %v3804_v57 = vld [vmem:[#allocation2 + $0x78] sm:$0xe]  ;;  %v2265_v33 = vld [vmem:[#allocation2 + $0x60] sm:$0xe] }
 0x1da   : > { %v3912_v4 = vrot.slane %v3910_v29, 4  ;;  %v3913_v7 = vrot.slane %v8674_v0, 5  ;;  %v6584_v45 = vrot.slane %v2263_v9, 9  ;;  %v2354_v56 = vrot.slane %v2352_v41, 4  ;;  %v7923_v20 = vld [vmem:[#allocation2 + $0x64] sm:$0xf] }
 0x1db   : > { %v2355_v25 = vrot.slane %v7920_v12, 5  ;;  %v6712_v19 = vcombine.low %v3904_v11, %v3907_v60  ;;  %v6599_v6 = vcombine.low %v2346_v26, %v2349_v22  ;;  %v3911_v35 = vsel %vm8810_vm3, %v6697_v63, %v3910_v29  ;;  %v7924_v11 = vld [vmem:[#allocation2 + $0x68] sm:$0x1]  ;;  %v3805_v38 = vld [vmem:[#allocation2 + $0x84] sm:$0xe] }
 0x1dc   : > { %v3917_v42 = vrot.slane %v8680_v40, 5  ;;  %v3914_v30 = vsel %vm8810_vm3, %v3912_v4, %v3913_v7  ;;  %v2353_v37 = vsel %vm8810_vm3, %v6584_v45, %v2352_v41  ;;  %v2359_v59 = vrot.slane %v7921_v36, 5  ;;  %v7925_v45 = vld [vmem:[#allocation2 + $0x70] sm:$0xf]  ;;  %v7926_v36 = vld [vmem:[#allocation2 + $0x74] sm:$0x1] }
 0x1dd   : > { %v2356_v0 = vsel %vm8810_vm3, %v2354_v56, %v2355_v25  ;;  %v6698_v28 = vrot.slane %v3803_v54, 9  ;;  %v3920_v61 = vrot.slane %v9956_v31, 5  ;;  %v6585_v40 = vrot.slane %v2264_v55, 9 }
 0x1de   : > { %v6600_v8 = vcombine.low %v2353_v37, %v2356_v0  ;;  %v3919_v13 = vrot.slane %v3917_v42, 4  ;;  %v2361_v48 = vrot.slane %v2359_v59, 4  ;;  %v2362_v16 = vrot.slane %v7922_v62, 5 }
 0x1df   : > { %7339 = vmatmul.mubr.msk.bf16.gmra.mrb[8].mxu1 %vm1751_vm8, %v6711_v58  ;;  %7237 = vmatmul.mubr.msk.bf16.gmra.mrb[40].mxu0 %vm1751_vm8, %v6599_v6  ;;  %v3924_v34 = vrot.slane %v8696_v1, 5  ;;  %v3918_v52 = vsel %vm8810_vm3, %v6698_v28, %v3917_v42  ;;  %v6699_v10 = vrot.slane %v3804_v57, 9  ;;  %v2366_v14 = vrot.slane %v7923_v20, 5  ;;  %v3806_v6 = vld [vmem:[#allocation2 + $0x90] sm:$0xe] }
 0x1e0   : > { %7342 = vmatprep.mubr.msk.bf16.mxu1 %vm1751_vm8, %v6712_v19  ;;  %7240 = vmatprep.mubr.msk.bf16.mxu0 %vm1751_vm8, %v6600_v8  ;;  %v3921_v47 = vsel %vm8810_vm3, %v3919_v13, %v3920_v61  ;;  %v2363_v51 = vsel %vm8810_vm3, %v2361_v48, %v2362_v16  ;;  %v3927_v1 = vrot.slane %v8704_v18, 5  ;;  %v6713_v29 = vcombine.low %v3911_v35, %v3914_v30  ;;  %v2266_v42 = vld [vmem:[#allocation2 + $0x6c] sm:$0xe]  ;;  %v2267_v30 = vld [vmem:[#allocation2 + $0x78] sm:$0xe] }
 0x1e1   : > { %v6714_v15 = vcombine.low %v3918_v52, %v3921_v47  ;;  %v3926_v49 = vrot.slane %v3924_v34, 4  ;;  %v2360_v9 = vsel %vm8810_vm3, %v6585_v40, %v2359_v59  ;;  %v2368_v58 = vrot.slane %v2366_v14, 4  ;;  %v7928_v48 = vld [vmem:[#allocation2 + $0x80] sm:$0x1]  ;;  %v3807_v16 = vld [vmem:[#allocation2 + $0x9c] sm:$0xe] }
 0x1e2   : > { %v2369_v60 = vrot.slane %v7924_v11, 5  ;;  %v8943_v41 = vsel %vm8810_vm3, %v6699_v10, %v3924_v34  ;;  %v6586_v22 = vrot.slane %v2265_v33, 9  ;;  %v3931_v63 = vrot.slane %v8711_v17, 5  ;;  %v2268_v11 = vld [vmem:[#allocation2 + $0x84] sm:$0xe] }
 0x1e3   : > { %v8947_v26 = vsel %vm8810_vm3, %v3926_v49, %v3927_v1  ;;  %v6601_v18 = vcombine.low %v2360_v9, %v2363_v51  ;;  %v2373_v56 = vrot.slane %v7925_v45, 5  ;;  %v6700_v25 = vrot.slane %v3805_v38, 9  ;;  %v3808_v9 = vld [vmem:[#allocation2 + $0xa8] sm:$0xe] }
 0x1e4   : > { %v6715_v4 = vcombine.low %v8943_v41, %v8947_v26  ;;  %v2370_v7 = vsel %vm8810_vm3, %v2368_v58, %v2369_v60  ;;  %v2367_v12 = vsel %vm8810_vm3, %v6586_v22, %v2366_v14  ;;  %v3933_v54 = vrot.slane %v3931_v63, 4  ;;  %v7929_v14 = vld [vmem:[#allocation2 + $0x88] sm:$0xf]  ;;  %v2269_v41 = vld [vmem:[#allocation2 + $0x90] sm:$0xe] }
 0x1e5   : > { %v3934_v19 = vrot.slane %v8719_v50, 5  ;;  %v6602_v35 = vcombine.low %v2367_v12, %v2370_v7  ;;  %v2375_v17 = vrot.slane %v2373_v56, 4  ;;  %v3938_v55 = vrot.slane %v8726_v44, 5  ;;  %v7927_v50 = vld [vmem:[#allocation2 + $0x7c] sm:$0xf] }
 0x1e6   : > { %v3932_v37 = vsel %vm8810_vm3, %v6700_v25, %v3931_v63  ;;  %v2376_v59 = vrot.slane %v7926_v36, 5  ;;  %v2380_v57 = vrot.slane %v7927_v50, 5  ;;  %v6701_v8 = vrot.slane %v3806_v6, 9  ;;  %v7930_v63 = vld [vmem:[#allocation2 + $0x8c] sm:$0x1] }
 0x1e7   : > { %7343 = vmatmul.mubr.msk.bf16.gmra.mrb[12].mxu1 %vm1751_vm8, %v6713_v29  ;;  %7241 = vmatmul.mubr.msk.bf16.gmra.mrb[44].mxu0 %vm1751_vm8, %v6601_v18  ;;  %v3935_v0 = vsel %vm8810_vm3, %v3933_v54, %v3934_v19  ;;  %v3940_v28 = vrot.slane %v3938_v55, 4  ;;  %v3941_v13 = vrot.slane %v8734_v53, 5  ;;  %v6587_v31 = vrot.slane %v2266_v42, 9  ;;  %v7931_v7 = vld [vmem:[#allocation2 + $0x94] sm:$0xf] }
 0x1e8   : > { %7346 = vmatprep.mubr.msk.bf16.mxu1 %vm1751_vm8, %v6714_v15  ;;  %7244 = vmatprep.mubr.msk.bf16.mxu0 %vm1751_vm8, %v6602_v35  ;;  %v6716_v44 = vcombine.low %v3932_v37, %v3935_v0  ;;  %v6588_v61 = vrot.slane %v2267_v30, 9  ;;  %v2382_v40 = vrot.slane %v2380_v57, 4  ;;  %v2383_v62 = vrot.slane %v7928_v48, 5  ;;  %v7932_v6 = vld [vmem:[#allocation2 + $0x98] sm:$0x1] }
 0x1e9   : > { %v2377_v34 = vsel %vm8810_vm3, %v2375_v17, %v2376_v59  ;;  %v8971_v52 = vsel %vm8810_vm3, %v6701_v8, %v3938_v55  ;;  %v8975_v47 = vsel %vm8810_vm3, %v3940_v28, %v3941_v13  ;;  %v3945_v10 = vrot.slane %v8740_v27, 5  ;;  %v3809_v42 = vld [vmem:[#allocation2 + $0xb4] sm:$0xe]  ;;  %v7933_v36 = vld [vmem:[#allocation2 + $0xa0] sm:$0xf] }
 0x1ea   : > { %v2374_v53 = vsel %vm8810_vm3, %v6587_v31, %v2373_v56  ;;  %v6717_v33 = vcombine.low %v8971_v52, %v8975_v47  ;;  %v2384_v20 = vsel %vm8810_vm3, %v2382_v40, %v2383_v62  ;;  %v2387_v15 = vrot.slane %v7929_v14, 5  ;;  %v3810_v28 = vld [vmem:[#allocation2 + $0xc0] sm:$0xe]  ;;  %v7934_v62 = vld [vmem:[#allocation2 + $0xac] sm:$0xf] }
 0x1eb   : > { %v2381_v51 = vsel %vm8810_vm3, %v6588_v61, %v2380_v57  ;;  %v6702_v49 = vrot.slane %v3807_v16, 9  ;;  %v3947_v1 = vrot.slane %v3945_v10, 4  ;;  %v3948_v29 = vrot.slane %v8751_v21, 5 }
 0x1ec   : > { %v6603_v27 = vcombine.low %v2374_v53, %v2377_v34  ;;  %v6604_v58 = vcombine.low %v2381_v51, %v2384_v20  ;;  %v2389_v60 = vrot.slane %v2387_v15, 4  ;;  %v3952_v38 = vrot.slane %v8756_v3, 5  ;;  %v7935_v53 = vld [vmem:[#allocation2 + $0xa4] sm:$0x1]  ;;  %v2271_v51 = vld [vmem:[#allocation2 + $0xa8] sm:$0xe] }
 0x1ed   : > { %v3946_v26 = vsel %vm8810_vm3, %v6702_v49, %v3945_v10  ;;  %v3949_v22 = vsel %vm8810_vm3, %v3947_v1, %v3948_v29  ;;  %v2390_v18 = vrot.slane %v7930_v63, 5  ;;  %v2394_v45 = vrot.slane %v7931_v7, 5  ;;  %v7936_v49 = vld [vmem:[#allocation2 + $0xb0] sm:$0x1]  ;;  %v2272_v63 = vld [vmem:[#allocation2 + $0xb4] sm:$0xe] }
 0x1ee   : > { %v6718_v21 = vcombine.low %v3946_v26, %v3949_v22  ;;  %v6703_v56 = vrot.slane %v3808_v9, 9  ;;  %v3954_v12 = vrot.slane %v3952_v38, 4  ;;  %v3955_v3 = vrot.slane %v8764_v46, 5  ;;  %v7937_v9 = vld [vmem:[#allocation2 + $0xb8] sm:$0xf] }
 0x1ef   : > { %7347 = vmatmul.mubr.msk.bf16.gmra.mrb[16].mxu1 %vm1751_vm8, %v6715_v4  ;;  %7245 = vmatmul.mubr.msk.bf16.gmra.mrb[48].mxu0 %vm1751_vm8, %v6603_v27  ;;  %v6589_v25 = vrot.slane %v2268_v11, 9  ;;  %v6590_v54 = vrot.slane %v2269_v41, 9  ;;  %v2396_v19 = vrot.slane %v2394_v45, 4  ;;  %v2397_v35 = vrot.slane %v7932_v6, 5  ;;  %v7884_v6 = vld [vmem:[#allocation2 + $0x30] sm:$0xff]  }
 0x1f0   : > { %7350 = vmatprep.mubr.msk.bf16.mxu1 %vm1751_vm8, %v6716_v44  ;;  %7248 = vmatprep.mubr.msk.bf16.mxu0 %vm1751_vm8, %v6604_v58  ;;  %v2391_v4 = vsel %vm8810_vm3, %v2389_v60, %v2390_v18  ;;  %v3953_v17 = vsel %vm8810_vm3, %v6703_v56, %v3952_v38  ;;  %v3956_v55 = vsel %vm8810_vm3, %v3954_v12, %v3955_v3  ;;  %v3959_v46 = vrot.slane %v8772_v5, 5  ;;  %v7938_v18 = vld [vmem:[#allocation2 + $0xbc] sm:$0x1] }
 0x1f1   : > { %v2388_v30 = vsel %vm8810_vm3, %v6589_v25, %v2387_v15  ;;  %v6719_v37 = vcombine.low %v3953_v17, %v3956_v55  ;;  %v2398_v0 = vsel %vm8810_vm3, %v2396_v19, %v2397_v35  ;;  %v2401_v59 = vrot.slane %v7933_v36, 5  ;;  %v7882_v3 = vld [vmem:[#allocation2 + $0x18] sm:$0xff]   ;;  %v7939_v25 = vld [vmem:[%s8028_s12] sm:$0xff]   ;;  %v7886_v55 = vld [vmem:[#allocation2 + $0x48] sm:$0xff]  }
 0x1f2   : > { %v2395_v50 = vsel %vm8810_vm3, %v6590_v54, %v2394_v45  ;;  %v6704_v57 = vrot.slane %v3809_v42, 9  ;;  %v3961_v44 = vrot.slane %v3959_v46, 4  ;;  %v3962_v8 = vrot.slane %v8779_v43, 5  ;;  %v2270_v43 = vld [vmem:[#allocation2 + $0x9c] sm:$0xe]  ;;  %v7883_v54 = vld [vmem:[#allocation2 + $0x24] sm:$0xff]  }
 0x1f3   : > { %v6605_v13 = vcombine.low %v2388_v30, %v2391_v4  ;;  %v6606_v31 = vcombine.low %v2395_v50, %v2398_v0  ;;  %v3966_v5 = vrot.slane %v8786_v2, 5  ;;  %v2403_v48 = vrot.slane %v2401_v59, 4  ;;  %v9051_v35 = vld [vmem:[%s9909_s3 + $0x20] sm:$0xf]  ;;  %v4622_v42 = vld [vmem:[#allocation2 + $0x18] sm:$0xf] }
 0x1f4   : > { %v3960_v61 = vsel %vm8810_vm3, %v6704_v57, %v3959_v46  ;;  %v3963_v40 = vsel %vm8810_vm3, %v3961_v44, %v3962_v8  ;;  %v2408_v16 = vrot.slane %v7934_v62, 5  ;;  %v6705_v52 = vrot.slane %v3810_v28, 9  ;;  %v9057_v4 = vld [vmem:[#allocation2 + $0x1c] sm:$0xf]  ;;  %v4625_v0 = vld [vmem:[#allocation2 + $0x24] sm:$0xf] }
 0x1f5   : > { %v6720_v34 = vcombine.low %v3960_v61, %v3963_v40  ;;  %v3968_v47 = vrot.slane %v3966_v5, 4  ;;  %v3969_v10 = vrot.slane %v8794_v32, 5  ;;  %v2404_v20 = vrot.slane %v7935_v53, 5  ;;  %v7885_v17 = vld [vmem:[#allocation2 + $0x3c] sm:$0xff]   ;;  %v9063_v36 = vld [vmem:[#allocation2 + $0x28] sm:$0xf] }
 0x1f6   : > { %v2410_v2 = vrot.slane %v2408_v16, 4  ;;  %v3967_v14 = vsel %vm8810_vm3, %v6705_v52, %v3966_v5  ;;  %v6591_v1 = vrot.slane %v2270_v43, 9  ;;  %v2415_v27 = vrot.slane %v7937_v9, 5  ;;  %v4628_v5 = vld [vmem:[#allocation2 + $0x30] sm:$0xf]  ;;  %v7887_v61 = vld [vmem:[#allocation2 + $0x54] sm:$0xff]  }
 0x1f7   : > { %7351 = vmatmul.mubr.msk.bf16.gmra.mrb[20].mxu1 %vm1751_vm8, %v6717_v33  ;;  %7249 = vmatmul.mubr.msk.bf16.gmra.mrb[52].mxu0 %vm1751_vm8, %v6605_v13  ;;  %v3970_v15 = vsel %vm8810_vm3, %v3968_v47, %v3969_v10  ;;  %v2411_v33 = vrot.slane %v7936_v49, 5  ;;  %v2405_v29 = vsel %vm8810_vm3, %v2403_v48, %v2404_v20  ;;  %v6592_v58 = vrot.slane %v2271_v51, 9  ;;  %v7888_v40 = vld [vmem:[#allocation2 + $0x60] sm:$0xff]  }
 0x1f8   : > { %7354 = vmatprep.mubr.msk.bf16.mxu1 %vm1751_vm8, %v6718_v21  ;;  %7252 = vmatprep.mubr.msk.bf16.mxu0 %vm1751_vm8, %v6606_v31  ;;  %v6721_v32 = vcombine.low %v3967_v14, %v3970_v15  ;;  %v2402_v60 = vsel %vm8810_vm3, %v6591_v1, %v2401_v59  ;;  %v2417_v22 = vrot.slane %v2415_v27, 4  ;;  %v2418_v7 = vrot.slane %v7938_v18, 5  ;;  %v9067_v48 = vld [vmem:[#allocation2 + $0x20] sm:$0x1]  ;;  %v4631_v14 = vld [vmem:[#allocation2 + $0x3c] sm:$0xf] }
 0x1f9   : > { %v2412_v11 = vsel %vm8810_vm3, %v2410_v2, %v2411_v33  ;;  %v6607_v38 = vcombine.low %v2402_v60, %v2405_v29  ;;  %v2409_v41 = vsel %vm8810_vm3, %v6592_v58, %v2408_v16  ;;  %v6593_v45 = vrot.slane %v2272_v63, 9  ;;  %v9073_v2 = vld [vmem:[#allocation2 + $0x34] sm:$0xf]  ;;  %v9078_v33 = vld [vmem:[#allocation2 + $0x2c] sm:$0x1]  ;;  %v7890_v18 = vld [vmem:[#allocation2 + $0x78] sm:$0xff]  }
 0x1fa   : > { %v6608_v26 = vcombine.low %v2409_v41, %v2412_v11  ;;  %v2419_v21 = vsel %vm8810_vm3, %v2417_v22, %v2418_v7  ;;  %v5152_v19 = vsel %vm1800_vm4, %v8866_v24, 0  ;;  %v4671_v24 = vshrl.u32 %v4622_v42, 16  ;;  %v7889_v41 = vld [vmem:[#allocation2 + $0x6c] sm:$0xff]  }
 0x1fb   : > { %v2416_v56 = vsel %vm8810_vm3, %v6593_v45, %v2415_v27  ;;  %v4674_v46 = vshll.u32 %v4622_v42, 16  ;;  %v4680_v30 = vshll.u32 %v9057_v4, 16  ;;  %v4695_v57 = vshrl.u32 %v4625_v0, 16  ;;  %v9082_v27 = vld [vmem:[#allocation2 + $0x38] sm:$0x1] }
 0x1fc   : > { %v6609_v12 = vcombine.low %v2416_v56, %v2419_v21  ;;  %v4673_v59 = vrot.slane %v4671_v24, 4  ;;  %v4698_v44 = vshll.u32 %v4625_v0, 16  ;;  %v4704_v13 = vshll.u32 %v9063_v36, 16  ;;  %v9103_v24 = vld [vmem:[#allocation2 + $0x58] sm:$0xf] }
 0x1fd   : > { %v4676_v50 = vrot.slane %v4674_v46, 5  ;;  %v4682_v8 = vrot.slane %v4680_v30, 5  ;;  %v4708_v31 = vshrl.u32 %v9063_v36, 16  ;;  %v4697_v16 = vrot.slane %v4695_v57, 4  ;;  %v9105_v46 = vld [vmem:[#allocation2 + $0x44] sm:$0x1] }
 0x1fe   : > { %v9070_v47 = vrot.slane %v4704_v13, 5  ;;  %v4719_v43 = vshrl.u32 %v4628_v5, 16  ;;  %v4722_v53 = vshll.u32 %v4628_v5, 16  ;;  %v4690_v20 = vshll.u32 %v9067_v48, 16 }
 0x1ff   : > { %7355 = vmatmul.mubr.msk.bf16.gmra.mrb[24].mxu1 %vm1751_vm8, %v6719_v37  ;;  %7253 = vmatmul.mubr.msk.bf16.gmra.mrb[56].mxu0 %vm1751_vm8, %v6607_v38  ;;  %v4684_v37 = vshrl.u32 %v9057_v4, 16  ;;  %v4677_v62 = vor.u32 %v4676_v50, %v4673_v59  ;;  %v4710_v10 = vrot.slane %v4708_v31, 4  ;;  %v4728_v9 = vshll.u32 %v9073_v2, 16  ;;  %v4637_v31 = vld [vmem:[#allocation2 + $0x54] sm:$0xf] }
 0x200   : > { %7358 = vmatprep.mubr.msk.bf16.mxu1 %vm1751_vm8, %v6720_v34  ;;  %7256 = vmatprep.mubr.msk.bf16.mxu0 %vm1751_vm8, %v6608_v26  ;;  %v4700_v34 = vrot.slane %v4698_v44, 5  ;;  %v4721_v29 = vrot.slane %v4719_v43, 4  ;;  %v4724_v58 = vrot.slane %v4722_v53, 5  ;;  %v4732_v11 = vshrl.u32 %v9073_v2, 16  ;;  %v7892_v43 = vld [vmem:[#allocation2 + $0x90] sm:$0xff]  }
 0x201   : > { %v4686_v28 = vrot.slane %v4684_v37, 4  ;;  %v4678_v15 = vrot.slane %v4677_v62, 4  ;;  %v4711_v1 = vor.u32 %v4710_v10, %v9070_v47  ;;  %v4743_v60 = vshrl.u32 %v4631_v14, 16  ;;  %v7891_v10 = vld [vmem:[#allocation2 + $0x84] sm:$0xff]  }
 0x202   : > { %v4701_v51 = vor.u32 %v4700_v34, %v4697_v16  ;;  %v4746_v38 = vshll.u32 %v4631_v14, 16  ;;  %v4692_v26 = vrot.slane %v4690_v20, 5  ;;  %v4714_v21 = vshll.u32 %v9078_v33, 16 }
 0x203   : > { %v4687_v52 = vor.u32 %v4686_v28, %v4682_v8  ;;  %v4683_v7 = vsel %vm8126_vm7, %v4678_v15, %v4682_v8  ;;  %v9092_v56 = vsel %vm1800_vm4, %v9051_v35, 0  ;;  %v4725_v42 = vor.u32 %v4724_v58, %v4721_v29  ;;  %v9127_v15 = vld [vmem:[#allocation2 + $0x64] sm:$0xf] }
 0x204   : > { %v4702_v45 = vrot.slane %v4701_v51, 4  ;;  %v4716_v57 = vrot.slane %v4714_v21, 5  ;;  %v4800_v5 = vshll.u32 %v9103_v24, 16  ;;  %v4762_v34 = vshll.u32 %v9105_v46, 16  ;;  %v9129_v51 = vld [vmem:[#allocation2 + $0x50] sm:$0x1] }
 0x205   : > { %v4688_v49 = vrot.slane %v4687_v52, 4  ;;  %v9122_v62 = vrot.slane %v4725_v42, 4  ;;  %v4640_v52 = vld [vmem:[#allocation2 + $0x60] sm:$0xf]  ;;  %v4791_v29 = vshrl.u32 %v4637_v31, 16 }
 0x206   : > { %v4707_v28 = vsel %vm8126_vm7, %v4702_v45, %v9070_v47  ;;  %v9134_v58 = vrot.slane %v4800_v5, 5  ;;  %v4764_v21 = vrot.slane %v4762_v34, 5  ;;  %v7894_v34 = vld [vmem:[#allocation2 + $0xa8] sm:$0xff]  }
 0x207   : > { %7359 = vmatmul.mubr.msk.bf16.gmra.mrb[28].mxu1 %vm1751_vm8, %v6721_v32  ;;  %7257 = vmatmul.mubr.msk.bf16.gmra.mrb[60].mxu0 %vm1751_vm8, %v6609_v12  ;;  %v9076_v32 = vld [vmem:[#allocation2 + $0x40] sm:$0xf]  ;;  %v4634_v12 = vld [vmem:[#allocation2 + $0x48] sm:$0xf]  ;;  %v4793_v42 = vrot.slane %v4791_v29, 4 }
 0x208   : > { %7364 = vmatprep.mubr.msk.bf16.mxu1 %vm1751_vm8, %v7882_v3  ;;  %7466 = vmatprep.mubr.msk.bf16.mxu0 %vm427_vm1, %v7939_v25  ;;  %v4752_v22 = vshll.u32 %v9076_v32, 16  ;;  %v4756_v63 = vshrl.u32 %v9076_v32, 16  ;;  %v4693_v3 = vsel %vm8126_vm7, %v4688_v49, %v4692_v26  ;;  %v4712_v25 = vrot.slane %v4711_v1, 4  ;;  %v9172_v29 = vld [vmem:[#allocation2 + $0x74] sm:$0x1] }
 0x209   : > { %v4767_v0 = vshrl.u32 %v4634_v12, 16  ;;  %v4770_v59 = vshll.u32 %v4634_v12, 16  ;;  %v9109_v50 = vcombine.low %v4683_v7, %v4693_v3  ;;  %v4786_v12 = vshll.u32 %v9129_v51, 16  ;;  %v4643_v3 = vld [vmem:[#allocation2 + $0x6c] sm:$0xf] }
 0x20a   : > { %v9107_v30 = vrot.slane %v4752_v22, 5  ;;  %v4758_v37 = vrot.slane %v4756_v63, 4  ;;  %v9139_v22 = vld [vmem:[#allocation2 + $0x5c] sm:$0x1]  ;;  %v4824_v63 = vshll.u32 %v9127_v15, 16 }
 0x20b   : > { %v4769_v20 = vrot.slane %v4767_v0, 4  ;;  %v4772_v14 = vrot.slane %v4770_v59, 5 }
 0x20c   : > { %v4759_v53 = vor.u32 %v4758_v37, %v9107_v30  ;;  %v4810_v37 = vshll.u32 %v9139_v22, 16 }
 0x20e   : > { %v4760_v45 = vrot.slane %v4759_v53, 4  ;;  %v9165_v53 = vld [vmem:[#allocation2 + $0x7c] sm:$0xf] }
 0x20f   : > { %7365 = vmatmul.mubr.msk.bf16.vlgmr.msra.gmra.mrb[0].mxu1 %vm1751_vm8, %v7883_v54  ;;  %v9097_v54 = vrot.slane %v4728_v9, 5  ;;  %v4794_v9 = vshll.u32 %v4637_v31, 16  ;;  %v7893_v31 = vld [vmem:[#allocation2 + $0x9c] sm:$0xff]  }
 0x210   : > { %7397 = vmatpush3.bf16.msra.mxu1 %v5152_v19  ;;  %7368 = vmatprep.mubr.msk.bf16.mxu1 %vm1751_vm8, %v7884_v6  ;;  %v4738_v19 = vshll.u32 %v9082_v27, 16  ;;  %v9100_v6 = vld [vmem:[#allocation2 + $0x4c] sm:$0xf] }
 0x211   : > { %7829 = vmatprep.subr.msk.bf16.mxu1 %vm1800_vm4, %v9051_v35  ;;  %v4748_v35 = vrot.slane %v4746_v38, 5  ;;  %v4776_v44 = vshll.u32 %v9100_v6, 16  ;;  %v4780_v8 = vshrl.u32 %v9100_v6, 16  ;;  %v4818_v38 = vshll.u32 %v4640_v52, 16 }
 0x212   : > { %v9116_v13 = vrot.slane %v4738_v19, 5  ;;  %v4731_v5 = vsel %vm8126_vm7, %v9122_v62, %v9097_v54 }
 0x213   : > { %v9131_v49 = vrot.slane %v4776_v44, 5  ;;  %v4782_v1 = vrot.slane %v4780_v8, 4  ;;  %v4820_v59 = vrot.slane %v4818_v38, 5  ;;  %v4839_v8 = vshrl.u32 %v4643_v3, 16 }
 0x215   : > { %v4783_v19 = vor.u32 %v4782_v1, %v9131_v49  ;;  %v4812_v1 = vrot.slane %v4810_v37, 5 }
 0x217   : > { %7369 = vmatmul.mubr.msk.bf16.gmra.mrb[4].mxu1 %vm1751_vm8, %v7885_v17  ;;  %v4734_v17 = vrot.slane %v4732_v11, 4 }
 0x218   : > { %7372 = vmatprep.mubr.msk.bf16.mxu1 %vm1751_vm8, %v7886_v55  ;;  %v4745_v55 = vrot.slane %v4743_v60, 4  ;;  %v4815_v60 = vshrl.u32 %v4640_v52, 16 }
 0x219   : > { %v4735_v16 = vor.u32 %v4734_v17, %v9097_v54  ;;  %v4796_v17 = vrot.slane %v4794_v9, 5  ;;  %v4841_v9 = vrot.slane %v4839_v8, 4 }
 0x21a   : > { %v4749_v47 = vor.u32 %v4748_v35, %v4745_v55  ;;  %v9145_v55 = vld [vmem:[#allocation2 + $0x70] sm:$0xf]  ;;  %v4817_v0 = vrot.slane %v4815_v60, 4 }
 0x21b   : > { %v4736_v26 = vrot.slane %v4735_v16, 4  ;;  %v4852_v16 = vshrl.u32 %v9145_v55, 16 }
 0x21c   : > { %v4750_v7 = vrot.slane %v4749_v47, 4  ;;  %v4797_v47 = vor.u32 %v4796_v17, %v4793_v42  ;;  %v4858_v42 = vshll.u32 %v9172_v29, 16  ;;  %v4649_v17 = vld [vmem:[#allocation2 + $0x84] sm:$0xf] }
 0x21d   : > { %v4854_v38 = vrot.slane %v4852_v16, 4 }
 0x21e   : > { %v4755_v52 = vsel %vm8126_vm7, %v4750_v7, %v9107_v30 }
 0x21f   : > { %7373 = vmatmul.mubr.msk.bf16.gmra.mrb[8].mxu1 %vm1751_vm8, %v7887_v61  ;;  %v4804_v61 = vshrl.u32 %v9103_v24, 16 }
 0x220   : > { %7376 = vmatprep.mubr.msk.bf16.mxu1 %vm1751_vm8, %v7888_v40  ;;  %v4717_v40 = vsel %vm8126_vm7, %v4712_v25, %v4716_v57  ;;  %v4773_v25 = vor.u32 %v4772_v14, %v4769_v20  ;;  %v9149_v57 = vrot.slane %v4824_v63, 5  ;;  %v9168_v20 = vld [vmem:[#allocation2 + $0x68] sm:$0x1]  ;;  %v4821_v14 = vor.u32 %v4820_v59, %v4817_v0 }
 0x221   : > { %v4806_v11 = vrot.slane %v4804_v61, 4  ;;  %v4741_v61 = vsel %vm8126_vm7, %v4736_v26, %v9116_v13  ;;  %v4784_v13 = vrot.slane %v4783_v19, 4  ;;  %v4646_v26 = vld [vmem:[#allocation2 + $0x78] sm:$0xf]  ;;  %v4872_v63 = vshll.u32 %v9165_v53, 16 }
 0x222   : > { %v4774_v54 = vrot.slane %v4773_v25, 4  ;;  %v9178_v7 = vcombine.low %v4731_v5, %v4741_v61  ;;  %v9187_v19 = vrot.slane %v4821_v14, 4  ;;  %v4863_v0 = vshrl.u32 %v4646_v26, 16  ;;  %v7896_v61 = vld [vmem:[#allocation2 + $0xc0] sm:$0xff]  }
 0x223   : > { %v4807_v35 = vor.u32 %v4806_v11, %v9134_v58  ;;  %v4866_v59 = vshll.u32 %v4646_v26, 16  ;;  %v9319_v26 = vld [vmem:[#allocation2 + $0xac] sm:$0xf] }
 0x224   : > { %v4779_v8 = vsel %vm8126_vm7, %v4774_v54, %v9131_v49  ;;  %v9218_v54 = vld [vmem:[#allocation2 + $0x88] sm:$0xf] }
 0x225   : > { %v4808_v62 = vrot.slane %v4807_v35, 4 }
 0x227   : > { %7377 = vmatmul.mubr.msk.bf16.gmra.mrb[12].mxu1 %vm1751_vm8, %v7889_v41  ;;  %v9137_v41 = vcombine.low %v4707_v28, %v4717_v40  ;;  %v4842_v28 = vshll.u32 %v4643_v3, 16  ;;  %v4848_v40 = vshll.u32 %v9145_v55, 16  ;;  %v4813_v25 = vsel %vm8126_vm7, %v4808_v62, %v4812_v1 }
 0x228   : > { %7380 = vmatprep.mubr.msk.bf16.mxu1 %vm1751_vm8, %v7890_v18  ;;  %v4828_v18 = vshrl.u32 %v9127_v15, 16  ;;  %v9227_v1 = vrot.slane %v4863_v0, 4 }
 0x229   : > { %v4844_v11 = vrot.slane %v4842_v28, 5  ;;  %v9174_v60 = vrot.slane %v4848_v40, 5 }
 0x22a   : > { %v4830_v44 = vrot.slane %v4828_v18, 4  ;;  %v4876_v18 = vshrl.u32 %v9165_v53, 16 }
 0x22b   : > { %v4845_v37 = vor.u32 %v4844_v11, %v4841_v9  ;;  %v4855_v28 = vor.u32 %v4854_v38, %v9174_v60  ;;  %v9231_v9 = vld [vmem:[#allocation2 + $0x94] sm:$0xf]  ;;  %v7897_v11 = vld [vmem:[#allocation2 + $0xcc] sm:$0xff]  }
 0x22c   : > { %v4831_v30 = vor.u32 %v4830_v44, %v9149_v57  ;;  %v7895_v44 = vld [vmem:[#allocation2 + $0xb4] sm:$0xff]   ;;  %v9198_v5 = vrot.slane %v4876_v18, 4  ;;  %v5427_v18 = vrot.slane %v9073_v2, 5 }
 0x22d   : > { %v9225_v14 = vrot.slane %v4845_v37, 4  ;;  %v9233_v38 = vrot.slane %v4855_v28, 4 }
 0x22e   : > { %v9190_v35 = vrot.slane %v4831_v30, 4  ;;  %v9229_v30 = vrot.slane %v4866_v59, 5  ;;  %v5429_v59 = vrot.slane %v5427_v18, 4 }
 0x22f   : > { %7381 = vmatmul.mubr.msk.bf16.gmra.mrb[16].mxu1 %vm1751_vm8, %v7891_v10  ;;  %v4765_v10 = vsel %vm8126_vm7, %v4760_v45, %v4764_v21  ;;  %v4798_v21 = vrot.slane %v4797_v47, 4  ;;  %v9216_v47 = vrot.slane %v4858_v42, 5 }
 0x230   : > { %7384 = vmatprep.mubr.msk.bf16.mxu1 %vm1751_vm8, %v7892_v43  ;;  %v4788_v43 = vrot.slane %v4786_v12, 5  ;;  %v9180_v45 = vcombine.low %v4755_v52, %v4765_v10  ;;  %v4834_v12 = vshll.u32 %v9168_v20, 16  ;;  %v9207_v52 = vld [vmem:[#allocation2 + $0x80] sm:$0x1]  ;;  %v4887_v10 = vshrl.u32 %v4649_v17, 16 }
 0x231   : > { %v4803_v16 = vsel %vm8126_vm7, %v4798_v21, %v9134_v58  ;;  %v5349_v58 = vld [vmem:[#allocation2 + $0x30] sm:$0xe]  ;;  %v5350_v21 = vld [vmem:[#allocation2 + $0x3c] sm:$0xe] }
 0x232   : > { %v4789_v3 = vsel %vm8126_vm7, %v4784_v13, %v4788_v43  ;;  %v9210_v49 = vcombine.low %v4803_v16, %v4813_v25  ;;  %v4890_v13 = vshll.u32 %v4649_v17, 16  ;;  %v6804_v42 = vrot.slane %v5349_v58, 9  ;;  %v5351_v17 = vld [vmem:[#allocation2 + $0x48] sm:$0xe] }
 0x233   : > { %v9200_v40 = vcombine.low %v4779_v8, %v4789_v3  ;;  %v5352_v8 = vld [vmem:[#allocation2 + $0x54] sm:$0xe]  ;;  %v6805_v28 = vrot.slane %v5350_v21, 9  ;;  %v5437_v16 = vrot.slane %v9105_v46, 5  ;;  %v5441_v58 = vrot.slane %v9100_v6, 5 }
 0x234   : > { %v9243_v37 = vrot.slane %v4890_v13, 5  ;;  %v9249_v2 = vsel %vm8810_vm3, %v6804_v42, %v5427_v18  ;;  %v6806_v13 = vrot.slane %v5351_v17, 9  ;;  %v6807_v42 = vrot.slane %v5352_v8, 9  ;;  %v5354_v17 = vld [vmem:[#allocation2 + $0x6c] sm:$0xe] }
 0x235   : > { %v5448_v21 = vrot.slane %v9103_v24, 5  ;;  %v5443_v6 = vrot.slane %v5441_v58, 4  ;;  %v9312_v8 = vld [vmem:[#allocation2 + $0x98] sm:$0x1]  ;;  %v9365_v3 = vld [vmem:[#allocation2 + $0xc4] sm:$0xf] }
 0x236   : > { %v9269_v46 = vsel %vm8810_vm3, %v6806_v13, %v5441_v58  ;;  %v6809_v58 = vrot.slane %v5354_v17, 9  ;;  %v5469_v17 = vrot.slane %v9165_v53, 5 }
 0x237   : > { %7385 = vmatmul.mubr.msk.bf16.gmra.mrb[20].mxu1 %vm1751_vm8, %v7893_v31  ;;  %v9196_v31 = vrot.slane %v4872_v63, 5  ;;  %v5444_v63 = vrot.slane %v9129_v51, 5  ;;  %v5451_v51 = vrot.slane %v9139_v22, 5  ;;  %v9287_v22 = vsel %vm8810_vm3, %v6807_v42, %v5448_v21 }
 0x238   : > { %7388 = vmatprep.mubr.msk.bf16.mxu1 %vm1751_vm8, %v7894_v34  ;;  %v9205_v34 = vrot.slane %v4834_v12, 5  ;;  %v9239_v12 = vrot.slane %v4887_v10, 4 }
 0x23f   : > { %7389 = vmatmul.mubr.msk.bf16.gmra.mrb[24].mxu1 %vm1751_vm8, %v7895_v44  ;;  %v5430_v44 = vrot.slane %v9082_v27, 5  ;;  %v5353_v27 = vld [vmem:[#allocation2 + $0x60] sm:$0xe] }
 0x240   : > { %7392 = vmatprep.mubr.msk.bf16.mxu1 %vm1751_vm8, %v7896_v61  ;;  %v5434_v61 = vrot.slane %v9076_v32, 5 }
 0x241   : > { %v9255_v10 = vsel %vm8810_vm3, %v5429_v59, %v5430_v44  ;;  %v6808_v59 = vrot.slane %v5353_v27, 9  ;;  %v5455_v44 = vrot.slane %v9127_v15, 5  ;;  %v5356_v27 = vld [vmem:[#allocation2 + $0x84] sm:$0xe] }
 0x242   : > { %v5436_v18 = vrot.slane %v5434_v61, 4  ;;  %v9265_v32 = vsel %vm8810_vm3, %v6805_v28, %v5434_v61  ;;  %v9283_v28 = vsel %vm8810_vm3, %v5443_v6, %v5444_v63  ;;  %v5355_v61 = vld [vmem:[#allocation2 + $0x78] sm:$0xe]  ;;  %v6811_v63 = vrot.slane %v5356_v27, 9  ;;  %v9332_v27 = vld [vmem:[#allocation2 + $0xa4] sm:$0x1] }
 0x243   : > { %v5457_v13 = vrot.slane %v5455_v44, 4  ;;  %v9302_v42 = vsel %vm8810_vm3, %v6808_v59, %v5455_v44  ;;  %v5358_v59 = vld [vmem:[#allocation2 + $0x9c] sm:$0xe]  ;;  %v9980_v23 = vcombine.low %v9269_v46, %v9283_v28 }
 0x244   : > { %v9276_v24 = vsel %vm8810_vm3, %v5436_v18, %v5437_v16  ;;  %v9296_v18 = vld [vmem:[#allocation2 + $0x8c] sm:$0x1]  ;;  %v5357_v16 = vld [vmem:[#allocation2 + $0x90] sm:$0xe]  ;;  %v6813_v25 = vrot.slane %v5358_v59, 9 }
 0x247   : > { %7393 = vmatmul.mubr.msk.bf16.gmra.mrb[28].mxu1 %vm1751_vm8, %v7897_v11  ;;  %v5450_v11 = vrot.slane %v5448_v21, 4  ;;  %v5465_v21 = vrot.slane %v9172_v29, 5  ;;  %v9317_v29 = vld [vmem:[#allocation2 + $0xa0] sm:$0xf] }
 0x248   : > { %7398 = vmatprep.mubr.msk.bf16.mxu1 %vm1751_vm8, %v9109_v50  ;;  %v5458_v50 = vrot.slane %v9168_v20, 5  ;;  %v5462_v20 = vrot.slane %v9145_v55, 5  ;;  %v5476_v55 = vrot.slane %v9218_v54, 5 }
 0x249   : > { %v9294_v15 = vsel %vm8810_vm3, %v5450_v11, %v5451_v51  ;;  %v6810_v51 = vrot.slane %v5355_v61, 9  ;;  %v5472_v11 = vrot.slane %v9207_v52, 5  ;;  %v5471_v61 = vrot.slane %v5469_v17, 4 }
 0x24a   : > { %v9308_v6 = vsel %vm8810_vm3, %v5457_v13, %v5458_v50  ;;  %v5464_v44 = vrot.slane %v5462_v20, 4  ;;  %v9323_v50 = vsel %vm8810_vm3, %v6809_v58, %v5462_v20  ;;  %v5479_v13 = vrot.slane %v9296_v18, 5 }
 0x24b   : > { %9957 = vst [vmem:[#allocation3_spill] sm:$0xff] %v9308_v6  ;;  %9958 = vst [vmem:[#allocation6_spill] sm:$0xff] %v9323_v50  ;;  %v9327_v53 = vsel %vm8810_vm3, %v6810_v51, %v5469_v17  ;;  %v5478_v43 = vrot.slane %v5476_v55, 4  ;;  %v6812_v58 = vrot.slane %v5357_v16, 9  ;;  %v5483_v20 = vrot.slane %v9231_v9, 5 }
 0x24c   : > { %9959 = vst [vmem:[#allocation4_spill] sm:$0xff] %v9327_v53  ;;  %v9336_v0 = vsel %vm8810_vm3, %v5464_v44, %v5465_v21  ;;  %v9342_v51 = vld [vmem:[#allocation2 + $0xb0] sm:$0x1]  ;;  %v9348_v17 = vsel %vm8810_vm3, %v5471_v61, %v5472_v11  ;;  %v9352_v21 = vsel %vm8810_vm3, %v6811_v63, %v5476_v55  ;;  %v5486_v16 = vrot.slane %v9312_v8, 5  ;;  %v5359_v44 = vld [vmem:[#allocation2 + $0xa8] sm:$0xe] }
 0x24d   : > { %9960 = vst [vmem:[#allocation5_spill] sm:$0xff] %v9336_v0  ;;  %9961 = vst [vmem:[#allocation7_spill] sm:$0xff] %v9348_v17  ;;  %v9361_v62 = vsel %vm8810_vm3, %v5478_v43, %v5479_v13  ;;  %v5360_v11 = vld [vmem:[#allocation2 + $0xb4] sm:$0xe]  ;;  %v9363_v61 = vld [vmem:[#allocation2 + $0xbc] sm:$0x1]  ;;  %v9371_v55 = vsel %vm8810_vm3, %v6812_v58, %v5483_v20 }
 0x24e   : > { %9962 = vst [vmem:[#allocation8_spill] sm:$0xff] %v9352_v21  ;;  %9963 = vst [vmem:[#allocation9_spill] sm:$0xff] %v9361_v62  ;;  %v5493_v17 = vrot.slane %v9332_v27, 5  ;;  %v6814_v59 = vrot.slane %v5359_v44, 9  ;;  %v5497_v13 = vrot.slane %v9319_v26, 5  ;;  %v5500_v53 = vrot.slane %v9342_v51, 5 }
 0x24f   : > { %7399 = vmatmul.mubr.msk.bf16.vlgmr.msra.gmra.mrb[0].mxu1 %vm1751_vm8, %v9137_v41  ;;  %v5485_v41 = vrot.slane %v5483_v20, 4  ;;  %9964 = vst [vmem:[#allocation10_spill] sm:$0xff] %v9371_v55  ;;  %v5361_v0 = vld [vmem:[#allocation2 + $0xc0] sm:$0xe]  ;;  %v6815_v58 = vrot.slane %v5360_v11, 9  ;;  %v5507_v6 = vrot.slane %v9363_v61, 5 }
 0x250   : > { %7431 = vmatpush3.bf16.msra.mxu1 %v9092_v56  ;;  %7402 = vmatprep.mubr.msk.bf16.mxu1 %vm1751_vm8, %v9178_v7  ;;  %v9355_v56 = vld [vmem:[#allocation2 + $0xb8] sm:$0xf]  ;;  %v5490_v7 = vrot.slane %v9317_v29, 5  ;;  %v5362_v21 = vld [vmem:[#allocation2 + $0xcc] sm:$0xe]  ;;  %v5499_v44 = vrot.slane %v5497_v13, 4 }
 0x251   : > { %v9377_v43 = vsel %vm8810_vm3, %v5485_v41, %v5486_v16  ;;  %v5504_v20 = vrot.slane %v9355_v56, 5  ;;  %v9384_v50 = vld [vmem:[#allocation2 + $0xc8] sm:$0x1]  ;;  %v9392_v16 = vsel %vm8810_vm3, %v6814_v59, %v5497_v13  ;;  %v5511_v55 = vrot.slane %v9365_v3, 5 }
 0x252   : > { %9965 = vst [vmem:[#allocation11_spill] sm:$0xff] %v9377_v43  ;;  %v5492_v62 = vrot.slane %v5490_v7, 4  ;;  %v9388_v41 = vsel %vm8810_vm3, %v6813_v25, %v5490_v7  ;;  %v6816_v43 = vrot.slane %v5361_v0, 9  ;;  %v4652_v25 = vld [vmem:[#allocation2 + $0x90] sm:$0xf]  ;;  %v9406_v59 = vsel %vm8810_vm3, %v5499_v44, %v5500_v53 }
 0x253   : > { %9966 = vst [vmem:[#allocation12_spill] sm:$0xff] %v9388_v41  ;;  %v5506_v11 = vrot.slane %v5504_v20, 4  ;;  %9968 = vst [vmem:[#allocation14_spill] sm:$0xff] %v9406_v59  ;;  %v9410_v13 = vsel %vm8810_vm3, %v6815_v58, %v5504_v20  ;;  %v9414_v0 = vld [vmem:[#allocation2 + $0xd0] sm:$0xf]  ;;  %v5513_v53 = vrot.slane %v5511_v55, 4 }
 0x254   : > { %v9397_v63 = vsel %vm8810_vm3, %v5492_v62, %v5493_v17  ;;  %9969 = vst [vmem:[#allocation15_spill] sm:$0xff] %v9410_v13  ;;  %v6817_v62 = vrot.slane %v5362_v21, 9  ;;  %v9416_v17 = vld [vmem:[#allocation2 + $0xd4] sm:$0x1]  ;;  %v5514_v44 = vrot.slane %v9384_v50, 5  ;;  %v4924_v58 = vshrl.u32 %v9231_v9, 16 }
 0x255   : > { %9967 = vst [vmem:[#allocation13_spill] sm:$0xff] %v9397_v63  ;;  %v9422_v7 = vsel %vm8810_vm3, %v5506_v11, %v5507_v6  ;;  %v5521_v20 = vrot.slane %v9416_v17, 5  ;;  %v9971_v63 = vshll.u32 %v9218_v54, 16  ;;  %v9438_v11 = vsel %vm8810_vm3, %v6816_v43, %v5511_v55  ;;  %v9984_v46 = vld [vmem:[#allocation6_spill] sm:$0xff]  ;;  %v9985_v28 = vld [vmem:[#allocation5_spill] sm:$0xff] }
 0x256   : > { %9970 = vst [vmem:[#allocation16_spill] sm:$0xff] %v9422_v7  ;;  %v9442_v59 = vsel %vm8810_vm3, %v5513_v53, %v5514_v44  ;;  %v4911_v21 = vshrl.u32 %v4652_v25, 16  ;;  %v9974_v55 = vsel %vm8126_vm7, %v9187_v19, %v9149_v57  ;;  %v4914_v53 = vshll.u32 %v4652_v25, 16  ;;  %v4655_v44 = vld [vmem:[#allocation2 + $0x9c] sm:$0xf] }
 0x257   : > { %7403 = vmatmul.mubr.msk.bf16.gmra.mrb[4].mxu1 %vm1751_vm8, %v9180_v45  ;;  %v9432_v41 = vrot.slane %v9971_v63, 5  ;;  %v9972_v45 = vshrl.u32 %v9218_v54, 16  ;;  %v6832_v7 = vcombine.low %v9438_v11, %v9442_v59  ;;  %v9973_v54 = vsel %vm8126_vm7, %v9190_v35, %v9205_v34 }
 0x258   : > { %7406 = vmatprep.mubr.msk.bf16.mxu1 %vm1751_vm8, %v9200_v40  ;;  %v5518_v40 = vrot.slane %v9414_v0, 5  ;;  %v6776_v43 = vcombine.low %v9974_v55, %v9973_v54  ;;  %v4861_v35 = vsel %vm8126_vm7, %v9233_v38, %v9216_v47  ;;  %v9975_v34 = vshll.u32 %v9231_v9, 16 }
 0x259   : > { %v4902_v6 = vrot.slane %v9972_v45, 4  ;;  %v4851_v45 = vsel %vm8126_vm7, %v9225_v14, %v9174_v60  ;;  %v4926_v57 = vrot.slane %v4924_v58, 4  ;;  %v5904_v60 = vld [vmem:[%s9912_s6] sm:$0x3]  ;;  %v9976_v47 = vor.u32 %v9198_v5, %v9196_v31 }
 0x25a   : > { %v9448_v13 = vsel %vm8810_vm3, %v6817_v62, %v5518_v40  ;;  %v5520_v63 = vrot.slane %v5518_v40, 4  ;;  %v4869_v62 = vor.u32 %v9229_v30, %v9227_v1  ;;  %v9472_v40 = vrot.slane %v9975_v34, 5  ;;  %v5903_v14 = vld [vmem:[%s9911_s5] sm:$0xf]  ;;  %7830 = vmatprep.subr.msk.bf16.mxu0 %vm476_vm0, %v5904_v60 }
 0x25b   : > { %v4880_v1 = vrot.slane %v9976_v47, 4  ;;  %v4903_v30 = vor.u32 %v4902_v6, %v9432_v41  ;;  %v5906_v38 = vsel %vm476_vm0, %v5904_v60, 0  ;;  %v9977_v25 = vshll.u32 %v9207_v52, 16 }
 0x25c   : > { %v9476_v19 = vsel %vm8810_vm3, %v5520_v63, %v5521_v20  ;;  %v4893_v20 = vor.u32 %v9243_v37, %v9239_v12  ;;  %v4906_v5 = vshll.u32 %v9296_v18, 16  ;;  %v4913_v63 = vrot.slane %v4911_v21, 4  ;;  %7465 = vmatpush3.bf16.msra.mxu0 %v5906_v38 }
 0x25d   : > { %v6833_v9 = vcombine.low %v9448_v13, %v9476_v19  ;;  %v4884_v58 = vrot.slane %v9977_v25, 5  ;;  %v4916_v6 = vrot.slane %v4914_v53, 5  ;;  %v4935_v54 = vshrl.u32 %v4655_v44, 16  ;;  %7831 = vmatprep.subr.msk.bf16.mxu0 %vm1800_vm4, %v5903_v14  ;;  %v7940_v53 = vld [vmem:[%s8028_s12 + $0x8] sm:$0xff]  }
 0x25e   : > { %v4938_v55 = vshll.u32 %v4655_v44, 16  ;;  %v6777_v52 = vcombine.low %v4851_v45, %v4861_v35  ;;  %v4870_v34 = vrot.slane %v4869_v62, 4  ;;  %v4927_v60 = vor.u32 %v4926_v57, %v9472_v40  ;;  %v7941_v35 = vld [vmem:[%s8028_s12 + $0x10] sm:$0xff]  }
 0x25f   : > { %7407 = vmatmul.mubr.msk.bf16.gmra.mrb[8].mxu1 %vm1751_vm8, %v9210_v49  ;;  %v6118_v49 = vsel %vm1800_vm4, %v5903_v14, 0  ;;  %v4885_v12 = vsel %vm8126_vm7, %v4880_v1, %v4884_v58  ;;  %v4904_v37 = vrot.slane %v4903_v30, 4  ;;  %v4944_v18 = vshll.u32 %v9317_v29, 16  ;;  %7467 = vmatmul.mubr.msk.bf16.vlgmr.msra.gmra.mrb[64].mxu0 %vm427_vm1, %v7940_v53 }
 0x260   : > { %7410 = vmatprep.mubr.msk.bf16.mxu1 %vm1751_vm8, %v6776_v43  ;;  %v4948_v21 = vshrl.u32 %v9317_v29, 16  ;;  %v4658_v43 = vld [vmem:[#allocation2 + $0xa8] sm:$0xf]  ;;  %v4908_v44 = vrot.slane %v4906_v5, 5  ;;  %v4930_v14 = vshll.u32 %v9312_v8, 16  ;;  %v4968_v45 = vshll.u32 %v9319_v26, 16  ;;  %7499 = vmatpush3.bf16.msra.mxu0 %v6118_v49 }
 0x261   : > { %v4972_v62 = vshrl.u32 %v9319_v26, 16  ;;  %7470 = vmatprep.mubr.msk.bf16.mxu0 %vm427_vm1, %v7941_v35  ;;  %v4894_v57 = vrot.slane %v4893_v20, 4  ;;  %v4917_v47 = vor.u32 %v4916_v6, %v4913_v63  ;;  %v4937_v1 = vrot.slane %v4935_v54, 4  ;;  %v4661_v54 = vld [vmem:[#allocation2 + $0xb4] sm:$0xf] }
 0x262   : > { %v4940_v30 = vrot.slane %v4938_v55, 5  ;;  %v4875_v29 = vsel %vm8126_vm7, %v4870_v34, %v9196_v31  ;;  %v4928_v38 = vrot.slane %v4927_v60, 4  ;;  %v4959_v25 = vshrl.u32 %v4658_v43, 16 }
 0x263   : > { %v4962_v58 = vshll.u32 %v4658_v43, 16  ;;  %v6778_v8 = vcombine.low %v4875_v29, %v4885_v12  ;;  %v4909_v5 = vsel %vm8126_vm7, %v4904_v37, %v4908_v44  ;;  %v9519_v26 = vrot.slane %v4944_v18, 5 }
 0x264   : > { %v4950_v49 = vrot.slane %v4948_v21, 4  ;;  %v4932_v20 = vrot.slane %v4930_v14, 5  ;;  %v9522_v63 = vrot.slane %v4968_v45, 5  ;;  %v4974_v6 = vrot.slane %v4972_v62, 4  ;;  %v4664_v14 = vld [vmem:[#allocation2 + $0xc0] sm:$0xf] }
 0x265   : > { %v4899_v31 = vsel %vm8126_vm7, %v4894_v57, %v9432_v41  ;;  %v4918_v55 = vrot.slane %v4917_v47, 4  ;;  %v4941_v34 = vor.u32 %v4940_v30, %v4937_v1  ;;  %v4954_v60 = vshll.u32 %v9332_v27, 16  ;;  %v7942_v41 = vld [vmem:[%s8028_s12 + $0x18] sm:$0xff]   ;;  %v7943_v57 = vld [vmem:[%s8028_s12 + $0x20] sm:$0xff]  }
 0x266   : > { %v6779_v12 = vcombine.low %v4899_v31, %v4909_v5  ;;  %v4961_v37 = vrot.slane %v4959_v25, 4  ;;  %v4964_v18 = vrot.slane %v4962_v58, 5  ;;  %v4951_v21 = vor.u32 %v4950_v49, %v9519_v26 }
 0x267   : > { %7411 = vmatmul.mubr.msk.bf16.gmra.mrb[12].mxu1 %vm1751_vm8, %v6777_v52  ;;  %v4933_v52 = vsel %vm8126_vm7, %v4928_v38, %v4932_v20  ;;  %v4983_v43 = vshrl.u32 %v4661_v54, 16  ;;  %v4992_v53 = vshll.u32 %v9355_v56, 16  ;;  %v4996_v44 = vshrl.u32 %v9355_v56, 16  ;;  %7471 = vmatmul.mubr.msk.bf16.gmra.mrb[68].mxu0 %vm427_vm1, %v7942_v41 }
 0x268   : > { %7414 = vmatprep.mubr.msk.bf16.mxu1 %vm1751_vm8, %v6778_v8  ;;  %v4975_v27 = vor.u32 %v4974_v6, %v9522_v63  ;;  %v4986_v45 = vshll.u32 %v4661_v54, 16  ;;  %v5016_v62 = vshll.u32 %v9365_v3, 16  ;;  %v5020_v35 = vshrl.u32 %v9365_v3, 16  ;;  %7474 = vmatprep.mubr.msk.bf16.mxu0 %vm427_vm1, %v7943_v57  ;;  %v4667_v8 = vld [vmem:[#allocation2 + $0xcc] sm:$0xf] }
 0x269   : > { %v4923_v47 = vsel %vm8126_vm7, %v4918_v55, %v9472_v40  ;;  %v4942_v1 = vrot.slane %v4941_v34, 4  ;;  %v4956_v56 = vrot.slane %v4954_v60, 5  ;;  %v4978_v30 = vshll.u32 %v9342_v51, 16 }
 0x26a   : > { %v6780_v29 = vcombine.low %v4923_v47, %v4933_v52  ;;  %v4965_v38 = vor.u32 %v4964_v18, %v4961_v37  ;;  %v5007_v25 = vshrl.u32 %v4664_v14, 16  ;;  %v5010_v58 = vshll.u32 %v4664_v14, 16 }
 0x26b   : > { %v4952_v5 = vrot.slane %v4951_v21, 4  ;;  %v4985_v49 = vrot.slane %v4983_v43, 4  ;;  %v4994_v20 = vrot.slane %v4992_v53, 5  ;;  %v4998_v3 = vrot.slane %v4996_v44, 4  ;;  %v7944_v44 = vld [vmem:[%s8028_s12 + $0x28] sm:$0xff]  }
 0x26c   : > { %v4976_v6 = vrot.slane %v4975_v27, 4  ;;  %v4988_v54 = vrot.slane %v4986_v45, 5  ;;  %v5018_v31 = vrot.slane %v5016_v62, 5  ;;  %v5022_v40 = vrot.slane %v5020_v35, 4  ;;  %v7945_v45 = vld [vmem:[%s8028_s12 + $0x30] sm:$0xff]  }
 0x26d   : > { %v5031_v55 = vshrl.u32 %v4667_v8, 16  ;;  %v5034_v51 = vshll.u32 %v4667_v8, 16  ;;  %v5040_v34 = vshll.u32 %v9414_v0, 16  ;;  %v5044_v60 = vshrl.u32 %v9414_v0, 16 }
 0x26e   : > { %v4966_v52 = vrot.slane %v4965_v38, 4  ;;  %v4980_v37 = vrot.slane %v4978_v30, 5  ;;  %v5009_v18 = vrot.slane %v5007_v25, 4  ;;  %v5012_v21 = vrot.slane %v5010_v58, 5 }
 0x26f   : > { %7415 = vmatmul.mubr.msk.bf16.gmra.mrb[16].mxu1 %vm1751_vm8, %v6779_v12  ;;  %v4947_v12 = vsel %vm8126_vm7, %v4942_v1, %v9519_v26  ;;  %v4957_v43 = vsel %vm8126_vm7, %v4952_v5, %v4956_v56  ;;  %v4999_v53 = vor.u32 %v4998_v3, %v4994_v20  ;;  %7475 = vmatmul.mubr.msk.bf16.gmra.mrb[72].mxu0 %vm427_vm1, %v7944_v44  ;;  %v5002_v0 = vshll.u32 %v9363_v61, 16  ;;  %v7948_v44 = vld [vmem:[%s8028_s12 + $0x48] sm:$0xff]  }
 0x270   : > { %7418 = vmatprep.mubr.msk.bf16.mxu1 %vm1751_vm8, %v6780_v29  ;;  %v4981_v14 = vsel %vm8126_vm7, %v4976_v6, %v4980_v37  ;;  %v4989_v41 = vor.u32 %v4988_v54, %v4985_v49  ;;  %v5023_v27 = vor.u32 %v5022_v40, %v5018_v31  ;;  %7478 = vmatprep.mubr.msk.bf16.mxu0 %vm427_vm1, %v7945_v45  ;;  %v5033_v62 = vrot.slane %v5031_v55, 4  ;;  %v7947_v55 = vld [vmem:[%s8028_s12 + $0x40] sm:$0xff]  }
 0x271   : > { %v5036_v35 = vrot.slane %v5034_v51, 5  ;;  %v5042_v26 = vrot.slane %v5040_v34, 5  ;;  %v5046_v57 = vrot.slane %v5044_v60, 4  ;;  %v6781_v47 = vcombine.low %v4947_v12, %v4957_v43  ;;  %v5347_v12 = vld [vmem:[#allocation2 + $0x18] sm:$0xe] }
 0x272   : > { %v4971_v1 = vsel %vm8126_vm7, %v4966_v52, %v9522_v63  ;;  %v5013_v56 = vor.u32 %v5012_v21, %v5009_v18  ;;  %v5026_v30 = vshll.u32 %v9384_v50, 16  ;;  %v5000_v38 = vrot.slane %v4999_v53, 4  ;;  %v7946_v50 = vld [vmem:[%s8028_s12 + $0x38] sm:$0xff]  }
 0x273   : > { %v6782_v29 = vcombine.low %v4971_v1, %v4981_v14  ;;  %v5004_v61 = vrot.slane %v5002_v0, 5  ;;  %v5024_v25 = vrot.slane %v5023_v27, 4  ;;  %v4990_v58 = vrot.slane %v4989_v41, 4  ;;  %v7949_v0 = vld [vmem:[%s8028_s12 + $0x50] sm:$0xff]  }
 0x274   : > { %v5037_v8 = vor.u32 %v5036_v35, %v5033_v62  ;;  %v5047_v5 = vor.u32 %v5046_v57, %v5042_v26  ;;  %v5050_v49 = vshll.u32 %v9416_v17, 16  ;;  %v5014_v3 = vrot.slane %v5013_v56, 4  ;;  %v7951_v57 = vld [vmem:[%s8028_s12 + $0x60] sm:$0xff]   ;;  %v7952_v56 = vld [vmem:[%s8028_s12 + $0x68] sm:$0xff]  }
 0x275   : > { %v5028_v63 = vrot.slane %v5026_v30, 5  ;;  %v5005_v6 = vsel %vm8126_vm7, %v5000_v38, %v5004_v61  ;;  %v5413_v40 = vrot.slane %v9057_v4, 5  ;;  %v4995_v17 = vsel %vm8126_vm7, %v4990_v58, %v4994_v20  ;;  %v7953_v30 = vld [vmem:[%s8028_s12 + $0x70] sm:$0xff]   ;;  %v7954_v38 = vld [vmem:[%s8028_s12 + $0x78] sm:$0xff]  }
 0x276   : > { %v5038_v51 = vrot.slane %v5037_v8, 4  ;;  %v5048_v34 = vrot.slane %v5047_v5, 4  ;;  %v5052_v60 = vrot.slane %v5050_v49, 5  ;;  %v6783_v52 = vcombine.low %v4995_v17, %v5005_v6  ;;  %v9987_v5 = vld [vmem:[#allocation4_spill] sm:$0xff]  ;;  %v9988_v49 = vld [vmem:[#allocation7_spill] sm:$0xff] }
 0x277   : > { %7419 = vmatmul.mubr.msk.bf16.gmra.mrb[20].mxu1 %vm1751_vm8, %v6781_v47  ;;  %7479 = vmatmul.mubr.msk.bf16.gmra.mrb[76].mxu0 %vm427_vm1, %v7946_v50  ;;  %v5029_v54 = vsel %vm8126_vm7, %v5024_v25, %v5028_v63  ;;  %v5019_v37 = vsel %vm8126_vm7, %v5014_v3, %v5018_v31  ;;  %v5415_v21 = vrot.slane %v5413_v40, 4  ;;  %v5416_v43 = vrot.slane %v9067_v48, 5  ;;  %v9990_v6 = vld [vmem:[#allocation8_spill] sm:$0xff]  ;;  %v9991_v50 = vld [vmem:[#allocation9_spill] sm:$0xff] }
 0x278   : > { %7422 = vmatprep.mubr.msk.bf16.mxu1 %vm1751_vm8, %v6782_v29  ;;  %7482 = vmatprep.mubr.msk.bf16.mxu0 %vm427_vm1, %v7947_v55  ;;  %v6784_v18 = vcombine.low %v5019_v37, %v5029_v54  ;;  %v5043_v4 = vsel %vm8126_vm7, %v5038_v51, %v5042_v26  ;;  %v5053_v20 = vsel %vm8126_vm7, %v5048_v34, %v5052_v60  ;;  %v5420_v53 = vrot.slane %v9063_v36, 5  ;;  %v5348_v36 = vld [vmem:[#allocation2 + $0x24] sm:$0xe]  ;;  %v7950_v26 = vld [vmem:[%s8028_s12 + $0x58] sm:$0xff]  }
 0x279   : > { %v6785_v31 = vcombine.low %v5043_v4, %v5053_v20  ;;  %v6802_v14 = vrot.slane %v5347_v12, 9  ;;  %v5417_v41 = vsel %vm8810_vm3, %v5415_v21, %v5416_v43  ;;  %v5423_v45 = vrot.slane %v9078_v33, 5  ;;  %v9994_v55 = vld [vmem:[#allocation11_spill] sm:$0xff]  ;;  %v9996_v37 = vld [vmem:[#allocation12_spill] sm:$0xff]  ;;  %v9999_v4 = vld [vmem:[#allocation14_spill] sm:$0xff] }
 0x27a   : > { %v5422_v48 = vrot.slane %v5420_v53, 4  ;;  %v6803_v62 = vrot.slane %v5348_v36, 9  ;;  %v9978_v33 = vcombine.low %v9249_v2, %v9255_v10  ;;  %v9979_v29 = vcombine.low %v9265_v32, %v9276_v24  ;;  %v9982_v10 = vld [vmem:[#allocation3_spill] sm:$0xff] }
 0x27b   : > { %v5414_v39 = vsel %vm8810_vm3, %v6802_v14, %v5413_v40  ;;  %v9981_v2 = vcombine.low %v9287_v22, %v9294_v15  ;;  %v9983_v61 = vcombine.low %v9302_v42, %v9982_v10  ;;  %v9986_v8 = vcombine.low %v9984_v46, %v9985_v28  ;;  %v9993_v40 = vld [vmem:[#allocation10_spill] sm:$0xff]  ;;  %v10002_v14 = vld [vmem:[#allocation16_spill] sm:$0xff] }
 0x27c   : > { %v6818_v27 = vcombine.low %v5414_v39, %v5417_v41  ;;  %v5424_v35 = vsel %vm8810_vm3, %v5422_v48, %v5423_v45  ;;  %v5421_v47 = vsel %vm8810_vm3, %v6803_v62, %v5420_v53  ;;  %v9989_v3 = vcombine.low %v9987_v5, %v9988_v49 }
 0x27d   : > { %v6819_v1 = vcombine.low %v5421_v47, %v5424_v35  ;;  %v9992_v54 = vcombine.low %v9990_v6, %v9991_v50  ;;  %v9995_v17 = vcombine.low %v9993_v40, %v9994_v55  ;;  %v10000_v20 = vcombine.low %v9392_v16, %v9999_v4  ;;  %v9722_v47 = vld [vmem:[%s9910_s4] ss:$0 sm:$0xff] }
 0x27e   : > { %vm6352_vm0 = vcmask 130048  }
 0x27f   : > { %7423 = vmatmul.mubr.msk.bf16.gmra.mrb[24].mxu1 %vm1751_vm8, %v6783_v52  ;;  %7483 = vmatmul.mubr.msk.bf16.gmra.mrb[80].mxu0 %vm427_vm1, %v7948_v44 }
 0x280   : > { %7426 = vmatprep.mubr.msk.bf16.mxu1 %vm1751_vm8, %v6784_v18  ;;  %7486 = vmatprep.mubr.msk.bf16.mxu0 %vm427_vm1, %v7949_v0  ;;  %v9997_v18 = vld [vmem:[#allocation13_spill] sm:$0xff] }
 0x281   : > { %v9998_v21 = vcombine.low %v9996_v37, %v9997_v18 }
 0x287   : > { %7427 = vmatmul.mubr.msk.bf16.gmra.mrb[28].mxu1 %vm1751_vm8, %v6785_v31  ;;  %7487 = vmatmul.mubr.msk.bf16.gmra.mrb[84].mxu0 %vm427_vm1, %v7950_v26  ;;  %v10001_v31 = vld [vmem:[#allocation15_spill] sm:$0xff] }
 0x288   : > { %7432 = vmatprep.mubr.msk.bf16.mxu1 %vm1751_vm8, %v6818_v27  ;;  %7490 = vmatprep.mubr.msk.bf16.mxu0 %vm427_vm1, %v7951_v57  ;;  %v10003_v41 = vcombine.low %v10001_v31, %v10002_v14 }
 0x28f   : > { %7433 = vmatmul.mubr.msk.bf16.vlgmr.msra.gmra.mrb[0].mxu1 %vm1751_vm8, %v6819_v1  ;;  %7491 = vmatmul.mubr.msk.bf16.gmra.mrb[88].mxu0 %vm427_vm1, %v7952_v56 }
 0x290   : > { %7436 = vmatprep.mubr.msk.bf16.mxu1 %vm1751_vm8, %v9978_v33  ;;  %7494 = vmatprep.mubr.msk.bf16.mxu0 %vm427_vm1, %v7953_v30 }
 0x297   : > { %7437 = vmatmul.mubr.msk.bf16.gmra.mrb[4].mxu1 %vm1751_vm8, %v9979_v29  ;;  %7495 = vmatmul.mubr.msk.bf16.gmra.mrb[92].mxu0 %vm427_vm1, %v7954_v38 }
 0x298   : > { %7440 = vmatprep.mubr.msk.bf16.mxu1 %vm1751_vm8, %v9980_v23 }
 0x29f   : > { %7441 = vmatmul.mubr.msk.bf16.gmra.mrb[8].mxu1 %vm1751_vm8, %v9981_v2 }
 0x2a0   : > { %7444 = vmatprep.mubr.msk.bf16.mxu1 %vm1751_vm8, %v9983_v61 }
 0x2a2   : > { %v7230_v32 = vpop.f32.mrb[32].mxu0 }
 0x2a3   : > { %v2554_v24 = vpop.f32.mrb[33].mxu0 }
 0x2a4   : > { %v7231_v25 = vpop.f32.mrb[34].mxu0 }
 0x2a5   : > { %v2557_v58 = vpop.f32.mrb[35].mxu0 }
 0x2a7   : > { %7445 = vmatmul.mubr.msk.bf16.gmra.mrb[12].mxu1 %vm1751_vm8, %v9986_v8 }
 0x2a8   : > { %7448 = vmatprep.mubr.msk.bf16.mxu1 %vm1751_vm8, %v9989_v3 }
 0x2aa   : > { %v7234_v22 = vpop.f32.mrb[36].mxu0 }
 0x2ab   : > { %v2570_v15 = vpop.f32.mrb[37].mxu0 }
 0x2ac   : > { %v7235_v63 = vpop.f32.mrb[38].mxu0 }
 0x2ad   : > { %v2573_v42 = vpop.f32.mrb[39].mxu0 }
 0x2af   : > { %7449 = vmatmul.mubr.msk.bf16.gmra.mrb[16].mxu1 %vm1751_vm8, %v9992_v54 }
 0x2b0   : > { %7452 = vmatprep.mubr.msk.bf16.mxu1 %vm1751_vm8, %v9995_v17 }
 0x2b2   : > { %v9651_v51 = vpop.f32.mrb[40].mxu0 }
 0x2b3   : > { %v9653_v34 = vpop.f32.mrb[41].mxu0 }
 0x2b4   : > { %v9655_v60 = vpop.f32.mrb[42].mxu0 }
 0x2b5   : > { %v9657_v52 = vpop.f32.mrb[43].mxu0 }
 0x2b7   : > { %7453 = vmatmul.mubr.msk.bf16.gmra.mrb[20].mxu1 %vm1751_vm8, %v9998_v21 }
 0x2b8   : > { %7456 = vmatprep.mubr.msk.bf16.mxu1 %vm1751_vm8, %v10000_v20 }
 0x2ba   : > { %v9667_v12 = vpop.f32.mrb[44].mxu0 }
 0x2bb   : > { %v9669_v43 = vpop.f32.mrb[45].mxu0 }
 0x2bc   : > { %v9671_v53 = vpop.f32.mrb[46].mxu0 }
 0x2bd   : > { %v9673_v44 = vpop.f32.mrb[47].mxu0 }
 0x2bf   : > { %7457 = vmatmul.mubr.msk.bf16.gmra.mrb[24].mxu1 %vm1751_vm8, %v10003_v41 }
 0x2c0   : > { %7460 = vmatprep.mubr.msk.bf16.mxu1 %vm1751_vm8, %v6832_v7 }
 0x2c2   : > { %v9683_v16 = vpop.f32.mrb[48].mxu0 }
 0x2c3   : > { %v9685_v0 = vpop.f32.mrb[49].mxu0 }
 0x2c4   : > { %v9687_v39 = vpop.f32.mrb[50].mxu0 }
 0x2c5   : > { %v9689_v27 = vpop.f32.mrb[51].mxu0 }
 0x2c7   : > { %7461 = vmatmul.mubr.msk.bf16.gmra.mrb[28].mxu1 %vm1751_vm8, %v6833_v9 }
 0x2ca   : > { %v9695_v48 = vpop.f32.mrb[52].mxu0 }
 0x2cb   : > { %v9697_v36 = vpop.f32.mrb[53].mxu0 }
 0x2cc   : > { %v9699_v59 = vpop.f32.mrb[54].mxu0 }
 0x2cd   : > { %v9701_v7 = vpop.f32.mrb[55].mxu0 }
 0x2d2   : > { %v9703_v11 = vpop.f32.mrb[56].mxu0 }
 0x2d3   : > { %v9705_v45 = vpop.f32.mrb[57].mxu0 }
 0x2d4   : > { %v9707_v62 = vpop.f32.mrb[58].mxu0 }
 0x2d5   : > { %v9709_v35 = vpop.f32.mrb[59].mxu0 }
 0x2da   : > { %v9711_v26 = vpop.f32.mrb[60].mxu0 }
 0x2db   : > { %v9713_v13 = vpop.f32.mrb[61].mxu0 }
 0x2dc   : > { %v9715_v19 = vpop.f32.mrb[62].mxu0 }
 0x2dd   : > { %v9717_v9 = vpop.f32.mrb[63].mxu0 }
 0x362   : > { %v7434_v57 = vpop.f32.mrb[0].mxu1 }
 0x363   : > { %v7532_v1 = vadd.f32 %v7434_v57, %v7230_v32  ;;  %v5657_v33 = vpop.f32.mrb[1].mxu1 }
 0x364   : > { %v7533_v56 = vadd.f32 %v5657_v33, %v2554_v24  ;;  %v7435_v30 = vpop.f32.mrb[2].mxu1 }
 0x365   : > { %v5825_v29 = vadd.f32 %v7532_v1, %v9722_v47  ;;  %v7534_v23 = vadd.f32 %v7435_v30, %v7231_v25  ;;  %v5660_v38 = vpop.f32.mrb[3].mxu1 }
 0x366   : > { %v5823_v2 = vadd.f32 %v7533_v56, %v9722_v47  ;;  %v7535_v10 = vadd.f32 %v5660_v38, %v2557_v58 }
 0x367   : > { %v5826_v61 = vadd.f32 %v7534_v23, %v9722_v47  ;;  %v5857_v28 = vmax.f32 %v5825_v29, 0.0 }
 0x368   : > { %v5824_v46 = vadd.f32 %v7535_v10, %v9722_v47  ;;  %v5855_v5 = vmax.f32 %v5823_v2, 0.0 }
 0x369   : > { %v5858_v8 = vmax.f32 %v5826_v61, 0.0 }
 0x36a   : > { %v5856_v49 = vmax.f32 %v5824_v46, 0.0  ;;  %v7438_v3 = vpop.f32.mrb[4].mxu1 }
 0x36b   : > { %v5888_v32 = vpack.c.bf16 %v5858_v8, %v5857_v28  ;;  %v7536_v6 = vadd.f32 %v7438_v3, %v7234_v22  ;;  %v5673_v24 = vpop.f32.mrb[5].mxu1 }
 0x36c   : > { %v5887_v50 = vpack.c.bf16 %v5856_v49, %v5855_v5  ;;  %v7537_v54 = vadd.f32 %v5673_v24, %v2570_v15  ;;  %v7439_v40 = vpop.f32.mrb[6].mxu1 }
 0x36d   : > { %v5829_v25 = vadd.f32 %v7536_v6, %v9722_v47  ;;  %v7538_v55 = vadd.f32 %v7439_v40, %v7235_v63  ;;  %v5676_v17 = vpop.f32.mrb[7].mxu1 }
 0x36e   : > { %v5827_v58 = vadd.f32 %v7537_v54, %v9722_v47  ;;  %v7539_v37 = vadd.f32 %v5676_v17, %v2573_v42  ;;  %7500 = vmatprep.mubr.msk.bf16.mxu0 %vm1751_vm8, %v5887_v50 }
 0x36f   : > { %v5830_v18 = vadd.f32 %v7538_v55, %v9722_v47  ;;  %7501 = vmatmul.mubr.msk.bf16.vlgmr.msra.gmra.mrb[64].mxu0 %vm1751_vm8, %v5888_v32  ;;  %v5861_v22 = vmax.f32 %v5829_v25, 0.0 }
 0x370   : > { %v5828_v21 = vadd.f32 %v7539_v37, %v9722_v47  ;;  %v5859_v20 = vmax.f32 %v5827_v58, 0.0 }
 0x371   : > { %v5862_v4 = vmax.f32 %v5830_v18, 0.0 }
 0x372   : > { %v5860_v15 = vmax.f32 %v5828_v21, 0.0  ;;  %v7442_v31 = vpop.f32.mrb[8].mxu1 }
 0x373   : > { %v5890_v14 = vpack.c.bf16 %v5862_v4, %v5861_v22  ;;  %v7540_v63 = vadd.f32 %v7442_v31, %v9651_v51  ;;  %v5689_v41 = vpop.f32.mrb[9].mxu1 }
 0x374   : > { %v5889_v57 = vpack.c.bf16 %v5860_v15, %v5859_v20  ;;  %v7541_v42 = vadd.f32 %v5689_v41, %v9653_v34  ;;  %v7443_v1 = vpop.f32.mrb[10].mxu1 }
 0x375   : > { %v5833_v33 = vadd.f32 %v7540_v63, %v9722_v47  ;;  %v7542_v56 = vadd.f32 %v7443_v1, %v9655_v60  ;;  %v5692_v30 = vpop.f32.mrb[11].mxu1 }
 0x376   : > { %v5831_v29 = vadd.f32 %v7541_v42, %v9722_v47  ;;  %v7543_v23 = vadd.f32 %v5692_v30, %v9657_v52  ;;  %7504 = vmatprep.mubr.msk.bf16.mxu0 %vm1751_vm8, %v5889_v57 }
 0x377   : > { %v5834_v38 = vadd.f32 %v7542_v56, %v9722_v47  ;;  %7505 = vmatmul.mubr.msk.bf16.gmra.mrb[68].mxu0 %vm1751_vm8, %v5890_v14  ;;  %v5865_v2 = vmax.f32 %v5833_v33, 0.0 }
 0x378   : > { %v5832_v51 = vadd.f32 %v7543_v23, %v9722_v47  ;;  %v5863_v10 = vmax.f32 %v5831_v29, 0.0 }
 0x379   : > { %v5866_v34 = vmax.f32 %v5834_v38, 0.0 }
 0x37a   : > { %v5864_v61 = vmax.f32 %v5832_v51, 0.0  ;;  %v7446_v46 = vpop.f32.mrb[12].mxu1 }
 0x37b   : > { %v5892_v28 = vpack.c.bf16 %v5866_v34, %v5865_v2  ;;  %v7544_v60 = vadd.f32 %v7446_v46, %v9667_v12  ;;  %v5705_v8 = vpop.f32.mrb[13].mxu1 }
 0x37c   : > { %v5891_v5 = vpack.c.bf16 %v5864_v61, %v5863_v10  ;;  %v7545_v52 = vadd.f32 %v5705_v8, %v9669_v43  ;;  %v7447_v49 = vpop.f32.mrb[14].mxu1 }
 0x37d   : > { %v5837_v3 = vadd.f32 %v7544_v60, %v9722_v47  ;;  %v7546_v32 = vadd.f32 %v7447_v49, %v9671_v53  ;;  %v5708_v6 = vpop.f32.mrb[15].mxu1 }
 0x37e   : > { %v5835_v24 = vadd.f32 %v7545_v52, %v9722_v47  ;;  %v7547_v50 = vadd.f32 %v5708_v6, %v9673_v44  ;;  %7508 = vmatprep.mubr.msk.bf16.mxu0 %vm1751_vm8, %v5891_v5 }
 0x37f   : > { %v5838_v54 = vadd.f32 %v7546_v32, %v9722_v47  ;;  %7509 = vmatmul.mubr.msk.bf16.gmra.mrb[72].mxu0 %vm1751_vm8, %v5892_v28  ;;  %v5869_v40 = vmax.f32 %v5837_v3, 0.0 }
 0x380   : > { %v5836_v12 = vadd.f32 %v7547_v50, %v9722_v47  ;;  %v5867_v25 = vmax.f32 %v5835_v24, 0.0 }
 0x381   : > { %v5870_v43 = vmax.f32 %v5838_v54, 0.0 }
 0x382   : > { %v5868_v55 = vmax.f32 %v5836_v12, 0.0  ;;  %v7450_v17 = vpop.f32.mrb[16].mxu1 }
 0x383   : > { %v5894_v58 = vpack.c.bf16 %v5870_v43, %v5869_v40  ;;  %v7548_v53 = vadd.f32 %v7450_v17, %v9683_v16  ;;  %v5721_v37 = vpop.f32.mrb[17].mxu1 }
 0x384   : > { %v5893_v18 = vpack.c.bf16 %v5868_v55, %v5867_v25  ;;  %v7549_v44 = vadd.f32 %v5721_v37, %v9685_v0  ;;  %v7451_v21 = vpop.f32.mrb[18].mxu1 }
 0x385   : > { %v5841_v22 = vadd.f32 %v7548_v53, %v9722_v47  ;;  %v7550_v4 = vadd.f32 %v7451_v21, %v9687_v39  ;;  %v5724_v20 = vpop.f32.mrb[19].mxu1 }
 0x386   : > { %v5839_v15 = vadd.f32 %v7549_v44, %v9722_v47  ;;  %v7551_v31 = vadd.f32 %v5724_v20, %v9689_v27  ;;  %7512 = vmatprep.mubr.msk.bf16.mxu0 %vm1751_vm8, %v5893_v18 }
 0x387   : > { %v5842_v14 = vadd.f32 %v7550_v4, %v9722_v47  ;;  %7513 = vmatmul.mubr.msk.bf16.gmra.mrb[76].mxu0 %vm1751_vm8, %v5894_v58  ;;  %v5873_v63 = vmax.f32 %v5841_v22, 0.0 }
 0x388   : > { %v5840_v16 = vadd.f32 %v7551_v31, %v9722_v47  ;;  %v5871_v41 = vmax.f32 %v5839_v15, 0.0 }
 0x389   : > { %v5874_v0 = vmax.f32 %v5842_v14, 0.0 }
 0x38a   : > { %v5872_v57 = vmax.f32 %v5840_v16, 0.0  ;;  %v7454_v42 = vpop.f32.mrb[20].mxu1 }
 0x38b   : > { %v5896_v1 = vpack.c.bf16 %v5874_v0, %v5873_v63  ;;  %v7552_v39 = vadd.f32 %v7454_v42, %v9695_v48  ;;  %v5737_v33 = vpop.f32.mrb[21].mxu1 }
 0x38c   : > { %v5895_v56 = vpack.c.bf16 %v5872_v57, %v5871_v41  ;;  %v7553_v27 = vadd.f32 %v5737_v33, %v9697_v36  ;;  %v7455_v30 = vpop.f32.mrb[22].mxu1 }
 0x38d   : > { %v5845_v29 = vadd.f32 %v7552_v39, %v9722_v47  ;;  %v7554_v23 = vadd.f32 %v7455_v30, %v9699_v59  ;;  %v5740_v38 = vpop.f32.mrb[23].mxu1 }
 0x38e   : > { %v5843_v51 = vadd.f32 %v7553_v27, %v9722_v47  ;;  %v7555_v2 = vadd.f32 %v5740_v38, %v9701_v7  ;;  %7516 = vmatprep.mubr.msk.bf16.mxu0 %vm1751_vm8, %v5895_v56 }
 0x38f   : > { %v5846_v34 = vadd.f32 %v7554_v23, %v9722_v47  ;;  %7517 = vmatmul.mubr.msk.bf16.gmra.mrb[80].mxu0 %vm1751_vm8, %v5896_v1  ;;  %v5877_v10 = vmax.f32 %v5845_v29, 0.0 }
 0x390   : > { %v5844_v48 = vadd.f32 %v7555_v2, %v9722_v47  ;;  %v5875_v61 = vmax.f32 %v5843_v51, 0.0 }
 0x391   : > { %v5878_v36 = vmax.f32 %v5846_v34, 0.0 }
 0x392   : > { %v5876_v46 = vmax.f32 %v5844_v48, 0.0  ;;  %v7458_v28 = vpop.f32.mrb[24].mxu1 }
 0x393   : > { %v5898_v60 = vpack.c.bf16 %v5878_v36, %v5877_v10  ;;  %v7556_v59 = vadd.f32 %v7458_v28, %v9703_v11  ;;  %v5753_v8 = vpop.f32.mrb[25].mxu1 }
 0x394   : > { %v5897_v5 = vpack.c.bf16 %v5876_v46, %v5875_v61  ;;  %v7557_v7 = vadd.f32 %v5753_v8, %v9705_v45  ;;  %v7459_v52 = vpop.f32.mrb[26].mxu1 }
 0x395   : > { %v5849_v49 = vadd.f32 %v7556_v59, %v9722_v47  ;;  %v7558_v3 = vadd.f32 %v7459_v52, %v9707_v62  ;;  %v5756_v32 = vpop.f32.mrb[27].mxu1 }
 0x396   : > { %v5847_v6 = vadd.f32 %v7557_v7, %v9722_v47  ;;  %v7559_v24 = vadd.f32 %v5756_v32, %v9709_v35  ;;  %7520 = vmatprep.mubr.msk.bf16.mxu0 %vm1751_vm8, %v5897_v5 }
 0x397   : > { %v5850_v50 = vadd.f32 %v7558_v3, %v9722_v47  ;;  %7521 = vmatmul.mubr.msk.bf16.gmra.mrb[84].mxu0 %vm1751_vm8, %v5898_v60  ;;  %v5881_v54 = vmax.f32 %v5849_v49, 0.0 }
 0x398   : > { %v5848_v11 = vadd.f32 %v7559_v24, %v9722_v47  ;;  %v5879_v12 = vmax.f32 %v5847_v6, 0.0 }
 0x399   : > { %v5882_v45 = vmax.f32 %v5850_v50, 0.0 }
 0x39a   : > { %v5880_v40 = vmax.f32 %v5848_v11, 0.0  ;;  %v7462_v43 = vpop.f32.mrb[28].mxu1 }
 0x39b   : > { %v5900_v25 = vpack.c.bf16 %v5882_v45, %v5881_v54  ;;  %v7560_v62 = vadd.f32 %v7462_v43, %v9711_v26  ;;  %v5769_v55 = vpop.f32.mrb[29].mxu1 }
 0x39c   : > { %v5899_v17 = vpack.c.bf16 %v5880_v40, %v5879_v12  ;;  %v7561_v35 = vadd.f32 %v5769_v55, %v9713_v13  ;;  %v7463_v58 = vpop.f32.mrb[30].mxu1 }
 0x39d   : > { %v5853_v53 = vadd.f32 %v7560_v62, %v9722_v47  ;;  %v7562_v37 = vadd.f32 %v7463_v58, %v9715_v19  ;;  %v5772_v18 = vpop.f32.mrb[31].mxu1 }
 0x39e   : > { %v5851_v44 = vadd.f32 %v7561_v35, %v9722_v47  ;;  %v7563_v21 = vadd.f32 %v5772_v18, %v9717_v9  ;;  %7524 = vmatprep.mubr.msk.bf16.mxu0 %vm1751_vm8, %v5899_v17  ;;  %v9799_v9 = vld [vmem:[%s9913_s7] ss:$0 sm:$0xff] }
 0x39f   : > { %v5854_v22 = vadd.f32 %v7562_v37, %v9722_v47  ;;  %7525 = vmatmul.mubr.msk.bf16.gmra.mrb[88].mxu0 %vm1751_vm8, %v5900_v25  ;;  %v5885_v13 = vmax.f32 %v5853_v53, 0.0 }
 0x3a0   : > { %v5852_v26 = vadd.f32 %v7563_v21, %v9722_v47  ;;  %v5883_v20 = vmax.f32 %v5851_v44, 0.0 }
 0x3a1   : > { %v5886_v4 = vmax.f32 %v5854_v22, 0.0 }
 0x3a2   : > { %v5884_v15 = vmax.f32 %v5852_v26, 0.0 }
 0x3a3   : > { %v5902_v31 = vpack.c.bf16 %v5886_v4, %v5885_v13 }
 0x3a4   : > { %v5901_v19 = vpack.c.bf16 %v5884_v15, %v5883_v20 }
 0x3a6   : > { %7528 = vmatprep.mubr.msk.bf16.mxu0 %vm1751_vm8, %v5901_v19 }
 0x3a7   : > { %7529 = vmatmul.mubr.msk.bf16.gmra.mrb[92].mxu0 %vm1751_vm8, %v5902_v31 }
 0x442   : > { %v7502_v14 = vpop.f32.mrb[64].mxu0 }
 0x443   : > { %v6290_v16 = vadd.f32 %v7502_v14, %v9799_v9  ;;  %v6154_v47 = vpop.f32.mrb[65].mxu0 }
 0x444   : > { %v6288_v63 = vadd.f32 %v9799_v9, %v6154_v47  ;;  %v7503_v0 = vpop.f32.mrb[66].mxu0 }
 0x445   : > { %v6322_v41 = vmax.f32 %v6290_v16, 0.0  ;;  %v6291_v57 = vadd.f32 %v7503_v0, %v9799_v9  ;;  %v6157_v42 = vpop.f32.mrb[67].mxu0 }
 0x446   : > { %v6320_v1 = vmax.f32 %v6288_v63, 0.0  ;;  %v6289_v39 = vadd.f32 %v9799_v9, %v6157_v42 }
 0x447   : > { %6355 = vst.msk [vmem:[%s9806_s10 + $0x10] sm:$0xff] %vm6352_vm0, %v6322_v41  ;;  %v6323_v33 = vmax.f32 %v6291_v57, 0.0 }
 0x448   : > { %6353 = vst.msk [vmem:[%s9806_s10] sm:$0xff] %vm6352_vm0, %v6320_v1  ;;  %v6321_v56 = vmax.f32 %v6289_v39, 0.0 }
 0x449   : > { %6356 = vst.msk [vmem:[%s9806_s10 + $0x18] sm:$0xff] %vm6352_vm0, %v6323_v33 }
 0x44a   : > { %6354 = vst.msk [vmem:[%s9806_s10 + $0x8] sm:$0xff] %vm6352_vm0, %v6321_v56  ;;  %v7506_v27 = vpop.f32.mrb[68].mxu0 }
 0x44b   : > { %v6294_v30 = vadd.f32 %v7506_v27, %v9799_v9  ;;  %v6170_v29 = vpop.f32.mrb[69].mxu0 }
 0x44c   : > { %v6292_v23 = vadd.f32 %v9799_v9, %v6170_v29  ;;  %v7507_v38 = vpop.f32.mrb[70].mxu0 }
 0x44d   : > { %v6326_v51 = vmax.f32 %v6294_v30, 0.0  ;;  %v6295_v2 = vadd.f32 %v7507_v38, %v9799_v9  ;;  %v6173_v34 = vpop.f32.mrb[71].mxu0 }
 0x44e   : > { %v6324_v48 = vmax.f32 %v6292_v23, 0.0  ;;  %v6293_v10 = vadd.f32 %v9799_v9, %v6173_v34 }
 0x44f   : > { %6359 = vst.msk [vmem:[%s9806_s10 + $0x30] sm:$0xff] %vm6352_vm0, %v6326_v51  ;;  %v6327_v36 = vmax.f32 %v6295_v2, 0.0 }
 0x450   : > { %6357 = vst.msk [vmem:[%s9806_s10 + $0x20] sm:$0xff] %vm6352_vm0, %v6324_v48  ;;  %v6325_v61 = vmax.f32 %v6293_v10, 0.0 }
 0x451   : > { %6360 = vst.msk [vmem:[%s9806_s10 + $0x38] sm:$0xff] %vm6352_vm0, %v6327_v36 }
 0x452   : > { %6358 = vst.msk [vmem:[%s9806_s10 + $0x28] sm:$0xff] %vm6352_vm0, %v6325_v61  ;;  %v7510_v46 = vpop.f32.mrb[72].mxu0 }
 0x453   : > { %v6298_v28 = vadd.f32 %v7510_v46, %v9799_v9  ;;  %v6186_v60 = vpop.f32.mrb[73].mxu0 }
 0x454   : > { %v6296_v59 = vadd.f32 %v9799_v9, %v6186_v60  ;;  %v7511_v8 = vpop.f32.mrb[74].mxu0 }
 0x455   : > { %v6330_v5 = vmax.f32 %v6298_v28, 0.0  ;;  %v6299_v7 = vadd.f32 %v7511_v8, %v9799_v9  ;;  %v6189_v52 = vpop.f32.mrb[75].mxu0 }
 0x456   : > { %v6328_v49 = vmax.f32 %v6296_v59, 0.0  ;;  %v6297_v3 = vadd.f32 %v9799_v9, %v6189_v52 }
 0x457   : > { %6363 = vst.msk [vmem:[%s9806_s10 + $0x50] sm:$0xff] %vm6352_vm0, %v6330_v5  ;;  %v6331_v32 = vmax.f32 %v6299_v7, 0.0 }
 0x458   : > { %6361 = vst.msk [vmem:[%s9806_s10 + $0x40] sm:$0xff] %vm6352_vm0, %v6328_v49  ;;  %v6329_v6 = vmax.f32 %v6297_v3, 0.0 }
 0x459   : > { %6364 = vst.msk [vmem:[%s9806_s10 + $0x58] sm:$0xff] %vm6352_vm0, %v6331_v32 }
 0x45a   : > { %6362 = vst.msk [vmem:[%s9806_s10 + $0x48] sm:$0xff] %vm6352_vm0, %v6329_v6  ;;  %v7514_v24 = vpop.f32.mrb[76].mxu0 }
 0x45b   : > { %v6302_v50 = vadd.f32 %v7514_v24, %v9799_v9  ;;  %v6202_v11 = vpop.f32.mrb[77].mxu0 }
 0x45c   : > { %v6300_v54 = vadd.f32 %v9799_v9, %v6202_v11  ;;  %v7515_v45 = vpop.f32.mrb[78].mxu0 }
 0x45d   : > { %v6334_v12 = vmax.f32 %v6302_v50, 0.0  ;;  %v6303_v40 = vadd.f32 %v7515_v45, %v9799_v9  ;;  %v6205_v43 = vpop.f32.mrb[79].mxu0 }
 0x45e   : > { %v6332_v25 = vmax.f32 %v6300_v54, 0.0  ;;  %v6301_v62 = vadd.f32 %v9799_v9, %v6205_v43 }
 0x45f   : > { %6367 = vst.msk [vmem:[%s9806_s10 + $0x70] sm:$0xff] %vm6352_vm0, %v6334_v12  ;;  %v6335_v55 = vmax.f32 %v6303_v40, 0.0 }
 0x460   : > { %6365 = vst.msk [vmem:[%s9806_s10 + $0x60] sm:$0xff] %vm6352_vm0, %v6332_v25  ;;  %v6333_v17 = vmax.f32 %v6301_v62, 0.0 }
 0x461   : > { %6368 = vst.msk [vmem:[%s9806_s10 + $0x78] sm:$0xff] %vm6352_vm0, %v6335_v55 }
 0x462   : > { %6366 = vst.msk [vmem:[%s9806_s10 + $0x68] sm:$0xff] %vm6352_vm0, %v6333_v17  ;;  %v7518_v35 = vpop.f32.mrb[80].mxu0 }
 0x463   : > { %v6306_v58 = vadd.f32 %v7518_v35, %v9799_v9  ;;  %v6218_v53 = vpop.f32.mrb[81].mxu0 }
 0x464   : > { %v6304_v37 = vadd.f32 %v9799_v9, %v6218_v53  ;;  %v7519_v18 = vpop.f32.mrb[82].mxu0 }
 0x465   : > { %v6338_v44 = vmax.f32 %v6306_v58, 0.0  ;;  %v6307_v21 = vadd.f32 %v7519_v18, %v9799_v9  ;;  %v6221_v22 = vpop.f32.mrb[83].mxu0 }
 0x466   : > { %v6336_v26 = vmax.f32 %v6304_v37, 0.0  ;;  %v6305_v13 = vadd.f32 %v9799_v9, %v6221_v22 }
 0x467   : > { %6371 = vst.msk [vmem:[%s9806_s10 + $0x90] sm:$0xff] %vm6352_vm0, %v6338_v44  ;;  %v6339_v4 = vmax.f32 %v6307_v21, 0.0 }
 0x468   : > { %6369 = vst.msk [vmem:[%s9806_s10 + $0x80] sm:$0xff] %vm6352_vm0, %v6336_v26  ;;  %v6337_v20 = vmax.f32 %v6305_v13, 0.0 }
 0x469   : > { %6372 = vst.msk [vmem:[%s9806_s10 + $0x98] sm:$0xff] %vm6352_vm0, %v6339_v4 }
 0x46a   : > { %6370 = vst.msk [vmem:[%s9806_s10 + $0x88] sm:$0xff] %vm6352_vm0, %v6337_v20  ;;  %v7522_v15 = vpop.f32.mrb[84].mxu0 }
 0x46b   : > { %v6310_v31 = vadd.f32 %v7522_v15, %v9799_v9  ;;  %v6234_v19 = vpop.f32.mrb[85].mxu0 }
 0x46c   : > { %v6308_v14 = vadd.f32 %v9799_v9, %v6234_v19  ;;  %v7523_v16 = vpop.f32.mrb[86].mxu0 }
 0x46d   : > { %v6342_v47 = vmax.f32 %v6310_v31, 0.0  ;;  %v6311_v63 = vadd.f32 %v7523_v16, %v9799_v9  ;;  %v6237_v0 = vpop.f32.mrb[87].mxu0 }
 0x46e   : > { %v6340_v41 = vmax.f32 %v6308_v14, 0.0  ;;  %v6309_v57 = vadd.f32 %v9799_v9, %v6237_v0 }
 0x46f   : > { %6375 = vst.msk [vmem:[%s9806_s10 + $0xb0] sm:$0xff] %vm6352_vm0, %v6342_v47  ;;  %v6343_v42 = vmax.f32 %v6311_v63, 0.0 }
 0x470   : > { %6373 = vst.msk [vmem:[%s9806_s10 + $0xa0] sm:$0xff] %vm6352_vm0, %v6340_v41  ;;  %v6341_v1 = vmax.f32 %v6309_v57, 0.0 }
 0x471   : > { %6376 = vst.msk [vmem:[%s9806_s10 + $0xb8] sm:$0xff] %vm6352_vm0, %v6343_v42 }
 0x472   : > { %6374 = vst.msk [vmem:[%s9806_s10 + $0xa8] sm:$0xff] %vm6352_vm0, %v6341_v1  ;;  %v7526_v39 = vpop.f32.mrb[88].mxu0 }
 0x473   : > { %v6314_v33 = vadd.f32 %v7526_v39, %v9799_v9  ;;  %v6250_v56 = vpop.f32.mrb[89].mxu0 }
 0x474   : > { %v6312_v27 = vadd.f32 %v9799_v9, %v6250_v56  ;;  %v7527_v30 = vpop.f32.mrb[90].mxu0 }
 0x475   : > { %v6346_v29 = vmax.f32 %v6314_v33, 0.0  ;;  %v6315_v23 = vadd.f32 %v7527_v30, %v9799_v9  ;;  %v6253_v38 = vpop.f32.mrb[91].mxu0 }
 0x476   : > { %v6344_v51 = vmax.f32 %v6312_v27, 0.0  ;;  %v6313_v2 = vadd.f32 %v9799_v9, %v6253_v38 }
 0x477   : > { %6379 = vst.msk [vmem:[%s9806_s10 + $0xd0] sm:$0xff] %vm6352_vm0, %v6346_v29  ;;  %v6347_v34 = vmax.f32 %v6315_v23, 0.0 }
 0x478   : > { %6377 = vst.msk [vmem:[%s9806_s10 + $0xc0] sm:$0xff] %vm6352_vm0, %v6344_v51  ;;  %v6345_v48 = vmax.f32 %v6313_v2, 0.0 }
 0x479   : > { %6380 = vst.msk [vmem:[%s9806_s10 + $0xd8] sm:$0xff] %vm6352_vm0, %v6347_v34 }
 0x47a   : > { %6378 = vst.msk [vmem:[%s9806_s10 + $0xc8] sm:$0xff] %vm6352_vm0, %v6345_v48  ;;  %v7530_v10 = vpop.f32.mrb[92].mxu0 }
 0x47b   : > { %v6318_v36 = vadd.f32 %v7530_v10, %v9799_v9  ;;  %v6266_v61 = vpop.f32.mrb[93].mxu0 }
 0x47c   : > { %v6316_v46 = vadd.f32 %v9799_v9, %v6266_v61  ;;  %v7531_v28 = vpop.f32.mrb[94].mxu0 }
 0x47d   : > { %v6350_v60 = vmax.f32 %v6318_v36, 0.0  ;;  %v6319_v59 = vadd.f32 %v7531_v28, %v9799_v9  ;;  %v6269_v8 = vpop.f32.mrb[95].mxu0 }
 0x47e   : > { %v6348_v5 = vmax.f32 %v6316_v46, 0.0  ;;  %v6317_v7 = vadd.f32 %v9799_v9, %v6269_v8 }
 0x47f   : > { %6383 = vst.msk [vmem:[%s9806_s10 + $0xf0] sm:$0xff] %vm6352_vm0, %v6350_v60  ;;  %v6351_v52 = vmax.f32 %v6319_v59, 0.0 }
 0x480   : > { %6381 = vst.msk [vmem:[%s9806_s10 + $0xe0] sm:$0xff] %vm6352_vm0, %v6348_v5  ;;  %v6349_v49 = vmax.f32 %v6317_v7, 0.0 }
 0x481   : > { %6384 = vst.msk [vmem:[%s9806_s10 + $0xf8] sm:$0xff] %vm6352_vm0, %v6351_v52 }
 0x482   : > { %6382 = vst.msk [vmem:[%s9806_s10 + $0xe8] sm:$0xff] %vm6352_vm0, %v6349_v49 }
 0x483 PF: > { %s18_s27 = sadd.s32 1, %s7961_s27  }
 0x484   : > { %p15_p4 = scmp.ge.s32.totalorder %s18_s27, 4  }
 0x486   :  { %17 = sbr.rel (!%p15_p4) target bundleno = 1 (0x1), region = 84 }

</bundles_post_ra>
